<compile_context>
chip_gen: v6e
topology: v6e:2x2x1
jax: 0.10.0
libtpu: 0.0.40
codegen_flags: <defaults>
</compile_context>

<pallas_src>
import jax
import jax.numpy as jnp
from jax.experimental import pallas as pl
from jax.experimental.pallas import tpu as pltpu

F_DIM = 128         # num_features (torch default)
R_DIM = 20          # num_rbf_features
N_LAYERS = 3        # num_message_passing_layers
CUTOFF = 5.0
N_ATOM_TYPES = 100  # num_unique_atoms
TILE_I = 8          # target-node tile for the message kernel
TILE_N = 8          # node-row tile for the MLP / update kernels


# ------------------------------ Pallas kernels ------------------------------

def _mlp2_kernel(x_ref, w1_ref, b1_ref, w2_ref, b2_ref, o_ref):
    """Fused Linear -> SiLU -> Linear."""
    h = jnp.dot(x_ref[...], w1_ref[...], preferred_element_type=jnp.float32) + b1_ref[...]
    h = h * (1.0 / (1.0 + jnp.exp(-h)))
    o_ref[...] = jnp.dot(h, w2_ref[...], preferred_element_type=jnp.float32) + b2_ref[...]


def mlp2(x, w1, b1, w2, b2, tile):
    """Row-tiled fused 2-layer MLP; weights use a constant index_map (VMEM resident)."""
    n, din = x.shape
    h = w1.shape[1]
    dout = w2.shape[1]
    return pl.pallas_call(
        _mlp2_kernel,
        grid=(n // tile,),
        in_specs=[
            pl.BlockSpec((tile, din), lambda r: (r, 0)),
            pl.BlockSpec((din, h), lambda r: (0, 0)),
            pl.BlockSpec((1, h), lambda r: (0, 0)),
            pl.BlockSpec((h, dout), lambda r: (0, 0)),
            pl.BlockSpec((1, dout), lambda r: (0, 0)),
        ],
        out_specs=pl.BlockSpec((tile, dout), lambda r: (r, 0)),
        out_shape=jax.ShapeDtypeStruct((n, dout), jnp.float32),
        compiler_params=pltpu.CompilerParams(dimension_semantics=("parallel",)),
    )(x, w1, b1.reshape(1, -1), w2, b2.reshape(1, -1))


def _message_kernel(phi_ref, vec_ref, edge_ref, wbig_ref, sum_ref, ds_ref, dvec_ref):
    """One grid step == TILE_I target nodes, reduced over all N candidate sources.

    edge_ref : [TILE_I*N, 4*(R+1)]  augmented edge features (rbf*fcut*mask, and
               the same scaled by dir_x/dir_y/dir_z) for this target tile.
    wbig_ref : [4*(R+1), 5F]        block-structured filter weights (bias folded in).
    sum_ref  : [TILE_I, TILE_I*N]   0/1 selection matrix -> neighbour sum on the MXU.
    """
    F = ds_ref.shape[-1]
    TI = ds_ref.shape[0]

    # rbf -> filter linear, fused: one MXU matmul gives Wf1, Wf2, Wf3*dir_{x,y,z}
    # (cosine cutoff, edge mask and the bias are already folded into the inputs).
    w_all = jnp.dot(edge_ref[...], wbig_ref[...],
                    preferred_element_type=jnp.float32)          # [TI*N, 5F]

    # Replicate per-source phi / vec across the TILE_I target groups (sublane concat).
    phi_t = jnp.concatenate([phi_ref[...]] * TI, axis=0)         # [TI*N, 3F]
    m1 = phi_t[:, 0:F] * w_all[:, 0:F]                           # scalar message
    m2 = phi_t[:, F:2 * F] * w_all[:, F:2 * F]                   # gates v_j
    phi3 = phi_t[:, 2 * F:3 * F]

    pieces = [m1]
    for c in range(3):
        v_c = jnp.concatenate([vec_ref[c]] * TI, axis=0)         # [TI*N, F]
        pieces.append(v_c * m2 + phi3 * w_all[:, (2 + c) * F:(3 + c) * F])
    big = jnp.concatenate(pieces, axis=-1)                       # [TI*N, 4F]

    # Single neighbour reduction for ds + 3 dvec components, as an MXU matmul.
    red = jnp.dot(sum_ref[...], big, preferred_element_type=jnp.float32)  # [TI, 4F]

    ds_ref[...] = red[:, 0:F]
    for c in range(3):
        dvec_ref[c] = red[:, (c + 1) * F:(c + 2) * F]


def message_agg(phi, vec, edge_in, w_big, sum_mat, tile_i):
    _, n, f = vec.shape
    e = edge_in.shape[1]
    ds, dvec = pl.pallas_call(
        _message_kernel,
        grid=(n // tile_i,),
        in_specs=[
            pl.BlockSpec((n, phi.shape[1]), lambda t: (0, 0)),       # phi(s_j), all sources
            pl.BlockSpec((3, n, f), lambda t: (0, 0, 0)),            # vec_j, all sources
            pl.BlockSpec((tile_i * n, e), lambda t: (t, 0)),         # edge feats, target tile
            pl.BlockSpec(w_big.shape, lambda t: (0, 0)),             # fused filter weights
            pl.BlockSpec(sum_mat.shape, lambda t: (0, 0)),           # neighbour-sum matrix
        ],
        out_specs=(
            pl.BlockSpec((tile_i, f), lambda t: (t, 0)),
            pl.BlockSpec((3, tile_i, f), lambda t: (0, t, 0)),
        ),
        out_shape=(
            jax.ShapeDtypeStruct((n, f), jnp.float32),
            jax.ShapeDtypeStruct((3, n, f), jnp.float32),
        ),
        compiler_params=pltpu.CompilerParams(dimension_semantics=("parallel",)),
    )(phi, vec, edge_in, w_big, sum_mat)
    return ds, dvec


def _update_kernel(s_ref, vec_ref, uv_ref, w1_ref, b1_ref, w2_ref, b2_ref,
                   ds_ref, dvec_ref):
    F = s_ref.shape[-1]
    TN = s_ref.shape[0]
    s = s_ref[...]

    # One matmul for U and V over all 3 components: [3*TN, F] @ [F, 2F].
    vflat = jnp.concatenate([vec_ref[0], vec_ref[1], vec_ref[2]], axis=0)
    uvv = jnp.dot(vflat, uv_ref[...], preferred_element_type=jnp.float32)   # [3TN, 2F]
    Uv = [uvv[c * TN:(c + 1) * TN, 0:F] for c in range(3)]
    Vv = [uvv[c * TN:(c + 1) * TN, F:2 * F] for c in range(3)]

    # eps guards the backward pass (||Vv|| == 0 at layer 0); forward change ~1e-4.
    vv_norm = jnp.sqrt(Vv[0] * Vv[0] + Vv[1] * Vv[1] + Vv[2] * Vv[2] + 1e-8)

    # concat([s, ||Vv||]) @ w1 expressed as a split matmul (avoids in-kernel concat).
    a1 = (jnp.dot(s, w1_ref[0:F, :], preferred_element_type=jnp.float32)
          + jnp.dot(vv_norm, w1_ref[F:2 * F, :], preferred_element_type=jnp.float32)
          + b1_ref[...])
    a1 = a1 * (1.0 / (1.0 + jnp.exp(-a1)))                                  # SiLU
    a = jnp.dot(a1, w2_ref[...], preferred_element_type=jnp.float32) + b2_ref[...]
    a_vv = a[:, 0:F]
    a_sv = a[:, F:2 * F]
    a_ss = a[:, 2 * F:3 * F]

    inner = Uv[0] * Vv[0] + Uv[1] * Vv[1] + Uv[2] * Vv[2]                   # <Uv, Vv>
    ds_ref[...] = a_ss + a_sv * inner
    for c in range(3):
        dvec_ref[c] = Uv[c] * a_vv


def update_block(s, vec, uv, w1, b1, w2, b2, tile):
    n, f = s.shape
    ds, dvec = pl.pallas_call(
        _update_kernel,
        grid=(n // tile,),
        in_specs=[
            pl.BlockSpec((tile, f), lambda r: (r, 0)),
            pl.BlockSpec((3, tile, f), lambda r: (0, r, 0)),
            pl.BlockSpec((f, 2 * f), lambda r: (0, 0)),
            pl.BlockSpec((2 * f, f), lambda r: (0, 0)),
            pl.BlockSpec((1, f), lambda r: (0, 0)),
            pl.BlockSpec((f, 3 * f), lambda r: (0, 0)),
            pl.BlockSpec((1, 3 * f), lambda r: (0, 0)),
        ],
        out_specs=(
            pl.BlockSpec((tile, f), lambda r: (r, 0)),
            pl.BlockSpec((3, tile, f), lambda r: (0, r, 0)),
        ),
        out_shape=(
            jax.ShapeDtypeStruct((n, f), jnp.float32),
            jax.ShapeDtypeStruct((3, n, f), jnp.float32),
        ),
        compiler_params=pltpu.CompilerParams(dimension_semantics=("parallel",)),
    )(s, vec, uv, w1, b1.reshape(1, -1), w2, b2.reshape(1, -1))
    return ds, dvec


# ------------------------------ JAX glue (edges, RBF, embedding) ------------------------------

def build_edges(pos, graph_idx, cutoff):
    n = pos.shape[0]
    diff = pos[None, :, :] - pos[:, None, :]            # diff[i, j] = pos_j - pos_i
    dist = jnp.sqrt(jnp.sum(diff * diff, axis=-1))      # [N, N]
    same = graph_idx[:, None] == graph_idx[None, :]
    not_self = ~jnp.eye(n, dtype=bool)
    mask = same & not_self & (dist < cutoff)
    safe_d = jnp.where(mask, dist, 1.0)                 # avoid 0-div on masked pairs
    dirn = diff / safe_d[..., None]                     # unit direction i -> j
    return mask, safe_d, dirn


def radial_basis(safe_d, num_rbf, cutoff):
    n = jnp.arange(1, num_rbf + 1, dtype=jnp.float32)
    return jnp.sin(n[None, None, :] * jnp.pi * safe_d[..., None] / cutoff) / safe_d[..., None]


def build_edge_features(pos, graph_idx, num_rbf, cutoff):
    """Augmented per-edge features: [rbf*fcm, fcm] and the same scaled by dir_{x,y,z}.

    fcm = cosine_cutoff * mask. The extra constant channel carries the rbf-linear
    bias; the dir-scaled copies let the direction term become part of the single
    in-kernel matmul (no width-1/3 lane blocks). Shape: [N*N, 4*(R+1)].
    """
    n = pos.shape[0]
    mask, safe_d, dirn = build_edges(pos, graph_idx, cutoff)
    rbf = radial_basis(safe_d, num_rbf, cutoff)                      # [N, N, R]
    fcut = 0.5 * (jnp.cos(jnp.pi * safe_d / cutoff) + 1.0)
    fcm = (fcut * mask.astype(jnp.float32))[..., None]               # [N, N, 1]
    rbf_aug = jnp.concatenate([rbf, jnp.ones((n, n, 1), jnp.float32)], axis=-1) * fcm
    edge_in = jnp.concatenate(
        [rbf_aug,
         rbf_aug * dirn[..., 0:1],
         rbf_aug * dirn[..., 1:2],
         rbf_aug * dirn[..., 2:3]], axis=-1)                         # [N, N, 4(R+1)]
    return edge_in.reshape(n * n, -1)


def build_wbig(rbf_w, rbf_b, f):
    """Block-structured weight [4(R+1), 5F]: columns = [Wf1 | Wf2 | Wf3_x | Wf3_y | Wf3_z]."""
    rp = rbf_w.shape[0] + 1
    w_aug = jnp.concatenate([rbf_w, rbf_b[None, :]], axis=0)         # [R+1, 3F]
    wb = jnp.zeros((4 * rp, 5 * f), jnp.float32)
    wb = wb.at[0:rp, 0:2 * f].set(w_aug[:, 0:2 * f])
    for c in range(3):
        wb = wb.at[(1 + c) * rp:(2 + c) * rp, (2 + c) * f:(3 + c) * f].set(w_aug[:, 2 * f:3 * f])
    return wb


def build_sum_matrix(tile_i, n):
    """0/1 matrix [TILE_I, TILE_I*N]: row i sums the N source rows of target i."""
    rows = jnp.arange(tile_i)[:, None]
    cols = jnp.arange(tile_i * n)[None, :] // n
    return (rows == cols).astype(jnp.float32)


def painn_forward(params, atoms, atom_positions, graph_indexes,
                  num_layers=N_LAYERS, cutoff=CUTOFF):
    n = atoms.shape[0]
    f = params['embedding'].shape[1]
    r = params['message'][0]['rbf_w'].shape[0]
    assert n % TILE_I == 0 and n % TILE_N == 0

    s = jnp.take(params['embedding'], atoms, axis=0)        # [N, F]
    vec = jnp.zeros((3, n, f), jnp.float32)                 # torch.zeros(N, 3, F), comp-major

    edge_in = build_edge_features(atom_positions, graph_indexes, r, cutoff)
    sum_mat = build_sum_matrix(TILE_I, n)

    for layer in range(num_layers):
        mp = params['message'][layer]
        # --- MessageBlock ---
        phi = mlp2(s, mp['phi_w1'], mp['phi_b1'], mp['phi_w2'], mp['phi_b2'], TILE_N)  # [N, 3F]
        w_big = build_wbig(mp['rbf_w'], mp['rbf_b'], f)
        ds, dvec = message_agg(phi, vec, edge_in, w_big, sum_mat, TILE_I)
        s = s + ds
        vec = vec + dvec
        # --- UpdateBlock ---
        up = params['update'][layer]
        uv = jnp.concatenate([up['U'], up['V']], axis=1)                               # [F, 2F]
        ds, dvec = update_block(s, vec, uv, up['w1'], up['b1'], up['w2'], up['b2'], TILE_N)
        s = s + ds
        vec = vec + dvec

    # readout: Linear(F, F//2) -> SiLU -> Linear(F//2, 1), fused in one kernel
    return mlp2(s, params['out_w1'], params['out_b1'],
                params['out_w2'], params['out_b2'], TILE_N)          # [N, 1]


# ------------------------------ deterministic parameter init ------------------------------

def init_params(key):
    f, r = F_DIM, R_DIM
    keys = iter(jax.random.split(key, 64))

    def p(shape, scale=0.1):
        return (scale * jax.random.normal(next(keys), shape)).astype(jnp.float32)

    params = {
        'embedding': p((N_ATOM_TYPES, f), 1.0),
        'message': [],
        'update': [],
        'out_w1': p((f, f // 2)), 'out_b1': jnp.zeros((f // 2,), jnp.float32),
        'out_w2': p((f // 2, 1)), 'out_b2': jnp.zeros((1,), jnp.float32),
    }
    for _ in range(N_LAYERS):
        params['message'].append({
            'phi_w1': p((f, f)), 'phi_b1': jnp.zeros((f,), jnp.float32),
            'phi_w2': p((f, 3 * f)), 'phi_b2': jnp.zeros((3 * f,), jnp.float32),
            'rbf_w': p((r, 3 * f)), 'rbf_b': jnp.zeros((3 * f,), jnp.float32),
        })
        params['update'].append({
            'U': p((f, f)), 'V': p((f, f)),
            'w1': p((2 * f, f)), 'b1': jnp.zeros((f,), jnp.float32),
            'w2': p((f, 3 * f)), 'b2': jnp.zeros((3 * f,), jnp.float32),
        })
    return params


if __name__ == "__main__":
    key = jax.random.PRNGKey(0)
    kp, ka, kpos = jax.random.split(key, 3)
    params = init_params(kp)

    N = 16  # num_nodes (atoms): 2 molecules of 8 atoms each
    atoms = jax.random.randint(ka, (N,), 0, N_ATOM_TYPES)                        # [N] int
    atom_positions = jax.random.uniform(kpos, (N, 3), minval=0.0,
                                        maxval=3.0).astype(jnp.float32)          # [N, 3]
    graph_indexes = jnp.repeat(jnp.arange(2, dtype=jnp.int32), 8)                # [N]

    fwd = jax.jit(painn_forward)
    out = fwd(params, atoms, atom_positions, graph_indexes)
    out = jax.block_until_ready(out)

    assert out.shape == (N, 1), out.shape
    assert bool(jnp.all(jnp.isfinite(out)))
    print("KERNEL_OK")
</pallas_src>

<mosaic_0001>
module attributes {stable_mosaic.version = 11 : i64} {
  func.func @_mlp2_kernel(%arg0: i32, %arg1: memref<8x128xf32, #tpu.memory_space<vmem>>, %arg2: memref<128x128xf32, #tpu.memory_space<vmem>>, %arg3: memref<1x128xf32, #tpu.memory_space<vmem>>, %arg4: memref<128x384xf32, #tpu.memory_space<vmem>>, %arg5: memref<1x384xf32, #tpu.memory_space<vmem>>, %arg6: memref<8x384xf32, #tpu.memory_space<vmem>>) attributes {dimension_semantics = [#tpu.dimension_semantics<parallel>], iteration_bounds = array<i64: 2>, scalar_prefetch = 0 : i64, scratch_operands = 0 : i64, tpu.core_type = #tpu.core_type<tc>, window_params = [{transform_indices = @transform_0, window_bounds = array<i64: 8, 128>}, {pipeline_mode = #tpu.pipeline_mode<synchronous>, transform_indices = @transform_1, window_bounds = array<i64: 128, 128>}, {pipeline_mode = #tpu.pipeline_mode<synchronous>, transform_indices = @transform_2, window_bounds = array<i64: 1, 128>}, {pipeline_mode = #tpu.pipeline_mode<synchronous>, transform_indices = @transform_3, window_bounds = array<i64: 128, 384>}, {pipeline_mode = #tpu.pipeline_mode<synchronous>, transform_indices = @transform_4, window_bounds = array<i64: 1, 384>}, {transform_indices = @transform_5, window_bounds = array<i64: 8, 384>}]} {
    %c0 = arith.constant 0 : index
    %c0_0 = arith.constant 0 : index
    %0 = vector.load %arg1[%c0, %c0_0] : memref<8x128xf32, #tpu.memory_space<vmem>>, vector<8x128xf32>
    %c0_1 = arith.constant 0 : index
    %c0_2 = arith.constant 0 : index
    %1 = vector.load %arg2[%c0_1, %c0_2] : memref<128x128xf32, #tpu.memory_space<vmem>>, vector<128x128xf32>
    %cst = arith.constant dense<0.000000e+00> : vector<8x128xf32>
    %2 = tpu.matmul %0, %1, %cst {dimension_numbers = #tpu.dot_dimension_numbers<[1], [0], [0], [1], [0, 0, 1, 1], [], []>} : vector<8x128xf32>, vector<128x128xf32>, vector<8x128xf32> -> vector<8x128xf32>
    %c0_3 = arith.constant 0 : index
    %c0_4 = arith.constant 0 : index
    %3 = vector.load %arg3[%c0_3, %c0_4] : memref<1x128xf32, #tpu.memory_space<vmem>>, vector<1x128xf32>
    %4 = vector.broadcast %3 : vector<1x128xf32> to vector<8x128xf32>
    %5 = arith.addf %2, %4 : vector<8x128xf32>
    %cst_5 = arith.constant 0.000000e+00 : f32
    %6 = vector.broadcast %cst_5 : f32 to vector<8x128xf32>
    %7 = arith.subf %6, %5 : vector<8x128xf32>
    %8 = math.exp %7 : vector<8x128xf32>
    %cst_6 = arith.constant 1.000000e+00 : f32
    %9 = vector.broadcast %cst_6 : f32 to vector<8x128xf32>
    %10 = arith.addf %9, %8 : vector<8x128xf32>
    %cst_7 = arith.constant 1.000000e+00 : f32
    %11 = vector.broadcast %cst_7 : f32 to vector<8x128xf32>
    %12 = arith.divf %11, %10 : vector<8x128xf32>
    %13 = arith.mulf %5, %12 : vector<8x128xf32>
    %c0_8 = arith.constant 0 : index
    %c0_9 = arith.constant 0 : index
    %14 = vector.load %arg4[%c0_8, %c0_9] : memref<128x384xf32, #tpu.memory_space<vmem>>, vector<128x384xf32>
    %cst_10 = arith.constant dense<0.000000e+00> : vector<8x384xf32>
    %15 = tpu.matmul %13, %14, %cst_10 {dimension_numbers = #tpu.dot_dimension_numbers<[1], [0], [0], [1], [0, 0, 1, 1], [], []>} : vector<8x128xf32>, vector<128x384xf32>, vector<8x384xf32> -> vector<8x384xf32>
    %c0_11 = arith.constant 0 : index
    %c0_12 = arith.constant 0 : index
    %16 = vector.load %arg5[%c0_11, %c0_12] : memref<1x384xf32, #tpu.memory_space<vmem>>, vector<1x384xf32>
    %17 = vector.broadcast %16 : vector<1x384xf32> to vector<8x384xf32>
    %18 = arith.addf %15, %17 : vector<8x384xf32>
    %c0_13 = arith.constant 0 : index
    %c0_14 = arith.constant 0 : index
    %19 = vector.load %arg6[%c0_13, %c0_14] : memref<8x384xf32, #tpu.memory_space<vmem>>, vector<8x384xf32>
    tpu.vector_store %arg6[%c0_13, %c0_14], %18 {strides = array<i32>} : memref<8x384xf32, #tpu.memory_space<vmem>>, vector<8x384xf32>,
    return
  }
  func.func @transform_0(%arg0: i32) -> (i32, i32) {
    %c0_i32 = arith.constant 0 : i32
    %c0_i32_0 = arith.constant 0 : i32
    return %arg0, %c0_i32 : i32, i32
  }
  func.func @transform_1(%arg0: i32) -> (i32, i32) {
    %c0_i32 = arith.constant 0 : i32
    %c0_i32_0 = arith.constant 0 : i32
    %c0_i32_1 = arith.constant 0 : i32
    return %c0_i32, %c0_i32_0 : i32, i32
  }
  func.func @transform_2(%arg0: i32) -> (i32, i32) {
    %c0_i32 = arith.constant 0 : i32
    %c0_i32_0 = arith.constant 0 : i32
    %c0_i32_1 = arith.constant 0 : i32
    return %c0_i32, %c0_i32_0 : i32, i32
  }
  func.func @transform_3(%arg0: i32) -> (i32, i32) {
    %c0_i32 = arith.constant 0 : i32
    %c0_i32_0 = arith.constant 0 : i32
    %c0_i32_1 = arith.constant 0 : i32
    return %c0_i32, %c0_i32_0 : i32, i32
  }
  func.func @transform_4(%arg0: i32) -> (i32, i32) {
    %c0_i32 = arith.constant 0 : i32
    %c0_i32_0 = arith.constant 0 : i32
    %c0_i32_1 = arith.constant 0 : i32
    return %c0_i32, %c0_i32_0 : i32, i32
  }
  func.func @transform_5(%arg0: i32) -> (i32, i32) {
    %c0_i32 = arith.constant 0 : i32
    %c0_i32_0 = arith.constant 0 : i32
    return %arg0, %c0_i32 : i32, i32
  }
}

module attributes {stable_mosaic.version = 11 : i64} {
  func.func @_update_kernel(%arg0: i32, %arg1: memref<8x128xf32, #tpu.memory_space<vmem>>, %arg2: memref<3x8x128xf32, #tpu.memory_space<vmem>>, %arg3: memref<128x256xf32, #tpu.memory_space<vmem>>, %arg4: memref<256x128xf32, #tpu.memory_space<vmem>>, %arg5: memref<1x128xf32, #tpu.memory_space<vmem>>, %arg6: memref<128x384xf32, #tpu.memory_space<vmem>>, %arg7: memref<1x384xf32, #tpu.memory_space<vmem>>, %arg8: memref<8x128xf32, #tpu.memory_space<vmem>>, %arg9: memref<3x8x128xf32, #tpu.memory_space<vmem>>) attributes {dimension_semantics = [#tpu.dimension_semantics<parallel>], iteration_bounds = array<i64: 2>, scalar_prefetch = 0 : i64, scratch_operands = 0 : i64, tpu.core_type = #tpu.core_type<tc>, window_params = [{transform_indices = @transform_0, window_bounds = array<i64: 8, 128>}, {transform_indices = @transform_1, window_bounds = array<i64: 3, 8, 128>}, {pipeline_mode = #tpu.pipeline_mode<synchronous>, transform_indices = @transform_2, window_bounds = array<i64: 128, 256>}, {pipeline_mode = #tpu.pipeline_mode<synchronous>, transform_indices = @transform_3, window_bounds = array<i64: 256, 128>}, {pipeline_mode = #tpu.pipeline_mode<synchronous>, transform_indices = @transform_4, window_bounds = array<i64: 1, 128>}, {pipeline_mode = #tpu.pipeline_mode<synchronous>, transform_indices = @transform_5, window_bounds = array<i64: 128, 384>}, {pipeline_mode = #tpu.pipeline_mode<synchronous>, transform_indices = @transform_6, window_bounds = array<i64: 1, 384>}, {transform_indices = @transform_7, window_bounds = array<i64: 8, 128>}, {transform_indices = @transform_8, window_bounds = array<i64: 3, 8, 128>}]} {
    %c0 = arith.constant 0 : index
    %c0_0 = arith.constant 0 : index
    %0 = vector.load %arg1[%c0, %c0_0] : memref<8x128xf32, #tpu.memory_space<vmem>>, vector<8x128xf32>
    %c0_1 = arith.constant 0 : index
    %c0_2 = arith.constant 0 : index
    %c0_3 = arith.constant 0 : index
    %1 = vector.load %arg2[%c0_1, %c0_2, %c0_3] : memref<3x8x128xf32, #tpu.memory_space<vmem>>, vector<1x8x128xf32>
    %2 = vector.shape_cast %1 : vector<1x8x128xf32> to vector<8x128xf32>
    %c1 = arith.constant 1 : index
    %c0_4 = arith.constant 0 : index
    %c0_5 = arith.constant 0 : index
    %3 = vector.load %arg2[%c1, %c0_4, %c0_5] : memref<3x8x128xf32, #tpu.memory_space<vmem>>, vector<1x8x128xf32>
    %4 = vector.shape_cast %3 : vector<1x8x128xf32> to vector<8x128xf32>
    %c2 = arith.constant 2 : index
    %c0_6 = arith.constant 0 : index
    %c0_7 = arith.constant 0 : index
    %5 = vector.load %arg2[%c2, %c0_6, %c0_7] : memref<3x8x128xf32, #tpu.memory_space<vmem>>, vector<1x8x128xf32>
    %6 = vector.shape_cast %5 : vector<1x8x128xf32> to vector<8x128xf32>
    %7 = tpu.concatenate %2, %4, %6 in 0 : vector<8x128xf32>, vector<8x128xf32>, vector<8x128xf32> -> vector<24x128xf32>
    %c0_8 = arith.constant 0 : index
    %c0_9 = arith.constant 0 : index
    %8 = vector.load %arg3[%c0_8, %c0_9] : memref<128x256xf32, #tpu.memory_space<vmem>>, vector<128x256xf32>
    %cst = arith.constant dense<0.000000e+00> : vector<24x256xf32>
    %9 = tpu.matmul %7, %8, %cst {dimension_numbers = #tpu.dot_dimension_numbers<[1], [0], [0], [1], [0, 0, 1, 1], [], []>} : vector<24x128xf32>, vector<128x256xf32>, vector<24x256xf32> -> vector<24x256xf32>
    %10 = vector.extract_strided_slice %9 {offsets = [0, 0], sizes = [8, 128], strides = [1, 1]} : vector<24x256xf32> to vector<8x128xf32>
    %11 = vector.extract_strided_slice %9 {offsets = [8, 0], sizes = [8, 128], strides = [1, 1]} : vector<24x256xf32> to vector<8x128xf32>
    %12 = vector.extract_strided_slice %9 {offsets = [16, 0], sizes = [8, 128], strides = [1, 1]} : vector<24x256xf32> to vector<8x128xf32>
    %13 = vector.extract_strided_slice %9 {offsets = [0, 128], sizes = [8, 128], strides = [1, 1]} : vector<24x256xf32> to vector<8x128xf32>
    %14 = vector.extract_strided_slice %9 {offsets = [8, 128], sizes = [8, 128], strides = [1, 1]} : vector<24x256xf32> to vector<8x128xf32>
    %15 = vector.extract_strided_slice %9 {offsets = [16, 128], sizes = [8, 128], strides = [1, 1]} : vector<24x256xf32> to vector<8x128xf32>
    %16 = arith.mulf %13, %13 : vector<8x128xf32>
    %17 = arith.mulf %14, %14 : vector<8x128xf32>
    %18 = arith.addf %16, %17 : vector<8x128xf32>
    %19 = arith.mulf %15, %15 : vector<8x128xf32>
    %20 = arith.addf %18, %19 : vector<8x128xf32>
    %cst_10 = arith.constant 9.99999993E-9 : f32
    %21 = vector.broadcast %cst_10 : f32 to vector<8x128xf32>
    %22 = arith.addf %20, %21 : vector<8x128xf32>
    %23 = math.sqrt %22 : vector<8x128xf32>
    %c0_11 = arith.constant 0 : index
    %c0_12 = arith.constant 0 : index
    %24 = vector.load %arg4[%c0_11, %c0_12] : memref<256x128xf32, #tpu.memory_space<vmem>>, vector<128x128xf32>
    %cst_13 = arith.constant dense<0.000000e+00> : vector<8x128xf32>
    %25 = tpu.matmul %0, %24, %cst_13 {dimension_numbers = #tpu.dot_dimension_numbers<[1], [0], [0], [1], [0, 0, 1, 1], [], []>} : vector<8x128xf32>, vector<128x128xf32>, vector<8x128xf32> -> vector<8x128xf32>
    %c128 = arith.constant 128 : index
    %c0_14 = arith.constant 0 : index
    %26 = vector.load %arg4[%c128, %c0_14] : memref<256x128xf32, #tpu.memory_space<vmem>>, vector<128x128xf32>
    %cst_15 = arith.constant dense<0.000000e+00> : vector<8x128xf32>
    %27 = tpu.matmul %23, %26, %cst_15 {dimension_numbers = #tpu.dot_dimension_numbers<[1], [0], [0], [1], [0, 0, 1, 1], [], []>} : vector<8x128xf32>, vector<128x128xf32>, vector<8x128xf32> -> vector<8x128xf32>
    %28 = arith.addf %25, %27 : vector<8x128xf32>
    %c0_16 = arith.constant 0 : index
    %c0_17 = arith.constant 0 : index
    %29 = vector.load %arg5[%c0_16, %c0_17] : memref<1x128xf32, #tpu.memory_space<vmem>>, vector<1x128xf32>
    %30 = vector.broadcast %29 : vector<1x128xf32> to vector<8x128xf32>
    %31 = arith.addf %28, %30 : vector<8x128xf32>
    %cst_18 = arith.constant 0.000000e+00 : f32
    %32 = vector.broadcast %cst_18 : f32 to vector<8x128xf32>
    %33 = arith.subf %32, %31 : vector<8x128xf32>
    %34 = math.exp %33 : vector<8x128xf32>
    %cst_19 = arith.constant 1.000000e+00 : f32
    %35 = vector.broadcast %cst_19 : f32 to vector<8x128xf32>
    %36 = arith.addf %35, %34 : vector<8x128xf32>
    %cst_20 = arith.constant 1.000000e+00 : f32
    %37 = vector.broadcast %cst_20 : f32 to vector<8x128xf32>
    %38 = arith.divf %37, %36 : vector<8x128xf32>
    %39 = arith.mulf %31, %38 : vector<8x128xf32>
    %c0_21 = arith.constant 0 : index
    %c0_22 = arith.constant 0 : index
    %40 = vector.load %arg6[%c0_21, %c0_22] : memref<128x384xf32, #tpu.memory_space<vmem>>, vector<128x384xf32>
    %cst_23 = arith.constant dense<0.000000e+00> : vector<8x384xf32>
    %41 = tpu.matmul %39, %40, %cst_23 {dimension_numbers = #tpu.dot_dimension_numbers<[1], [0], [0], [1], [0, 0, 1, 1], [], []>} : vector<8x128xf32>, vector<128x384xf32>, vector<8x384xf32> -> vector<8x384xf32>
    %c0_24 = arith.constant 0 : index
    %c0_25 = arith.constant 0 : index
    %42 = vector.load %arg7[%c0_24, %c0_25] : memref<1x384xf32, #tpu.memory_space<vmem>>, vector<1x384xf32>
    %43 = vector.broadcast %42 : vector<1x384xf32> to vector<8x384xf32>
    %44 = arith.addf %41, %43 : vector<8x384xf32>
    %45 = vector.extract_strided_slice %44 {offsets = [0, 0], sizes = [8, 128], strides = [1, 1]} : vector<8x384xf32> to vector<8x128xf32>
    %46 = vector.extract_strided_slice %44 {offsets = [0, 128], sizes = [8, 128], strides = [1, 1]} : vector<8x384xf32> to vector<8x128xf32>
    %47 = vector.extract_strided_slice %44 {offsets = [0, 256], sizes = [8, 128], strides = [1, 1]} : vector<8x384xf32> to vector<8x128xf32>
    %48 = arith.mulf %10, %13 : vector<8x128xf32>
    %49 = arith.mulf %11, %14 : vector<8x128xf32>
    %50 = arith.addf %48, %49 : vector<8x128xf32>
    %51 = arith.mulf %12, %15 : vector<8x128xf32>
    %52 = arith.addf %50, %51 : vector<8x128xf32>
    %53 = arith.mulf %46, %52 : vector<8x128xf32>
    %54 = arith.addf %47, %53 : vector<8x128xf32>
    %c0_26 = arith.constant 0 : index
    %c0_27 = arith.constant 0 : index
    %55 = vector.load %arg8[%c0_26, %c0_27] : memref<8x128xf32, #tpu.memory_space<vmem>>, vector<8x128xf32>
    tpu.vector_store %arg8[%c0_26, %c0_27], %54 {strides = array<i32>} : memref<8x128xf32, #tpu.memory_space<vmem>>, vector<8x128xf32>,
    %56 = arith.mulf %10, %45 : vector<8x128xf32>
    %c0_28 = arith.constant 0 : index
    %c0_29 = arith.constant 0 : index
    %c0_30 = arith.constant 0 : index
    %57 = vector.load %arg9[%c0_28, %c0_29, %c0_30] : memref<3x8x128xf32, #tpu.memory_space<vmem>>, vector<1x8x128xf32>
    %58 = vector.shape_cast %57 : vector<1x8x128xf32> to vector<8x128xf32>
    %59 = vector.shape_cast %56 : vector<8x128xf32> to vector<1x8x128xf32>
    tpu.vector_store %arg9[%c0_28, %c0_29, %c0_30], %59 {strides = array<i32>} : memref<3x8x128xf32, #tpu.memory_space<vmem>>, vector<1x8x128xf32>,
    %60 = arith.mulf %11, %45 : vector<8x128xf32>
    %c1_31 = arith.constant 1 : index
    %c0_32 = arith.constant 0 : index
    %c0_33 = arith.constant 0 : index
    %61 = vector.load %arg9[%c1_31, %c0_32, %c0_33] : memref<3x8x128xf32, #tpu.memory_space<vmem>>, vector<1x8x128xf32>
    %62 = vector.shape_cast %61 : vector<1x8x128xf32> to vector<8x128xf32>
    %63 = vector.shape_cast %60 : vector<8x128xf32> to vector<1x8x128xf32>
    tpu.vector_store %arg9[%c1_31, %c0_32, %c0_33], %63 {strides = array<i32>} : memref<3x8x128xf32, #tpu.memory_space<vmem>>, vector<1x8x128xf32>,
    %64 = arith.mulf %12, %45 : vector<8x128xf32>
    %c2_34 = arith.constant 2 : index
    %c0_35 = arith.constant 0 : index
    %c0_36 = arith.constant 0 : index
    %65 = vector.load %arg9[%c2_34, %c0_35, %c0_36] : memref<3x8x128xf32, #tpu.memory_space<vmem>>, vector<1x8x128xf32>
    %66 = vector.shape_cast %65 : vector<1x8x128xf32> to vector<8x128xf32>
    %67 = vector.shape_cast %64 : vector<8x128xf32> to vector<1x8x128xf32>
    tpu.vector_store %arg9[%c2_34, %c0_35, %c0_36], %67 {strides = array<i32>} : memref<3x8x128xf32, #tpu.memory_space<vmem>>, vector<1x8x128xf32>,
    return
  }
  func.func @transform_0(%arg0: i32) -> (i32, i32) {
    %c0_i32 = arith.constant 0 : i32
    %c0_i32_0 = arith.constant 0 : i32
    return %arg0, %c0_i32 : i32, i32
  }
  func.func @transform_1(%arg0: i32) -> (i32, i32, i32) {
    %c0_i32 = arith.constant 0 : i32
    %c0_i32_0 = arith.constant 0 : i32
    %c0_i32_1 = arith.constant 0 : i32
    return %c0_i32, %arg0, %c0_i32_0 : i32, i32, i32
  }
  func.func @transform_2(%arg0: i32) -> (i32, i32) {
    %c0_i32 = arith.constant 0 : i32
    %c0_i32_0 = arith.constant 0 : i32
    %c0_i32_1 = arith.constant 0 : i32
    return %c0_i32, %c0_i32_0 : i32, i32
  }
  func.func @transform_3(%arg0: i32) -> (i32, i32) {
    %c0_i32 = arith.constant 0 : i32
    %c0_i32_0 = arith.constant 0 : i32
    %c0_i32_1 = arith.constant 0 : i32
    return %c0_i32, %c0_i32_0 : i32, i32
  }
  func.func @transform_4(%arg0: i32) -> (i32, i32) {
    %c0_i32 = arith.constant 0 : i32
    %c0_i32_0 = arith.constant 0 : i32
    %c0_i32_1 = arith.constant 0 : i32
    return %c0_i32, %c0_i32_0 : i32, i32
  }
  func.func @transform_5(%arg0: i32) -> (i32, i32) {
    %c0_i32 = arith.constant 0 : i32
    %c0_i32_0 = arith.constant 0 : i32
    %c0_i32_1 = arith.constant 0 : i32
    return %c0_i32, %c0_i32_0 : i32, i32
  }
  func.func @transform_6(%arg0: i32) -> (i32, i32) {
    %c0_i32 = arith.constant 0 : i32
    %c0_i32_0 = arith.constant 0 : i32
    %c0_i32_1 = arith.constant 0 : i32
    return %c0_i32, %c0_i32_0 : i32, i32
  }
  func.func @transform_7(%arg0: i32) -> (i32, i32) {
    %c0_i32 = arith.constant 0 : i32
    %c0_i32_0 = arith.constant 0 : i32
    return %arg0, %c0_i32 : i32, i32
  }
  func.func @transform_8(%arg0: i32) -> (i32, i32, i32) {
    %c0_i32 = arith.constant 0 : i32
    %c0_i32_0 = arith.constant 0 : i32
    %c0_i32_1 = arith.constant 0 : i32
    return %c0_i32, %arg0, %c0_i32_0 : i32, i32, i32
  }
}

module attributes {stable_mosaic.version = 11 : i64} {
  func.func @_message_kernel(%arg0: i32, %arg1: memref<16x384xf32, #tpu.memory_space<vmem>>, %arg2: memref<3x16x128xf32, #tpu.memory_space<vmem>>, %arg3: memref<128x84xf32, #tpu.memory_space<vmem>>, %arg4: memref<84x640xf32, #tpu.memory_space<vmem>>, %arg5: memref<8x128xf32, #tpu.memory_space<vmem>>, %arg6: memref<8x128xf32, #tpu.memory_space<vmem>>, %arg7: memref<3x8x128xf32, #tpu.memory_space<vmem>>) attributes {dimension_semantics = [#tpu.dimension_semantics<parallel>], iteration_bounds = array<i64: 2>, scalar_prefetch = 0 : i64, scratch_operands = 0 : i64, tpu.core_type = #tpu.core_type<tc>, window_params = [{pipeline_mode = #tpu.pipeline_mode<synchronous>, transform_indices = @transform_0, window_bounds = array<i64: 16, 384>}, {pipeline_mode = #tpu.pipeline_mode<synchronous>, transform_indices = @transform_1, window_bounds = array<i64: 3, 16, 128>}, {transform_indices = @transform_2, window_bounds = array<i64: 128, 84>}, {pipeline_mode = #tpu.pipeline_mode<synchronous>, transform_indices = @transform_3, window_bounds = array<i64: 84, 640>}, {pipeline_mode = #tpu.pipeline_mode<synchronous>, transform_indices = @transform_4, window_bounds = array<i64: 8, 128>}, {transform_indices = @transform_5, window_bounds = array<i64: 8, 128>}, {transform_indices = @transform_6, window_bounds = array<i64: 3, 8, 128>}]} {
    %c0 = arith.constant 0 : index
    %c0_0 = arith.constant 0 : index
    %0 = vector.load %arg3[%c0, %c0_0] : memref<128x84xf32, #tpu.memory_space<vmem>>, vector<128x84xf32>
    %c0_1 = arith.constant 0 : index
    %c0_2 = arith.constant 0 : index
    %1 = vector.load %arg4[%c0_1, %c0_2] : memref<84x640xf32, #tpu.memory_space<vmem>>, vector<84x640xf32>
    %cst = arith.constant dense<0.000000e+00> : vector<128x640xf32>
    %2 = tpu.matmul %0, %1, %cst {dimension_numbers = #tpu.dot_dimension_numbers<[1], [0], [0], [1], [0, 0, 1, 1], [], []>} : vector<128x84xf32>, vector<84x640xf32>, vector<128x640xf32> -> vector<128x640xf32>
    %c0_3 = arith.constant 0 : index
    %c0_4 = arith.constant 0 : index
    %3 = vector.load %arg1[%c0_3, %c0_4] : memref<16x384xf32, #tpu.memory_space<vmem>>, vector<16x384xf32>
    %4 = tpu.concatenate %3, %3, %3, %3, %3, %3, %3, %3 in 0 : vector<16x384xf32>, vector<16x384xf32>, vector<16x384xf32>, vector<16x384xf32>, vector<16x384xf32>, vector<16x384xf32>, vector<16x384xf32>, vector<16x384xf32> -> vector<128x384xf32>
    %5 = vector.extract_strided_slice %4 {offsets = [0, 0], sizes = [128, 128], strides = [1, 1]} : vector<128x384xf32> to vector<128x128xf32>
    %6 = vector.extract_strided_slice %2 {offsets = [0, 0], sizes = [128, 128], strides = [1, 1]} : vector<128x640xf32> to vector<128x128xf32>
    %7 = arith.mulf %5, %6 : vector<128x128xf32>
    %8 = vector.extract_strided_slice %4 {offsets = [0, 128], sizes = [128, 128], strides = [1, 1]} : vector<128x384xf32> to vector<128x128xf32>
    %9 = vector.extract_strided_slice %2 {offsets = [0, 128], sizes = [128, 128], strides = [1, 1]} : vector<128x640xf32> to vector<128x128xf32>
    %10 = arith.mulf %8, %9 : vector<128x128xf32>
    %11 = vector.extract_strided_slice %4 {offsets = [0, 256], sizes = [128, 128], strides = [1, 1]} : vector<128x384xf32> to vector<128x128xf32>
    %c0_5 = arith.constant 0 : index
    %c0_6 = arith.constant 0 : index
    %c0_7 = arith.constant 0 : index
    %12 = vector.load %arg2[%c0_5, %c0_6, %c0_7] : memref<3x16x128xf32, #tpu.memory_space<vmem>>, vector<1x16x128xf32>
    %13 = vector.shape_cast %12 : vector<1x16x128xf32> to vector<16x128xf32>
    %14 = tpu.concatenate %13, %13, %13, %13, %13, %13, %13, %13 in 0 : vector<16x128xf32>, vector<16x128xf32>, vector<16x128xf32>, vector<16x128xf32>, vector<16x128xf32>, vector<16x128xf32>, vector<16x128xf32>, vector<16x128xf32> -> vector<128x128xf32>
    %15 = arith.mulf %14, %10 : vector<128x128xf32>
    %16 = vector.extract_strided_slice %2 {offsets = [0, 256], sizes = [128, 128], strides = [1, 1]} : vector<128x640xf32> to vector<128x128xf32>
    %17 = arith.mulf %11, %16 : vector<128x128xf32>
    %18 = arith.addf %15, %17 : vector<128x128xf32>
    %c1 = arith.constant 1 : index
    %c0_8 = arith.constant 0 : index
    %c0_9 = arith.constant 0 : index
    %19 = vector.load %arg2[%c1, %c0_8, %c0_9] : memref<3x16x128xf32, #tpu.memory_space<vmem>>, vector<1x16x128xf32>
    %20 = vector.shape_cast %19 : vector<1x16x128xf32> to vector<16x128xf32>
    %21 = tpu.concatenate %20, %20, %20, %20, %20, %20, %20, %20 in 0 : vector<16x128xf32>, vector<16x128xf32>, vector<16x128xf32>, vector<16x128xf32>, vector<16x128xf32>, vector<16x128xf32>, vector<16x128xf32>, vector<16x128xf32> -> vector<128x128xf32>
    %22 = arith.mulf %21, %10 : vector<128x128xf32>
    %23 = vector.extract_strided_slice %2 {offsets = [0, 384], sizes = [128, 128], strides = [1, 1]} : vector<128x640xf32> to vector<128x128xf32>
    %24 = arith.mulf %11, %23 : vector<128x128xf32>
    %25 = arith.addf %22, %24 : vector<128x128xf32>
    %c2 = arith.constant 2 : index
    %c0_10 = arith.constant 0 : index
    %c0_11 = arith.constant 0 : index
    %26 = vector.load %arg2[%c2, %c0_10, %c0_11] : memref<3x16x128xf32, #tpu.memory_space<vmem>>, vector<1x16x128xf32>
    %27 = vector.shape_cast %26 : vector<1x16x128xf32> to vector<16x128xf32>
    %28 = tpu.concatenate %27, %27, %27, %27, %27, %27, %27, %27 in 0 : vector<16x128xf32>, vector<16x128xf32>, vector<16x128xf32>, vector<16x128xf32>, vector<16x128xf32>, vector<16x128xf32>, vector<16x128xf32>, vector<16x128xf32> -> vector<128x128xf32>
    %29 = arith.mulf %28, %10 : vector<128x128xf32>
    %30 = vector.extract_strided_slice %2 {offsets = [0, 512], sizes = [128, 128], strides = [1, 1]} : vector<128x640xf32> to vector<128x128xf32>
    %31 = arith.mulf %11, %30 : vector<128x128xf32>
    %32 = arith.addf %29, %31 : vector<128x128xf32>
    %33 = tpu.concatenate %7, %18, %25, %32 in 1 : vector<128x128xf32>, vector<128x128xf32>, vector<128x128xf32>, vector<128x128xf32> -> vector<128x512xf32>
    %c0_12 = arith.constant 0 : index
    %c0_13 = arith.constant 0 : index
    %34 = vector.load %arg5[%c0_12, %c0_13] : memref<8x128xf32, #tpu.memory_space<vmem>>, vector<8x128xf32>
    %cst_14 = arith.constant dense<0.000000e+00> : vector<8x512xf32>
    %35 = tpu.matmul %34, %33, %cst_14 {dimension_numbers = #tpu.dot_dimension_numbers<[1], [0], [0], [1], [0, 0, 1, 1], [], []>} : vector<8x128xf32>, vector<128x512xf32>, vector<8x512xf32> -> vector<8x512xf32>
    %36 = vector.extract_strided_slice %35 {offsets = [0, 0], sizes = [8, 128], strides = [1, 1]} : vector<8x512xf32> to vector<8x128xf32>
    %c0_15 = arith.constant 0 : index
    %c0_16 = arith.constant 0 : index
    %37 = vector.load %arg6[%c0_15, %c0_16] : memref<8x128xf32, #tpu.memory_space<vmem>>, vector<8x128xf32>
    tpu.vector_store %arg6[%c0_15, %c0_16], %36 {strides = array<i32>} : memref<8x128xf32, #tpu.memory_space<vmem>>, vector<8x128xf32>,
    %38 = vector.extract_strided_slice %35 {offsets = [0, 128], sizes = [8, 128], strides = [1, 1]} : vector<8x512xf32> to vector<8x128xf32>
    %c0_17 = arith.constant 0 : index
    %c0_18 = arith.constant 0 : index
    %c0_19 = arith.constant 0 : index
    %39 = vector.load %arg7[%c0_17, %c0_18, %c0_19] : memref<3x8x128xf32, #tpu.memory_space<vmem>>, vector<1x8x128xf32>
    %40 = vector.shape_cast %39 : vector<1x8x128xf32> to vector<8x128xf32>
    %41 = vector.shape_cast %38 : vector<8x128xf32> to vector<1x8x128xf32>
    tpu.vector_store %arg7[%c0_17, %c0_18, %c0_19], %41 {strides = array<i32>} : memref<3x8x128xf32, #tpu.memory_space<vmem>>, vector<1x8x128xf32>,
    %42 = vector.extract_strided_slice %35 {offsets = [0, 256], sizes = [8, 128], strides = [1, 1]} : vector<8x512xf32> to vector<8x128xf32>
    %c1_20 = arith.constant 1 : index
    %c0_21 = arith.constant 0 : index
    %c0_22 = arith.constant 0 : index
    %43 = vector.load %arg7[%c1_20, %c0_21, %c0_22] : memref<3x8x128xf32, #tpu.memory_space<vmem>>, vector<1x8x128xf32>
    %44 = vector.shape_cast %43 : vector<1x8x128xf32> to vector<8x128xf32>
    %45 = vector.shape_cast %42 : vector<8x128xf32> to vector<1x8x128xf32>
    tpu.vector_store %arg7[%c1_20, %c0_21, %c0_22], %45 {strides = array<i32>} : memref<3x8x128xf32, #tpu.memory_space<vmem>>, vector<1x8x128xf32>,
    %46 = vector.extract_strided_slice %35 {offsets = [0, 384], sizes = [8, 128], strides = [1, 1]} : vector<8x512xf32> to vector<8x128xf32>
    %c2_23 = arith.constant 2 : index
    %c0_24 = arith.constant 0 : index
    %c0_25 = arith.constant 0 : index
    %47 = vector.load %arg7[%c2_23, %c0_24, %c0_25] : memref<3x8x128xf32, #tpu.memory_space<vmem>>, vector<1x8x128xf32>
    %48 = vector.shape_cast %47 : vector<1x8x128xf32> to vector<8x128xf32>
    %49 = vector.shape_cast %46 : vector<8x128xf32> to vector<1x8x128xf32>
    tpu.vector_store %arg7[%c2_23, %c0_24, %c0_25], %49 {strides = array<i32>} : memref<3x8x128xf32, #tpu.memory_space<vmem>>, vector<1x8x128xf32>,
    return
  }
  func.func @transform_0(%arg0: i32) -> (i32, i32) {
    %c0_i32 = arith.constant 0 : i32
    %c0_i32_0 = arith.constant 0 : i32
    %c0_i32_1 = arith.constant 0 : i32
    return %c0_i32, %c0_i32_0 : i32, i32
  }
  func.func @transform_1(%arg0: i32) -> (i32, i32, i32) {
    %c0_i32 = arith.constant 0 : i32
    %c0_i32_0 = arith.constant 0 : i32
    %c0_i32_1 = arith.constant 0 : i32
    %c0_i32_2 = arith.constant 0 : i32
    return %c0_i32, %c0_i32_0, %c0_i32_1 : i32, i32, i32
  }
  func.func @transform_2(%arg0: i32) -> (i32, i32) {
    %c0_i32 = arith.constant 0 : i32
    %c0_i32_0 = arith.constant 0 : i32
    return %arg0, %c0_i32 : i32, i32
  }
  func.func @transform_3(%arg0: i32) -> (i32, i32) {
    %c0_i32 = arith.constant 0 : i32
    %c0_i32_0 = arith.constant 0 : i32
    %c0_i32_1 = arith.constant 0 : i32
    return %c0_i32, %c0_i32_0 : i32, i32
  }
  func.func @transform_4(%arg0: i32) -> (i32, i32) {
    %c0_i32 = arith.constant 0 : i32
    %c0_i32_0 = arith.constant 0 : i32
    %c0_i32_1 = arith.constant 0 : i32
    return %c0_i32, %c0_i32_0 : i32, i32
  }
  func.func @transform_5(%arg0: i32) -> (i32, i32) {
    %c0_i32 = arith.constant 0 : i32
    %c0_i32_0 = arith.constant 0 : i32
    return %arg0, %c0_i32 : i32, i32
  }
  func.func @transform_6(%arg0: i32) -> (i32, i32, i32) {
    %c0_i32 = arith.constant 0 : i32
    %c0_i32_0 = arith.constant 0 : i32
    %c0_i32_1 = arith.constant 0 : i32
    return %c0_i32, %arg0, %c0_i32_0 : i32, i32, i32
  }
}

module attributes {stable_mosaic.version = 11 : i64} {
  func.func @_update_kernel(%arg0: i32, %arg1: memref<8x128xf32, #tpu.memory_space<vmem>>, %arg2: memref<3x8x128xf32, #tpu.memory_space<vmem>>, %arg3: memref<128x256xf32, #tpu.memory_space<vmem>>, %arg4: memref<256x128xf32, #tpu.memory_space<vmem>>, %arg5: memref<1x128xf32, #tpu.memory_space<vmem>>, %arg6: memref<128x384xf32, #tpu.memory_space<vmem>>, %arg7: memref<1x384xf32, #tpu.memory_space<vmem>>, %arg8: memref<8x128xf32, #tpu.memory_space<vmem>>, %arg9: memref<3x8x128xf32, #tpu.memory_space<vmem>>) attributes {dimension_semantics = [#tpu.dimension_semantics<parallel>], iteration_bounds = array<i64: 2>, scalar_prefetch = 0 : i64, scratch_operands = 0 : i64, tpu.core_type = #tpu.core_type<tc>, window_params = [{transform_indices = @transform_0, window_bounds = array<i64: 8, 128>}, {transform_indices = @transform_1, window_bounds = array<i64: 3, 8, 128>}, {pipeline_mode = #tpu.pipeline_mode<synchronous>, transform_indices = @transform_2, window_bounds = array<i64: 128, 256>}, {pipeline_mode = #tpu.pipeline_mode<synchronous>, transform_indices = @transform_3, window_bounds = array<i64: 256, 128>}, {pipeline_mode = #tpu.pipeline_mode<synchronous>, transform_indices = @transform_4, window_bounds = array<i64: 1, 128>}, {pipeline_mode = #tpu.pipeline_mode<synchronous>, transform_indices = @transform_5, window_bounds = array<i64: 128, 384>}, {pipeline_mode = #tpu.pipeline_mode<synchronous>, transform_indices = @transform_6, window_bounds = array<i64: 1, 384>}, {transform_indices = @transform_7, window_bounds = array<i64: 8, 128>}, {transform_indices = @transform_8, window_bounds = array<i64: 3, 8, 128>}]} {
    %c0 = arith.constant 0 : index
    %c0_0 = arith.constant 0 : index
    %0 = vector.load %arg1[%c0, %c0_0] : memref<8x128xf32, #tpu.memory_space<vmem>>, vector<8x128xf32>
    %c0_1 = arith.constant 0 : index
    %c0_2 = arith.constant 0 : index
    %c0_3 = arith.constant 0 : index
    %1 = vector.load %arg2[%c0_1, %c0_2, %c0_3] : memref<3x8x128xf32, #tpu.memory_space<vmem>>, vector<1x8x128xf32>
    %2 = vector.shape_cast %1 : vector<1x8x128xf32> to vector<8x128xf32>
    %c1 = arith.constant 1 : index
    %c0_4 = arith.constant 0 : index
    %c0_5 = arith.constant 0 : index
    %3 = vector.load %arg2[%c1, %c0_4, %c0_5] : memref<3x8x128xf32, #tpu.memory_space<vmem>>, vector<1x8x128xf32>
    %4 = vector.shape_cast %3 : vector<1x8x128xf32> to vector<8x128xf32>
    %c2 = arith.constant 2 : index
    %c0_6 = arith.constant 0 : index
    %c0_7 = arith.constant 0 : index
    %5 = vector.load %arg2[%c2, %c0_6, %c0_7] : memref<3x8x128xf32, #tpu.memory_space<vmem>>, vector<1x8x128xf32>
    %6 = vector.shape_cast %5 : vector<1x8x128xf32> to vector<8x128xf32>
    %7 = tpu.concatenate %2, %4, %6 in 0 : vector<8x128xf32>, vector<8x128xf32>, vector<8x128xf32> -> vector<24x128xf32>
    %c0_8 = arith.constant 0 : index
    %c0_9 = arith.constant 0 : index
    %8 = vector.load %arg3[%c0_8, %c0_9] : memref<128x256xf32, #tpu.memory_space<vmem>>, vector<128x256xf32>
    %cst = arith.constant dense<0.000000e+00> : vector<24x256xf32>
    %9 = tpu.matmul %7, %8, %cst {dimension_numbers = #tpu.dot_dimension_numbers<[1], [0], [0], [1], [0, 0, 1, 1], [], []>} : vector<24x128xf32>, vector<128x256xf32>, vector<24x256xf32> -> vector<24x256xf32>
    %10 = vector.extract_strided_slice %9 {offsets = [0, 0], sizes = [8, 128], strides = [1, 1]} : vector<24x256xf32> to vector<8x128xf32>
    %11 = vector.extract_strided_slice %9 {offsets = [8, 0], sizes = [8, 128], strides = [1, 1]} : vector<24x256xf32> to vector<8x128xf32>
    %12 = vector.extract_strided_slice %9 {offsets = [16, 0], sizes = [8, 128], strides = [1, 1]} : vector<24x256xf32> to vector<8x128xf32>
    %13 = vector.extract_strided_slice %9 {offsets = [0, 128], sizes = [8, 128], strides = [1, 1]} : vector<24x256xf32> to vector<8x128xf32>
    %14 = vector.extract_strided_slice %9 {offsets = [8, 128], sizes = [8, 128], strides = [1, 1]} : vector<24x256xf32> to vector<8x128xf32>
    %15 = vector.extract_strided_slice %9 {offsets = [16, 128], sizes = [8, 128], strides = [1, 1]} : vector<24x256xf32> to vector<8x128xf32>
    %16 = arith.mulf %13, %13 : vector<8x128xf32>
    %17 = arith.mulf %14, %14 : vector<8x128xf32>
    %18 = arith.addf %16, %17 : vector<8x128xf32>
    %19 = arith.mulf %15, %15 : vector<8x128xf32>
    %20 = arith.addf %18, %19 : vector<8x128xf32>
    %cst_10 = arith.constant 9.99999993E-9 : f32
    %21 = vector.broadcast %cst_10 : f32 to vector<8x128xf32>
    %22 = arith.addf %20, %21 : vector<8x128xf32>
    %23 = math.sqrt %22 : vector<8x128xf32>
    %c0_11 = arith.constant 0 : index
    %c0_12 = arith.constant 0 : index
    %24 = vector.load %arg4[%c0_11, %c0_12] : memref<256x128xf32, #tpu.memory_space<vmem>>, vector<128x128xf32>
    %cst_13 = arith.constant dense<0.000000e+00> : vector<8x128xf32>
    %25 = tpu.matmul %0, %24, %cst_13 {dimension_numbers = #tpu.dot_dimension_numbers<[1], [0], [0], [1], [0, 0, 1, 1], [], []>} : vector<8x128xf32>, vector<128x128xf32>, vector<8x128xf32> -> vector<8x128xf32>
    %c128 = arith.constant 128 : index
    %c0_14 = arith.constant 0 : index
    %26 = vector.load %arg4[%c128, %c0_14] : memref<256x128xf32, #tpu.memory_space<vmem>>, vector<128x128xf32>
    %cst_15 = arith.constant dense<0.000000e+00> : vector<8x128xf32>
    %27 = tpu.matmul %23, %26, %cst_15 {dimension_numbers = #tpu.dot_dimension_numbers<[1], [0], [0], [1], [0, 0, 1, 1], [], []>} : vector<8x128xf32>, vector<128x128xf32>, vector<8x128xf32> -> vector<8x128xf32>
    %28 = arith.addf %25, %27 : vector<8x128xf32>
    %c0_16 = arith.constant 0 : index
    %c0_17 = arith.constant 0 : index
    %29 = vector.load %arg5[%c0_16, %c0_17] : memref<1x128xf32, #tpu.memory_space<vmem>>, vector<1x128xf32>
    %30 = vector.broadcast %29 : vector<1x128xf32> to vector<8x128xf32>
    %31 = arith.addf %28, %30 : vector<8x128xf32>
    %cst_18 = arith.constant 0.000000e+00 : f32
    %32 = vector.broadcast %cst_18 : f32 to vector<8x128xf32>
    %33 = arith.subf %32, %31 : vector<8x128xf32>
    %34 = math.exp %33 : vector<8x128xf32>
    %cst_19 = arith.constant 1.000000e+00 : f32
    %35 = vector.broadcast %cst_19 : f32 to vector<8x128xf32>
    %36 = arith.addf %35, %34 : vector<8x128xf32>
    %cst_20 = arith.constant 1.000000e+00 : f32
    %37 = vector.broadcast %cst_20 : f32 to vector<8x128xf32>
    %38 = arith.divf %37, %36 : vector<8x128xf32>
    %39 = arith.mulf %31, %38 : vector<8x128xf32>
    %c0_21 = arith.constant 0 : index
    %c0_22 = arith.constant 0 : index
    %40 = vector.load %arg6[%c0_21, %c0_22] : memref<128x384xf32, #tpu.memory_space<vmem>>, vector<128x384xf32>
    %cst_23 = arith.constant dense<0.000000e+00> : vector<8x384xf32>
    %41 = tpu.matmul %39, %40, %cst_23 {dimension_numbers = #tpu.dot_dimension_numbers<[1], [0], [0], [1], [0, 0, 1, 1], [], []>} : vector<8x128xf32>, vector<128x384xf32>, vector<8x384xf32> -> vector<8x384xf32>
    %c0_24 = arith.constant 0 : index
    %c0_25 = arith.constant 0 : index
    %42 = vector.load %arg7[%c0_24, %c0_25] : memref<1x384xf32, #tpu.memory_space<vmem>>, vector<1x384xf32>
    %43 = vector.broadcast %42 : vector<1x384xf32> to vector<8x384xf32>
    %44 = arith.addf %41, %43 : vector<8x384xf32>
    %45 = vector.extract_strided_slice %44 {offsets = [0, 0], sizes = [8, 128], strides = [1, 1]} : vector<8x384xf32> to vector<8x128xf32>
    %46 = vector.extract_strided_slice %44 {offsets = [0, 128], sizes = [8, 128], strides = [1, 1]} : vector<8x384xf32> to vector<8x128xf32>
    %47 = vector.extract_strided_slice %44 {offsets = [0, 256], sizes = [8, 128], strides = [1, 1]} : vector<8x384xf32> to vector<8x128xf32>
    %48 = arith.mulf %10, %13 : vector<8x128xf32>
    %49 = arith.mulf %11, %14 : vector<8x128xf32>
    %50 = arith.addf %48, %49 : vector<8x128xf32>
    %51 = arith.mulf %12, %15 : vector<8x128xf32>
    %52 = arith.addf %50, %51 : vector<8x128xf32>
    %53 = arith.mulf %46, %52 : vector<8x128xf32>
    %54 = arith.addf %47, %53 : vector<8x128xf32>
    %c0_26 = arith.constant 0 : index
    %c0_27 = arith.constant 0 : index
    %55 = vector.load %arg8[%c0_26, %c0_27] : memref<8x128xf32, #tpu.memory_space<vmem>>, vector<8x128xf32>
    tpu.vector_store %arg8[%c0_26, %c0_27], %54 {strides = array<i32>} : memref<8x128xf32, #tpu.memory_space<vmem>>, vector<8x128xf32>,
    %56 = arith.mulf %10, %45 : vector<8x128xf32>
    %c0_28 = arith.constant 0 : index
    %c0_29 = arith.constant 0 : index
    %c0_30 = arith.constant 0 : index
    %57 = vector.load %arg9[%c0_28, %c0_29, %c0_30] : memref<3x8x128xf32, #tpu.memory_space<vmem>>, vector<1x8x128xf32>
    %58 = vector.shape_cast %57 : vector<1x8x128xf32> to vector<8x128xf32>
    %59 = vector.shape_cast %56 : vector<8x128xf32> to vector<1x8x128xf32>
    tpu.vector_store %arg9[%c0_28, %c0_29, %c0_30], %59 {strides = array<i32>} : memref<3x8x128xf32, #tpu.memory_space<vmem>>, vector<1x8x128xf32>,
    %60 = arith.mulf %11, %45 : vector<8x128xf32>
    %c1_31 = arith.constant 1 : index
    %c0_32 = arith.constant 0 : index
    %c0_33 = arith.constant 0 : index
    %61 = vector.load %arg9[%c1_31, %c0_32, %c0_33] : memref<3x8x128xf32, #tpu.memory_space<vmem>>, vector<1x8x128xf32>
    %62 = vector.shape_cast %61 : vector<1x8x128xf32> to vector<8x128xf32>
    %63 = vector.shape_cast %60 : vector<8x128xf32> to vector<1x8x128xf32>
    tpu.vector_store %arg9[%c1_31, %c0_32, %c0_33], %63 {strides = array<i32>} : memref<3x8x128xf32, #tpu.memory_space<vmem>>, vector<1x8x128xf32>,
    %64 = arith.mulf %12, %45 : vector<8x128xf32>
    %c2_34 = arith.constant 2 : index
    %c0_35 = arith.constant 0 : index
    %c0_36 = arith.constant 0 : index
    %65 = vector.load %arg9[%c2_34, %c0_35, %c0_36] : memref<3x8x128xf32, #tpu.memory_space<vmem>>, vector<1x8x128xf32>
    %66 = vector.shape_cast %65 : vector<1x8x128xf32> to vector<8x128xf32>
    %67 = vector.shape_cast %64 : vector<8x128xf32> to vector<1x8x128xf32>
    tpu.vector_store %arg9[%c2_34, %c0_35, %c0_36], %67 {strides = array<i32>} : memref<3x8x128xf32, #tpu.memory_space<vmem>>, vector<1x8x128xf32>,
    return
  }
  func.func @transform_0(%arg0: i32) -> (i32, i32) {
    %c0_i32 = arith.constant 0 : i32
    %c0_i32_0 = arith.constant 0 : i32
    return %arg0, %c0_i32 : i32, i32
  }
  func.func @transform_1(%arg0: i32) -> (i32, i32, i32) {
    %c0_i32 = arith.constant 0 : i32
    %c0_i32_0 = arith.constant 0 : i32
    %c0_i32_1 = arith.constant 0 : i32
    return %c0_i32, %arg0, %c0_i32_0 : i32, i32, i32
  }
  func.func @transform_2(%arg0: i32) -> (i32, i32) {
    %c0_i32 = arith.constant 0 : i32
    %c0_i32_0 = arith.constant 0 : i32
    %c0_i32_1 = arith.constant 0 : i32
    return %c0_i32, %c0_i32_0 : i32, i32
  }
  func.func @transform_3(%arg0: i32) -> (i32, i32) {
    %c0_i32 = arith.constant 0 : i32
    %c0_i32_0 = arith.constant 0 : i32
    %c0_i32_1 = arith.constant 0 : i32
    return %c0_i32, %c0_i32_0 : i32, i32
  }
  func.func @transform_4(%arg0: i32) -> (i32, i32) {
    %c0_i32 = arith.constant 0 : i32
    %c0_i32_0 = arith.constant 0 : i32
    %c0_i32_1 = arith.constant 0 : i32
    return %c0_i32, %c0_i32_0 : i32, i32
  }
  func.func @transform_5(%arg0: i32) -> (i32, i32) {
    %c0_i32 = arith.constant 0 : i32
    %c0_i32_0 = arith.constant 0 : i32
    %c0_i32_1 = arith.constant 0 : i32
    return %c0_i32, %c0_i32_0 : i32, i32
  }
  func.func @transform_6(%arg0: i32) -> (i32, i32) {
    %c0_i32 = arith.constant 0 : i32
    %c0_i32_0 = arith.constant 0 : i32
    %c0_i32_1 = arith.constant 0 : i32
    return %c0_i32, %c0_i32_0 : i32, i32
  }
  func.func @transform_7(%arg0: i32) -> (i32, i32) {
    %c0_i32 = arith.constant 0 : i32
    %c0_i32_0 = arith.constant 0 : i32
    return %arg0, %c0_i32 : i32, i32
  }
  func.func @transform_8(%arg0: i32) -> (i32, i32, i32) {
    %c0_i32 = arith.constant 0 : i32
    %c0_i32_0 = arith.constant 0 : i32
    %c0_i32_1 = arith.constant 0 : i32
    return %c0_i32, %arg0, %c0_i32_0 : i32, i32, i32
  }
}

module attributes {stable_mosaic.version = 11 : i64} {
  func.func @_mlp2_kernel(%arg0: i32, %arg1: memref<8x128xf32, #tpu.memory_space<vmem>>, %arg2: memref<128x64xf32, #tpu.memory_space<vmem>>, %arg3: memref<1x64xf32, #tpu.memory_space<vmem>>, %arg4: memref<64x1xf32, #tpu.memory_space<vmem>>, %arg5: memref<1x1xf32, #tpu.memory_space<vmem>>, %arg6: memref<8x1xf32, #tpu.memory_space<vmem>>) attributes {dimension_semantics = [#tpu.dimension_semantics<parallel>], iteration_bounds = array<i64: 2>, scalar_prefetch = 0 : i64, scratch_operands = 0 : i64, tpu.core_type = #tpu.core_type<tc>, window_params = [{transform_indices = @transform_0, window_bounds = array<i64: 8, 128>}, {pipeline_mode = #tpu.pipeline_mode<synchronous>, transform_indices = @transform_1, window_bounds = array<i64: 128, 64>}, {pipeline_mode = #tpu.pipeline_mode<synchronous>, transform_indices = @transform_2, window_bounds = array<i64: 1, 64>}, {pipeline_mode = #tpu.pipeline_mode<synchronous>, transform_indices = @transform_3, window_bounds = array<i64: 64, 1>}, {pipeline_mode = #tpu.pipeline_mode<synchronous>, transform_indices = @transform_4, window_bounds = array<i64: 1, 1>}, {transform_indices = @transform_5, window_bounds = array<i64: 8, 1>}]} {
    %c0 = arith.constant 0 : index
    %c0_0 = arith.constant 0 : index
    %0 = vector.load %arg1[%c0, %c0_0] : memref<8x128xf32, #tpu.memory_space<vmem>>, vector<8x128xf32>
    %c0_1 = arith.constant 0 : index
    %c0_2 = arith.constant 0 : index
    %1 = vector.load %arg2[%c0_1, %c0_2] : memref<128x64xf32, #tpu.memory_space<vmem>>, vector<128x64xf32>
    %cst = arith.constant dense<0.000000e+00> : vector<8x64xf32>
    %2 = tpu.matmul %0, %1, %cst {dimension_numbers = #tpu.dot_dimension_numbers<[1], [0], [0], [1], [0, 0, 1, 1], [], []>} : vector<8x128xf32>, vector<128x64xf32>, vector<8x64xf32> -> vector<8x64xf32>
    %c0_3 = arith.constant 0 : index
    %c0_4 = arith.constant 0 : index
    %3 = vector.load %arg3[%c0_3, %c0_4] : memref<1x64xf32, #tpu.memory_space<vmem>>, vector<1x64xf32>
    %4 = vector.broadcast %3 : vector<1x64xf32> to vector<8x64xf32>
    %5 = arith.addf %2, %4 : vector<8x64xf32>
    %cst_5 = arith.constant 0.000000e+00 : f32
    %6 = vector.broadcast %cst_5 : f32 to vector<8x64xf32>
    %7 = arith.subf %6, %5 : vector<8x64xf32>
    %8 = math.exp %7 : vector<8x64xf32>
    %cst_6 = arith.constant 1.000000e+00 : f32
    %9 = vector.broadcast %cst_6 : f32 to vector<8x64xf32>
    %10 = arith.addf %9, %8 : vector<8x64xf32>
    %cst_7 = arith.constant 1.000000e+00 : f32
    %11 = vector.broadcast %cst_7 : f32 to vector<8x64xf32>
    %12 = arith.divf %11, %10 : vector<8x64xf32>
    %13 = arith.mulf %5, %12 : vector<8x64xf32>
    %c0_8 = arith.constant 0 : index
    %c0_9 = arith.constant 0 : index
    %14 = vector.load %arg4[%c0_8, %c0_9] : memref<64x1xf32, #tpu.memory_space<vmem>>, vector<64x1xf32>
    %cst_10 = arith.constant dense<0.000000e+00> : vector<8x1xf32>
    %15 = tpu.matmul %13, %14, %cst_10 {dimension_numbers = #tpu.dot_dimension_numbers<[1], [0], [0], [1], [0, 0, 1, 1], [], []>} : vector<8x64xf32>, vector<64x1xf32>, vector<8x1xf32> -> vector<8x1xf32>
    %c0_11 = arith.constant 0 : index
    %c0_12 = arith.constant 0 : index
    %16 = vector.load %arg5[%c0_11, %c0_12] : memref<1x1xf32, #tpu.memory_space<vmem>>, vector<1x1xf32>
    %17 = vector.broadcast %16 : vector<1x1xf32> to vector<8x1xf32>
    %18 = arith.addf %15, %17 : vector<8x1xf32>
    %c0_13 = arith.constant 0 : index
    %c0_14 = arith.constant 0 : index
    %19 = vector.load %arg6[%c0_13, %c0_14] : memref<8x1xf32, #tpu.memory_space<vmem>>, vector<8x1xf32>
    tpu.vector_store %arg6[%c0_13, %c0_14], %18 {strides = array<i32>} : memref<8x1xf32, #tpu.memory_space<vmem>>, vector<8x1xf32>,
    return
  }
  func.func @transform_0(%arg0: i32) -> (i32, i32) {
    %c0_i32 = arith.constant 0 : i32
    %c0_i32_0 = arith.constant 0 : i32
    return %arg0, %c0_i32 : i32, i32
  }
  func.func @transform_1(%arg0: i32) -> (i32, i32) {
    %c0_i32 = arith.constant 0 : i32
    %c0_i32_0 = arith.constant 0 : i32
    %c0_i32_1 = arith.constant 0 : i32
    return %c0_i32, %c0_i32_0 : i32, i32
  }
  func.func @transform_2(%arg0: i32) -> (i32, i32) {
    %c0_i32 = arith.constant 0 : i32
    %c0_i32_0 = arith.constant 0 : i32
    %c0_i32_1 = arith.constant 0 : i32
    return %c0_i32, %c0_i32_0 : i32, i32
  }
  func.func @transform_3(%arg0: i32) -> (i32, i32) {
    %c0_i32 = arith.constant 0 : i32
    %c0_i32_0 = arith.constant 0 : i32
    %c0_i32_1 = arith.constant 0 : i32
    return %c0_i32, %c0_i32_0 : i32, i32
  }
  func.func @transform_4(%arg0: i32) -> (i32, i32) {
    %c0_i32 = arith.constant 0 : i32
    %c0_i32_0 = arith.constant 0 : i32
    %c0_i32_1 = arith.constant 0 : i32
    return %c0_i32, %c0_i32_0 : i32, i32
  }
  func.func @transform_5(%arg0: i32) -> (i32, i32) {
    %c0_i32 = arith.constant 0 : i32
    %c0_i32_0 = arith.constant 0 : i32
    return %arg0, %c0_i32 : i32, i32
  }
}

</mosaic_0001>

<bundles_post_ra>
// kernel: painn_forward.10
= control target key start
LH: loop header
LB: loop body
LE: loop exit
PB: predicated region body
PF: predicated region fallthrough
CT: control target
= control target key end

     0   :  { %s756_s18 = smov 0   ;;  %s1016_s0 = inlined_call_operand.vmem [shape: f32[16,128], index: 0, kind: input, shape index: {}]   ;;  %s1017_s1 = inlined_call_operand.vmem [shape: f32[128,128], index: 1, kind: input, shape index: {}]   ;;  %s1018_s2 = inlined_call_operand.vmem [shape: f32[1,128], index: 2, kind: input, shape index: {}]   ;;  %s1019_s3 = inlined_call_operand.vmem [shape: f32[128,384], index: 3, kind: input, shape index: {}]   ;;  %s1020_s4 = inlined_call_operand.vmem [shape: f32[1,384], index: 4, kind: input, shape index: {}]   ;;  %s1021_s5 = inlined_call_operand.vmem [shape: f32[16,384], index: 5, kind: output, shape index: {}]  }
   0x1 LB: > { %s587_s19 = sadd.s32 4294967295, %s722_s18   ;;  %p591_p0 = scmp.ge.s32.totalorder %s722_s18, 1  ;;  %s722_s18 = sphi %s756_s18, %s15_s18  }
   0x2   : > { %p186_p1 = scmp.lt.s32.totalorder %s722_s18, 3 }
   0x4   : > { %p187_p2 = pnand %p591_p0, %p186_p1 }
   0x5   : > { %p213_p3 = scmp.lt.s32.totalorder (!%p187_p2), %s587_s19, 1 }
   0x6   : > { %190 = sbr.rel (%p187_p2) target bundleno = 473 (0x1d9), region = 40 }
   0xb   : > { %v238_v0 = vld [vmem:[%s1017_s1 + $0x78] sm:$0xff]  ;;  %v724_v1 = vmov 0.0   ;;  %v237_v2 = vld [vmem:[%s1017_s1 + $0x70] sm:$0xff]  ;;  %vm725_vm0 = vmmov 0   ;;  %v236_v3 = vld [vmem:[%s1017_s1 + $0x68] sm:$0xff]  ;;  %s1023_s19 = smov (!%p213_p3, %s587_s19), 1 }
   0xc   : > { %631 = vmatprep.subr.mxu0 %v724_v1  ;;  %663 = vmatprep.mubr.msk.f32.mxu0 %vm725_vm0, %v724_v1  ;;  %v235_v4 = vld [vmem:[%s1017_s1 + $0x60] sm:$0xff]  ;;  %v234_v5 = vld [vmem:[%s1017_s1 + $0x58] sm:$0xff]  ;;  %v233_v6 = vld [vmem:[%s1017_s1 + $0x50] sm:$0xff]  ;;  %s592_s23 = sshll.u32 %s1023_s19, 3  ;;  %s701_s16 = smul.u32 24, %s1023_s19 }
   0xd   : > { %632 = vmatpush3.msra.mxu0 %v238_v0  ;;  %452 = vmatprep.mubr.f32.mxu1 %v724_v1  ;;  %v232_v7 = vld [vmem:[%s1017_s1 + $0x48] sm:$0xff]  ;;  %v231_v8 = vld [vmem:[%s1017_s1 + $0x40] sm:$0xff]  ;;  %v230_v9 = vld [vmem:[%s1017_s1 + $0x38] sm:$0xff]  ;;  %s216_s30 = scalar_lea.vmem %s1016_s0, %s592_s23 }
   0xe   : > { %633 = vmatprep.subr.mxu0 %v724_v1  ;;  %v229_v10 = vld [vmem:[%s1017_s1 + $0x30] sm:$0xff]  ;;  %v228_v11 = vld [vmem:[%s1017_s1 + $0x28] sm:$0xff]  ;;  %v227_v12 = vld [vmem:[%s1017_s1 + $0x20] sm:$0xff]  ;;  %s221_s21 = scalar_lea.vmem %s1021_s5, %s701_s16 }
   0xf   : > { %634 = vmatpush3.msra.mxu0 %v237_v2  ;;  %v226_v13 = vld [vmem:[%s1017_s1 + $0x18] sm:$0xff]  ;;  %v225_v14 = vld [vmem:[%s1017_s1 + $0x10] sm:$0xff]  ;;  %v224_v15 = vld [vmem:[%s1017_s1 + $0x8] sm:$0xff] }
  0x10   : > { %635 = vmatprep.subr.mxu0 %v724_v1  ;;  %v223_v16 = vld [vmem:[%s1017_s1] sm:$0xff]  ;;  %v369_v18 = vld [vmem:[%s1019_s3 + $0x170] sm:$0xff]  ;;  %v368_v19 = vld [vmem:[%s1019_s3 + $0x168] sm:$0xff] }
  0x11   : > { %636 = vmatpush3.msra.mxu0 %v236_v3  ;;  %v222_v17 = vld [vmem:[%s216_s30] sm:$0xff]  ;;  %388 = vmatprep.subr.mxu1 %v369_v18  ;;  %v370_v20 = vld [vmem:[%s1019_s3 + $0x178] sm:$0xff]  ;;  %v365_v22 = vld [vmem:[%s1019_s3 + $0x150] sm:$0xff] }
  0x12   : > { %637 = vmatprep.subr.mxu0 %v724_v1  ;;  %389 = vmatpush1.msra.mxu1 %v368_v19  ;;  %v366_v21 = vld [vmem:[%s1019_s3 + $0x158] sm:$0xff]  ;;  %v367_v23 = vld [vmem:[%s1019_s3 + $0x160] sm:$0xff]  ;;  %v364_v26 = vld [vmem:[%s1019_s3 + $0x148] sm:$0xff] }
  0x13   : > { %638 = vmatpush3.msra.mxu0 %v235_v4  ;;  %390 = vmatprep.subr.mxu1 %v366_v21  ;;  %v363_v24 = vld [vmem:[%s1019_s3 + $0x140] sm:$0xff]  ;;  %v362_v25 = vld [vmem:[%s1019_s3 + $0x138] sm:$0xff]  ;;  %v360_v27 = vld [vmem:[%s1019_s3 + $0x128] sm:$0xff] }
  0x14   : > { %639 = vmatprep.subr.mxu0 %v724_v1  ;;  %391 = vmatpush1.msra.mxu1 %v365_v22  ;;  %v359_v28 = vld [vmem:[%s1019_s3 + $0x120] sm:$0xff]  ;;  %v361_v29 = vld [vmem:[%s1019_s3 + $0x130] sm:$0xff]  ;;  %v356_v31 = vld [vmem:[%s1019_s3 + $0x108] sm:$0xff] }
  0x15   : > { %640 = vmatpush3.msra.mxu0 %v234_v5  ;;  %392 = vmatprep.subr.mxu1 %v363_v24  ;;  %v357_v30 = vld [vmem:[%s1019_s3 + $0x110] sm:$0xff]  ;;  %v358_v32 = vld [vmem:[%s1019_s3 + $0x118] sm:$0xff]  ;;  %v355_v35 = vld [vmem:[%s1019_s3 + $0x100] sm:$0xff] }
  0x16   : > { %641 = vmatprep.subr.mxu0 %v724_v1  ;;  %393 = vmatpush1.msra.mxu1 %v362_v25  ;;  %v354_v33 = vld [vmem:[%s1019_s3 + $0xf8] sm:$0xff]  ;;  %v353_v34 = vld [vmem:[%s1019_s3 + $0xf0] sm:$0xff]  ;;  %v351_v36 = vld [vmem:[%s1019_s3 + $0xe0] sm:$0xff] }
  0x17   : > { %642 = vmatpush3.msra.mxu0 %v233_v6  ;;  %394 = vmatprep.subr.mxu1 %v360_v27  ;;  %v350_v37 = vld [vmem:[%s1019_s3 + $0xd8] sm:$0xff]  ;;  %v352_v38 = vld [vmem:[%s1019_s3 + $0xe8] sm:$0xff]  ;;  %v347_v40 = vld [vmem:[%s1019_s3 + $0xc0] sm:$0xff] }
  0x18   : > { %643 = vmatprep.subr.mxu0 %v724_v1  ;;  %395 = vmatpush1.msra.mxu1 %v359_v28  ;;  %v348_v39 = vld [vmem:[%s1019_s3 + $0xc8] sm:$0xff]  ;;  %v349_v41 = vld [vmem:[%s1019_s3 + $0xd0] sm:$0xff]  ;;  %v346_v44 = vld [vmem:[%s1019_s3 + $0xb8] sm:$0xff] }
  0x19   : > { %644 = vmatpush3.msra.mxu0 %v232_v7  ;;  %396 = vmatprep.subr.mxu1 %v357_v30  ;;  %v345_v42 = vld [vmem:[%s1019_s3 + $0xb0] sm:$0xff]  ;;  %v344_v43 = vld [vmem:[%s1019_s3 + $0xa8] sm:$0xff]  ;;  %v342_v45 = vld [vmem:[%s1019_s3 + $0x98] sm:$0xff] }
  0x1a   : > { %645 = vmatprep.subr.mxu0 %v724_v1  ;;  %397 = vmatpush1.msra.mxu1 %v356_v31  ;;  %v341_v46 = vld [vmem:[%s1019_s3 + $0x90] sm:$0xff]  ;;  %v343_v47 = vld [vmem:[%s1019_s3 + $0xa0] sm:$0xff]  ;;  %v338_v49 = vld [vmem:[%s1019_s3 + $0x78] sm:$0xff] }
  0x1b   : > { %646 = vmatpush3.msra.mxu0 %v231_v8  ;;  %398 = vmatprep.subr.mxu1 %v354_v33  ;;  %v339_v48 = vld [vmem:[%s1019_s3 + $0x80] sm:$0xff]  ;;  %v340_v50 = vld [vmem:[%s1019_s3 + $0x88] sm:$0xff]  ;;  %v337_v53 = vld [vmem:[%s1019_s3 + $0x70] sm:$0xff] }
  0x1c   : > { %647 = vmatprep.subr.mxu0 %v724_v1  ;;  %399 = vmatpush1.msra.mxu1 %v353_v34  ;;  %v336_v51 = vld [vmem:[%s1019_s3 + $0x68] sm:$0xff]  ;;  %v335_v52 = vld [vmem:[%s1019_s3 + $0x60] sm:$0xff]  ;;  %v333_v54 = vld [vmem:[%s1019_s3 + $0x50] sm:$0xff] }
  0x1d   : > { %648 = vmatpush3.msra.mxu0 %v230_v9  ;;  %400 = vmatprep.subr.mxu1 %v351_v36  ;;  %v332_v55 = vld [vmem:[%s1019_s3 + $0x48] sm:$0xff]  ;;  %v334_v56 = vld [vmem:[%s1019_s3 + $0x58] sm:$0xff]  ;;  %v329_v58 = vld [vmem:[%s1019_s3 + $0x30] sm:$0xff] }
  0x1e   : > { %649 = vmatprep.subr.mxu0 %v724_v1  ;;  %401 = vmatpush1.msra.mxu1 %v350_v37  ;;  %v330_v57 = vld [vmem:[%s1019_s3 + $0x38] sm:$0xff]  ;;  %v331_v59 = vld [vmem:[%s1019_s3 + $0x40] sm:$0xff]  ;;  %v328_v62 = vld [vmem:[%s1019_s3 + $0x28] sm:$0xff] }
  0x1f   : > { %650 = vmatpush3.msra.mxu0 %v229_v10  ;;  %402 = vmatprep.subr.mxu1 %v348_v39  ;;  %v327_v60 = vld [vmem:[%s1019_s3 + $0x20] sm:$0xff]  ;;  %v326_v61 = vld [vmem:[%s1019_s3 + $0x18] sm:$0xff]  ;;  %v324_v63 = vld [vmem:[%s1019_s3 + $0x8] sm:$0xff] }
  0x20   : > { %651 = vmatprep.subr.mxu0 %v724_v1  ;;  %403 = vmatpush1.msra.mxu1 %v347_v40  ;;  %v323_v0 = vld [vmem:[%s1019_s3] sm:$0xff]  ;;  %v325_v2 = vld [vmem:[%s1019_s3 + $0x10] sm:$0xff] }
  0x21   : > { %652 = vmatpush3.msra.mxu0 %v228_v11  ;;  %404 = vmatprep.subr.mxu1 %v345_v42  ;;  %v594_v3 = vld [vmem:[%s1018_s2] ss:$0 sm:$0xff] }
  0x22   : > { %653 = vmatprep.subr.mxu0 %v724_v1  ;;  %405 = vmatpush1.msra.mxu1 %v344_v43 }
  0x23   : > { %654 = vmatpush3.msra.mxu0 %v227_v12  ;;  %406 = vmatprep.subr.mxu1 %v342_v45  ;;  %v373_v12 = vlaneseq }
  0x24   : > { %655 = vmatprep.subr.mxu0 %v724_v1  ;;  %407 = vmatpush1.msra.mxu1 %v341_v46 }
  0x25   : > { %656 = vmatpush3.msra.mxu0 %v226_v13  ;;  %408 = vmatprep.subr.mxu1 %v339_v48  ;;  %v374_v13 = vshrl.u32 %v373_v12, 7 }
  0x26   : > { %657 = vmatprep.subr.mxu0 %v724_v1  ;;  %409 = vmatpush1.msra.mxu1 %v338_v49 }
  0x27   : > { %658 = vmatpush3.msra.mxu0 %v225_v14  ;;  %410 = vmatprep.subr.mxu1 %v336_v51  ;;  %v375_v14 = vsub.s32 0, %v374_v13 }
  0x28   : > { %659 = vmatprep.subr.mxu0 %v724_v1  ;;  %411 = vmatpush1.msra.mxu1 %v335_v52 }
  0x29   : > { %660 = vmatpush3.msra.mxu0 %v224_v15  ;;  %412 = vmatprep.subr.mxu1 %v333_v54  ;;  %v383_v15 = vsub.s32 2, %v374_v13 }
  0x2a   : > { %661 = vmatprep.subr.mxu0 %v724_v1  ;;  %413 = vmatpush1.msra.mxu1 %v332_v55 }
  0x2b   : > { %662 = vmatpush3.msra.mxu0 %v223_v16  ;;  %414 = vmatprep.subr.mxu1 %v330_v57  ;;  %v371_v16 = vld [vmem:[%s1020_s4] sm:$0x7] }
  0x2c   : > { %664 = vmatmul.mubr.f32.vlgmr.msra.gmra.mxu0 %v222_v17  ;;  %666 = vmatprep.subr.mxu0 %v724_v1  ;;  %v379_v17 = vsub.s32 1, %v374_v13  ;;  %v376_v18 = vrot.slane %v371_v16, %v375_v14  ;;  %v384_v19 = vrot.slane %v371_v16, %v383_v15 }
  0x2d   : > { %698 = vmatprep.mubr.msk.f32.mxu0 %vm725_vm0, %v724_v1  ;;  %667 = vmatpush3.msra.mxu0 %v370_v20 }
  0x2e   : > { %668 = vmatprep.subr.mxu0 %v724_v1  ;;  %415 = vmatpush1.msra.mxu1 %v329_v58  ;;  %v380_v20 = vrot.slane %v371_v16, %v379_v17 }
  0x2f   : > { %669 = vmatpush3.msra.mxu0 %v367_v23  ;;  %416 = vmatprep.subr.mxu1 %v327_v60 }
  0x30   : > { %670 = vmatprep.subr.mxu0 %v724_v1  ;;  %417 = vmatpush1.msra.mxu1 %v326_v61 }
  0x31   : > { %671 = vmatpush3.msra.mxu0 %v364_v26  ;;  %418 = vmatprep.subr.mxu1 %v324_v63 }
  0x32   : > { %672 = vmatprep.subr.mxu0 %v724_v1  ;;  %419 = vmatpush1.msra.mxu1 %v323_v0 }
  0x33   : > { %673 = vmatpush3.msra.mxu0 %v361_v29 }
  0x34   : > { %674 = vmatprep.subr.mxu0 %v724_v1 }
  0x35   : > { %675 = vmatpush3.msra.mxu0 %v358_v32 }
  0x36   : > { %676 = vmatprep.subr.mxu0 %v724_v1 }
  0x37   : > { %677 = vmatpush3.msra.mxu0 %v355_v35 }
  0x38   : > { %678 = vmatprep.subr.mxu0 %v724_v1 }
  0x39   : > { %679 = vmatpush3.msra.mxu0 %v352_v38 }
  0x3a   : > { %680 = vmatprep.subr.mxu0 %v724_v1 }
  0x3b   : > { %681 = vmatpush3.msra.mxu0 %v349_v41 }
  0x3c   : > { %682 = vmatprep.subr.mxu0 %v724_v1 }
  0x3d   : > { %683 = vmatpush3.msra.mxu0 %v346_v44 }
  0x3e   : > { %684 = vmatprep.subr.mxu0 %v724_v1 }
  0x3f   : > { %685 = vmatpush3.msra.mxu0 %v343_v47 }
  0x40   : > { %686 = vmatprep.subr.mxu0 %v724_v1 }
  0x41   : > { %687 = vmatpush3.msra.mxu0 %v340_v50 }
  0x42   : > { %688 = vmatprep.subr.mxu0 %v724_v1 }
  0x43   : > { %689 = vmatpush3.msra.mxu0 %v337_v53 }
  0x44   : > { %690 = vmatprep.subr.mxu0 %v724_v1 }
  0x45   : > { %691 = vmatpush3.msra.mxu0 %v334_v56 }
  0x46   : > { %692 = vmatprep.subr.mxu0 %v724_v1 }
  0x47   : > { %693 = vmatpush3.msra.mxu0 %v331_v59 }
  0x48   : > { %694 = vmatprep.subr.mxu0 %v724_v1 }
  0x49   : > { %695 = vmatpush3.msra.mxu0 %v328_v62 }
  0x4a   : > { %696 = vmatprep.subr.mxu0 %v724_v1 }
  0x4b   : > { %697 = vmatpush3.msra.mxu0 %v325_v2 }
  0xec   : > { %v312_v4 = vpop.f32.mrf.mxu0 }
  0xed   : > { %v313_v5 = vadd.f32 %v594_v3, %v312_v4 }
  0xee   : > { %v665_v6 = vpop.f32.mrf.mxu0 }
  0xef   : > { %v316_v7 = vsub.f32 0.0, %v313_v5 }
  0xf1   : > { %v317_v1 = vmul.f32 1.442695, %v316_v7 }
  0xf3   : > { %712 = vpow2.f32 %v317_v1 }
 0x100   : > { %v713_v8 = vpop.eup %712 }
 0x101   : > { %v319_v9 = vadd.f32 1.0, %v713_v8 }
 0x103   : > { %714 = vrcp.f32 %v319_v9 }
 0x110   : > { %v715_v10 = vpop.eup %714 }
 0x111   : > { %v322_v11 = vmul.f32 %v715_v10, %v313_v5 }
 0x113   : > { %453 = vmatmul.mubr.f32.vlgmr.msra.gmra.mxu1 %v322_v11  ;;  %699 = vmatmul.mubr.f32.vlgmr.msra.gmra.mxu0 %v322_v11 }
 0x1d3   : > { %v454_v21 = vpop.f32.mrf.mxu1  ;;  %v525_v22 = vpop.f32.mrf.mxu0 }
 0x1d4   : > { %v455_v23 = vadd.f32 %v454_v21, %v376_v18  ;;  %v526_v24 = vadd.f32 %v525_v22, %v384_v19 }
 0x1d5   : > { %v456_v25 = vpop.f32.mrf.mxu1  ;;  %v700_v26 = vpop.f32.mrf.mxu0 }
 0x1d6   : > { %529 = vst [vmem:[%s221_s21] sm:$0xff] %v455_v23  ;;  %531 = vst [vmem:[%s221_s21 + $0x10] sm:$0xff] %v526_v24  ;;  %v457_v27 = vadd.f32 %v456_v25, %v380_v20 }
 0x1d8   : > { %530 = vst [vmem:[%s221_s21 + $0x8] sm:$0xff] %v457_v27 }
 0x1d9 PF: > { %s15_s18 = sadd.s32 1, %s722_s18  }
 0x1da   : > { %p12_p4 = scmp.ge.s32.totalorder %s15_s18, 4  }
 0x1dc   :  { %14 = sbr.rel (!%p12_p4) target bundleno = 1 (0x1), region = 70 }

// kernel: painn_forward.12
= control target key start
LH: loop header
LB: loop body
LE: loop exit
PB: predicated region body
PF: predicated region fallthrough
CT: control target
= control target key end

     0   :  { %s1340_s27 = smov 0   ;;  %s1342_s28 = smov 0   ;;  %s1841_s0 = inlined_call_operand.vmem [shape: f32[16,128], index: 0, kind: input, shape index: {}]   ;;  %s1842_s1 = inlined_call_operand.vmem [shape: f32[3,16,128], index: 1, kind: input, shape index: {}]   ;;  %s1843_s2 = inlined_call_operand.vmem [shape: f32[128,256], index: 2, kind: input, shape index: {}]   ;;  %s1844_s3 = inlined_call_operand.vmem [shape: f32[256,128], index: 3, kind: input, shape index: {}]   ;;  %s1845_s4 = inlined_call_operand.vmem [shape: f32[1,128], index: 4, kind: input, shape index: {}]   ;;  %s1846_s5 = inlined_call_operand.vmem [shape: f32[128,384], index: 5, kind: input, shape index: {}]   ;;  %s1847_s6 = inlined_call_operand.vmem [shape: f32[1,384], index: 6, kind: input, shape index: {}]   ;;  %s1848_s7 = inlined_call_operand.vmem [shape: f32[16,128], index: 7, kind: output, shape index: {0}]   ;;  %s1849_s8 = inlined_call_operand.vmem [shape: f32[3,16,128], index: 8, kind: output, shape index: {1}]  }
   0x1   :  { %s1344_s29 = smov 0  }
   0x2 LB: > { %s1356_s30 = sadd.s32 4294967295, %s1291_s29   ;;  %s1359_s9 = sadd.s32 1, %s1291_s29   ;;  %s1291_s29 = sphi %s1344_s29, %s1853_s29   ;;  %s1287_s28 = sphi %s1342_s28, %s1852_s28   ;;  %s1283_s27 = sphi %s1340_s27, %s1851_s27  }
   0x3   : > { %s49_s10 = ssub.s32 %s1291_s29, %s1359_s9  ;;  %s52_s11 = sadd.s32 1, %s1287_s28 }
   0x4   : > { %p50_p0 = scmp.eq.s32.totalorder %s49_s10, 0  ;;  %p59_p1 = scmp.ne.s32.totalorder %s1287_s28, %s1283_s27 }
   0x5   : > { %p60_p2 = scmp.eq.s32.totalorder %s1291_s29, 0  ;;  %p220_p3 = scmp.eq.s32.totalorder %s1356_s30, 1 }
   0x6   : > { %s1369_s12 = scalar_select %p50_p0, %s1287_s28, %s52_s11  }
   0x7   : > { %p61_p4 = por %p60_p2, %p59_p1  ;;  %p1371_p5 = por %p220_p3, %p59_p1 }
   0x8   : > { %p1066_p6 = scmp.ge.s32.totalorder %s1291_s29, 2 }
   0xa   : > { %257 = sbr.rel (%p1066_p6) target bundleno = 21 (0x15), region = 36 }
   0xf   : > { %267 = sbr.rel (!%p61_p4) target bundleno = 21 (0x15), region = 44  ;;  %s269_s14 = sand.u32 (%p61_p4), 1, %s1287_s28  }
  0x10   : > { %s1067_s15 = sshll.u32 (%p61_p4), %s1291_s29, 3  ;;  %s1235_s16 = smul.u32 (%p61_p4), 24, %s269_s14 }
  0x11   : > { %s273_s19 = scalar_lea.vmem (%p61_p4), %s1842_s1, %s1067_s15 }
  0x12   : > { %v306_v0 = vld [vmem:[%s273_s19] sm:$0xff] (%p61_p4)  ;;  %v308_v1 = vld [vmem:[%s273_s19 + $0x10] sm:$0xff] (%p61_p4)  ;;  %s271_s20 = scalar_lea.vmem (%p61_p4), [#allocation2], %s1235_s16 }
  0x13   : > { %v310_v2 = vld [vmem:[%s273_s19 + $0x20] sm:$0xff] (%p61_p4)  ;;  %307 = vst [vmem:[%s271_s20] sm:$0xff] (%p61_p4), %v306_v0  ;;  %309 = vst [vmem:[%s271_s20 + $0x8] sm:$0xff] (%p61_p4), %v308_v1 }
  0x14   : > { %311 = vst [vmem:[%s271_s20 + $0x10] sm:$0xff] %v310_v2 }
  0x15 PF: > { %p1068_p7 = scmp.ge.s32.totalorder %s1291_s29, 1  ;;  %p316_p8 = scmp.lt.s32.totalorder %s1291_s29, 3 }
  0x17   : > { %p317_p9 = pnand %p1068_p7, %p316_p8 }
  0x18   : > { %s323_s19 = sand.u32 (!%p317_p9), 1, %s1283_s27   ;;  %p363_p10 = scmp.lt.s32.totalorder (!%p317_p9), %s1356_s30, 1 }
  0x19   : > { %320 = sbr.rel (%p317_p9) target bundleno = 730 (0x2da), region = 82 }
  0x1a   : > { %s1464_s26 = smul.u32 (!%p317_p9), 24, %s323_s19 }
  0x1c   : > { %s325_s22 = scalar_lea.vmem (!%p317_p9), [#allocation2], %s1464_s26  ;;  %s362_s16 = scalar_lea.vmem (!%p317_p9), [#allocation3], %s1464_s26 }
  0x1e   : > { %v408_v3 = vld [vmem:[%s1843_s2 + $0xf8] sm:$0xff]  ;;  %v407_v4 = vld [vmem:[%s1843_s2 + $0xf0] sm:$0xff]  ;;  %v406_v5 = vld [vmem:[%s1843_s2 + $0xe8] sm:$0xff]  ;;  %v1293_v7 = vmov 0.0   ;;  %s1580_s21 = scalar_select %p363_p10, %s1356_s30, 1  ;;  %vm1294_vm0 = vmmov 0  }
  0x1f   : > { %409 = vmatprep.subr.mxu0 %v408_v3  ;;  %v405_v6 = vld [vmem:[%s1843_s2 + $0xe0] sm:$0xff]  ;;  %473 = vmatprep.mubr.f32.mxu0 %v1293_v7  ;;  %v404_v8 = vld [vmem:[%s1843_s2 + $0xd8] sm:$0xff]  ;;  %v403_v9 = vld [vmem:[%s1843_s2 + $0xd0] sm:$0xff]  ;;  %s1076_s20 = sshll.u32 (%p1371_p5), %s1356_s30, 3 }
  0x20   : > { %410 = vmatpush1.msra.mxu0 %v407_v4  ;;  %1130 = vmatprep.subr.mxu1 %v1293_v7  ;;  %v402_v10 = vld [vmem:[%s1843_s2 + $0xc8] sm:$0xff]  ;;  %v401_v11 = vld [vmem:[%s1843_s2 + $0xc0] sm:$0xff]  ;;  %v400_v12 = vld [vmem:[%s1843_s2 + $0xb8] sm:$0xff]  ;;  %s1069_s14 = sshll.u32 %s1580_s21, 3  ;;  %s929_s23 = scalar_lea.vmem (%p1371_p5), %s1849_s8, %s1076_s20 }
  0x21   : > { %411 = vmatprep.subr.mxu0 %v406_v5  ;;  %v399_v13 = vld [vmem:[%s1843_s2 + $0xb0] sm:$0xff]  ;;  %v398_v14 = vld [vmem:[%s1843_s2 + $0xa8] sm:$0xff]  ;;  %v397_v15 = vld [vmem:[%s1843_s2 + $0xa0] sm:$0xff]  ;;  %1162 = vmatprep.mubr.msk.f32.mxu1 %vm1294_vm0, %v1293_v7  ;;  %s370_s19 = scalar_lea.vmem %s1848_s7, %s1069_s14 }
  0x22   : > { %412 = vmatpush1.msra.mxu0 %v405_v6  ;;  %v396_v16 = vld [vmem:[%s1843_s2 + $0x98] sm:$0xff]  ;;  %v395_v17 = vld [vmem:[%s1843_s2 + $0x90] sm:$0xff]  ;;  %v394_v18 = vld [vmem:[%s1843_s2 + $0x88] sm:$0xff] }
  0x23   : > { %413 = vmatprep.subr.mxu0 %v404_v8  ;;  %v393_v19 = vld [vmem:[%s1843_s2 + $0x80] sm:$0xff]  ;;  %v392_v20 = vld [vmem:[%s1843_s2 + $0x78] sm:$0xff]  ;;  %v391_v21 = vld [vmem:[%s1843_s2 + $0x70] sm:$0xff] }
  0x24   : > { %414 = vmatpush1.msra.mxu0 %v403_v9  ;;  %v390_v22 = vld [vmem:[%s1843_s2 + $0x68] sm:$0xff]  ;;  %v389_v23 = vld [vmem:[%s1843_s2 + $0x60] sm:$0xff]  ;;  %v388_v24 = vld [vmem:[%s1843_s2 + $0x58] sm:$0xff] }
  0x25   : > { %415 = vmatprep.subr.mxu0 %v402_v10  ;;  %v387_v25 = vld [vmem:[%s1843_s2 + $0x50] sm:$0xff]  ;;  %v386_v26 = vld [vmem:[%s1843_s2 + $0x48] sm:$0xff]  ;;  %v385_v27 = vld [vmem:[%s1843_s2 + $0x40] sm:$0xff] }
  0x26   : > { %416 = vmatpush1.msra.mxu0 %v401_v11  ;;  %v384_v28 = vld [vmem:[%s1843_s2 + $0x38] sm:$0xff]  ;;  %v383_v29 = vld [vmem:[%s1843_s2 + $0x30] sm:$0xff]  ;;  %v382_v30 = vld [vmem:[%s1843_s2 + $0x28] sm:$0xff] }
  0x27   : > { %417 = vmatprep.subr.mxu0 %v400_v12  ;;  %v381_v31 = vld [vmem:[%s1843_s2 + $0x20] sm:$0xff]  ;;  %v380_v32 = vld [vmem:[%s1843_s2 + $0x18] sm:$0xff]  ;;  %v379_v33 = vld [vmem:[%s1843_s2 + $0x10] sm:$0xff] }
  0x28   : > { %418 = vmatpush1.msra.mxu0 %v399_v13  ;;  %v378_v34 = vld [vmem:[%s1843_s2 + $0x8] sm:$0xff]  ;;  %v377_v35 = vld [vmem:[%s1843_s2] sm:$0xff]  ;;  %v520_v39 = vld [vmem:[%s1844_s3 + $0x78] sm:$0xff] }
  0x29   : > { %419 = vmatprep.subr.mxu0 %v398_v14  ;;  %v372_v36 = vld [vmem:[%s325_s22] sm:$0xff]  ;;  %v1071_v37 = vld [vmem:[%s325_s22 + $0x8] sm:$0xff]  ;;  %v1072_v38 = vld [vmem:[%s325_s22 + $0x10] sm:$0xff]  ;;  %s366_s22 = scalar_lea.vmem %s1841_s0, %s1069_s14 }
  0x2a   : > { %420 = vmatpush1.msra.mxu0 %v397_v15  ;;  %v536_v40 = vld [vmem:[%s1844_s3 + $0xf8] sm:$0xff]  ;;  %v519_v41 = vld [vmem:[%s1844_s3 + $0x70] sm:$0xff]  ;;  %v518_v43 = vld [vmem:[%s1844_s3 + $0x68] sm:$0xff] }
  0x2b   : > { %421 = vmatprep.subr.mxu0 %v396_v16  ;;  %1131 = vmatpush3.msra.mxu1 %v536_v40  ;;  %v535_v42 = vld [vmem:[%s1844_s3 + $0xf0] sm:$0xff]  ;;  %v534_v44 = vld [vmem:[%s1844_s3 + $0xe8] sm:$0xff]  ;;  %v517_v45 = vld [vmem:[%s1844_s3 + $0x60] sm:$0xff] }
  0x2c   : > { %422 = vmatpush1.msra.mxu0 %v395_v17  ;;  %1132 = vmatprep.subr.mxu1 %v1293_v7  ;;  %v533_v46 = vld [vmem:[%s1844_s3 + $0xe0] sm:$0xff]  ;;  %v516_v47 = vld [vmem:[%s1844_s3 + $0x58] sm:$0xff]  ;;  %v515_v49 = vld [vmem:[%s1844_s3 + $0x50] sm:$0xff] }
  0x2d   : > { %423 = vmatprep.subr.mxu0 %v394_v18  ;;  %1133 = vmatpush3.msra.mxu1 %v535_v42  ;;  %v532_v48 = vld [vmem:[%s1844_s3 + $0xd8] sm:$0xff]  ;;  %v531_v50 = vld [vmem:[%s1844_s3 + $0xd0] sm:$0xff]  ;;  %v514_v51 = vld [vmem:[%s1844_s3 + $0x48] sm:$0xff] }
  0x2e   : > { %424 = vmatpush1.msra.mxu0 %v393_v19  ;;  %1134 = vmatprep.subr.mxu1 %v1293_v7  ;;  %v530_v52 = vld [vmem:[%s1844_s3 + $0xc8] sm:$0xff]  ;;  %v513_v53 = vld [vmem:[%s1844_s3 + $0x40] sm:$0xff]  ;;  %v512_v55 = vld [vmem:[%s1844_s3 + $0x38] sm:$0xff] }
  0x2f   : > { %425 = vmatprep.subr.mxu0 %v392_v20  ;;  %1135 = vmatpush3.msra.mxu1 %v534_v44  ;;  %v529_v54 = vld [vmem:[%s1844_s3 + $0xc0] sm:$0xff]  ;;  %v528_v56 = vld [vmem:[%s1844_s3 + $0xb8] sm:$0xff]  ;;  %v511_v57 = vld [vmem:[%s1844_s3 + $0x30] sm:$0xff] }
  0x30   : > { %426 = vmatpush1.msra.mxu0 %v391_v21  ;;  %1136 = vmatprep.subr.mxu1 %v1293_v7  ;;  %v527_v58 = vld [vmem:[%s1844_s3 + $0xb0] sm:$0xff]  ;;  %v510_v59 = vld [vmem:[%s1844_s3 + $0x28] sm:$0xff]  ;;  %v509_v61 = vld [vmem:[%s1844_s3 + $0x20] sm:$0xff] }
  0x31   : > { %427 = vmatprep.subr.mxu0 %v390_v22  ;;  %1137 = vmatpush3.msra.mxu1 %v533_v46  ;;  %v526_v60 = vld [vmem:[%s1844_s3 + $0xa8] sm:$0xff]  ;;  %v525_v62 = vld [vmem:[%s1844_s3 + $0xa0] sm:$0xff]  ;;  %v508_v63 = vld [vmem:[%s1844_s3 + $0x18] sm:$0xff] }
  0x32   : > { %428 = vmatpush1.msra.mxu0 %v389_v23  ;;  %1138 = vmatprep.subr.mxu1 %v1293_v7  ;;  %v524_v0 = vld [vmem:[%s1844_s3 + $0x98] sm:$0xff]  ;;  %v507_v1 = vld [vmem:[%s1844_s3 + $0x10] sm:$0xff]  ;;  %v506_v3 = vld [vmem:[%s1844_s3 + $0x8] sm:$0xff] }
  0x33   : > { %429 = vmatprep.subr.mxu0 %v388_v24  ;;  %1139 = vmatpush3.msra.mxu1 %v532_v48  ;;  %v523_v2 = vld [vmem:[%s1844_s3 + $0x90] sm:$0xff]  ;;  %v522_v4 = vld [vmem:[%s1844_s3 + $0x88] sm:$0xff]  ;;  %v505_v5 = vld [vmem:[%s1844_s3] sm:$0xff] }
  0x34   : > { %430 = vmatpush1.msra.mxu0 %v387_v25  ;;  %1140 = vmatprep.subr.mxu1 %v1293_v7  ;;  %v371_v6 = vld [vmem:[%s366_s22] sm:$0xff]  ;;  %v729_v40 = vld [vmem:[%s1846_s5 + $0x128] sm:$0xff]  ;;  %v730_v42 = vld [vmem:[%s1846_s5 + $0x130] sm:$0xff] }
  0x35   : > { %431 = vmatprep.subr.mxu0 %v386_v26  ;;  %1141 = vmatpush3.msra.mxu1 %v531_v50  ;;  %v521_v8 = vld [vmem:[%s1844_s3 + $0x80] sm:$0xff]  ;;  %v725_v44 = vld [vmem:[%s1846_s5 + $0x108] sm:$0xff]  ;;  %v723_v46 = vld [vmem:[%s1846_s5 + $0xf8] sm:$0xff] }
  0x36   : > { %432 = vmatpush1.msra.mxu0 %v385_v27  ;;  %1142 = vmatprep.subr.mxu1 %v1293_v7  ;;  %v724_v48 = vld [vmem:[%s1846_s5 + $0x100] sm:$0xff]  ;;  %v719_v50 = vld [vmem:[%s1846_s5 + $0xd8] sm:$0xff] }
  0x37   : > { %433 = vmatprep.subr.mxu0 %v384_v28  ;;  %1143 = vmatpush3.msra.mxu1 %v530_v52  ;;  %v717_v52 = vld [vmem:[%s1846_s5 + $0xc8] sm:$0xff] }
  0x38   : > { %434 = vmatpush1.msra.mxu0 %v383_v29  ;;  %1144 = vmatprep.subr.mxu1 %v1293_v7 }
  0x39   : > { %435 = vmatprep.subr.mxu0 %v382_v30  ;;  %1145 = vmatpush3.msra.mxu1 %v529_v54  ;;  %v718_v54 = vld [vmem:[%s1846_s5 + $0xd0] sm:$0xff] }
  0x3a   : > { %436 = vmatpush1.msra.mxu0 %v381_v31  ;;  %1146 = vmatprep.subr.mxu1 %v1293_v7  ;;  %v738_v31 = vld [vmem:[%s1846_s5 + $0x170] sm:$0xff] }
  0x3b   : > { %437 = vmatprep.subr.mxu0 %v380_v32  ;;  %1147 = vmatpush3.msra.mxu1 %v528_v56  ;;  %v737_v32 = vld [vmem:[%s1846_s5 + $0x168] sm:$0xff] }
  0x3c   : > { %438 = vmatpush1.msra.mxu0 %v379_v33  ;;  %1148 = vmatprep.subr.mxu1 %v1293_v7  ;;  %v739_v33 = vld [vmem:[%s1846_s5 + $0x178] sm:$0xff]  ;;  %v713_v56 = vld [vmem:[%s1846_s5 + $0xa8] sm:$0xff] }
  0x3d   : > { %439 = vmatprep.subr.mxu0 %v378_v34  ;;  %1149 = vmatpush3.msra.mxu1 %v527_v58  ;;  %v735_v34 = vld [vmem:[%s1846_s5 + $0x158] sm:$0xff] }
  0x3e   : > { %440 = vmatpush1.msra.mxu0 %v377_v35  ;;  %1150 = vmatprep.subr.mxu1 %v1293_v7  ;;  %v734_v35 = vld [vmem:[%s1846_s5 + $0x150] sm:$0xff]  ;;  %v711_v58 = vld [vmem:[%s1846_s5 + $0x98] sm:$0xff] }
  0x3f   : > { %474 = vmatmul.mubr.f32.vlgmr.msra.gmra.mxu0 %v372_v36  ;;  %1165 = vmatprep.subr.mxu0 %v1293_v7  ;;  %v736_v36 = vld [vmem:[%s1846_s5 + $0x160] sm:$0xff] }
  0x40   : > { %479 = vmatprep.mubr.f32.mxu0 %v1293_v7  ;;  %1166 = vmatpush3.msra.mxu0 %v520_v39  ;;  %v733_v39 = vld [vmem:[%s1846_s5 + $0x148] sm:$0xff] }
  0x41   : > { %1167 = vmatprep.subr.mxu0 %v1293_v7  ;;  %1151 = vmatpush3.msra.mxu1 %v526_v60  ;;  %v712_v60 = vld [vmem:[%s1846_s5 + $0xa0] sm:$0xff] }
  0x42   : > { %1168 = vmatpush3.msra.mxu0 %v519_v41  ;;  %1152 = vmatprep.subr.mxu1 %v1293_v7  ;;  %v728_v41 = vld [vmem:[%s1846_s5 + $0x120] sm:$0xff] }
  0x43   : > { %480 = vmatmul.mubr.f32.gmra.mxu0 %v1071_v37  ;;  %1169 = vmatprep.subr.mxu0 %v1293_v7  ;;  %v732_v37 = vld [vmem:[%s1846_s5 + $0x140] sm:$0xff] }
  0x44   : > { %485 = vmatprep.mubr.f32.mxu0 %v1293_v7  ;;  %1170 = vmatpush3.msra.mxu0 %v518_v43  ;;  %v726_v43 = vld [vmem:[%s1846_s5 + $0x110] sm:$0xff] }
  0x45   : > { %1171 = vmatprep.subr.mxu0 %v1293_v7  ;;  %1153 = vmatpush3.msra.mxu1 %v525_v62  ;;  %v707_v62 = vld [vmem:[%s1846_s5 + $0x78] sm:$0xff] }
  0x46   : > { %1172 = vmatpush3.msra.mxu0 %v517_v45  ;;  %1154 = vmatprep.subr.mxu1 %v1293_v7  ;;  %v727_v45 = vld [vmem:[%s1846_s5 + $0x118] sm:$0xff] }
  0x47   : > { %486 = vmatmul.mubr.f32.gmra.mxu0 %v1072_v38  ;;  %1173 = vmatprep.subr.mxu0 %v1293_v7  ;;  %v731_v38 = vld [vmem:[%s1846_s5 + $0x138] sm:$0xff] }
  0x48   : > { %1174 = vmatpush3.msra.mxu0 %v516_v47  ;;  %1155 = vmatpush3.msra.mxu1 %v524_v0  ;;  %v722_v47 = vld [vmem:[%s1846_s5 + $0xf0] sm:$0xff]  ;;  %v705_v0 = vld [vmem:[%s1846_s5 + $0x68] sm:$0xff] }
  0x49   : > { %1175 = vmatprep.subr.mxu0 %v1293_v7  ;;  %1156 = vmatprep.subr.mxu1 %v1293_v7 }
  0x4a   : > { %1176 = vmatpush3.msra.mxu0 %v515_v49  ;;  %1157 = vmatpush3.msra.mxu1 %v523_v2  ;;  %v720_v49 = vld [vmem:[%s1846_s5 + $0xe0] sm:$0xff]  ;;  %v706_v2 = vld [vmem:[%s1846_s5 + $0x70] sm:$0xff] }
  0x4b   : > { %1177 = vmatprep.subr.mxu0 %v1293_v7  ;;  %1158 = vmatprep.subr.mxu1 %v1293_v7 }
  0x4c   : > { %1178 = vmatpush3.msra.mxu0 %v514_v51  ;;  %1159 = vmatpush3.msra.mxu1 %v522_v4  ;;  %v721_v51 = vld [vmem:[%s1846_s5 + $0xe8] sm:$0xff] }
  0x4d   : > { %1179 = vmatprep.subr.mxu0 %v1293_v7  ;;  %1197 = vmatprep.mubr.msk.f32.mxu0 %vm1294_vm0, %v1293_v7  ;;  %v701_v4 = vld [vmem:[%s1846_s5 + $0x48] sm:$0xff] }
  0x4e   : > { %1180 = vmatpush3.msra.mxu0 %v513_v53  ;;  %1160 = vmatprep.subr.mxu1 %v1293_v7  ;;  %v716_v53 = vld [vmem:[%s1846_s5 + $0xc0] sm:$0xff] }
  0x4f   : > { %1181 = vmatprep.subr.mxu0 %v1293_v7  ;;  %1161 = vmatpush3.msra.mxu1 %v521_v8  ;;  %v698_v8 = vld [vmem:[%s1846_s5 + $0x30] sm:$0xff] }
  0x50   : > { %1182 = vmatpush3.msra.mxu0 %v512_v55  ;;  %757 = vmatprep.subr.mxu1 %v738_v31  ;;  %v714_v55 = vld [vmem:[%s1846_s5 + $0xb0] sm:$0xff] }
  0x51   : > { %1183 = vmatprep.subr.mxu0 %v1293_v7 }
  0x52   : > { %1184 = vmatpush3.msra.mxu0 %v511_v57  ;;  %v715_v57 = vld [vmem:[%s1846_s5 + $0xb8] sm:$0xff] }
  0x53   : > { %1185 = vmatprep.subr.mxu0 %v1293_v7 }
  0x54   : > { %1186 = vmatpush3.msra.mxu0 %v510_v59  ;;  %v710_v59 = vld [vmem:[%s1846_s5 + $0x90] sm:$0xff] }
  0x55   : > { %1187 = vmatprep.subr.mxu0 %v1293_v7 }
  0x56   : > { %1188 = vmatpush3.msra.mxu0 %v509_v61  ;;  %v708_v61 = vld [vmem:[%s1846_s5 + $0x80] sm:$0xff] }
  0x57   : > { %1189 = vmatprep.subr.mxu0 %v1293_v7 }
  0x58   : > { %1190 = vmatpush3.msra.mxu0 %v508_v63  ;;  %v709_v63 = vld [vmem:[%s1846_s5 + $0x88] sm:$0xff] }
  0x59   : > { %1191 = vmatprep.subr.mxu0 %v1293_v7 }
  0x5a   : > { %1192 = vmatpush3.msra.mxu0 %v507_v1  ;;  %v704_v1 = vld [vmem:[%s1846_s5 + $0x60] sm:$0xff] }
  0x5b   : > { %1193 = vmatprep.subr.mxu0 %v1293_v7 }
  0x5c   : > { %1194 = vmatpush3.msra.mxu0 %v506_v3  ;;  %v702_v3 = vld [vmem:[%s1846_s5 + $0x50] sm:$0xff] }
  0x5d   : > { %1195 = vmatprep.subr.mxu0 %v1293_v7 }
  0x5e   : > { %1196 = vmatpush3.msra.mxu0 %v505_v5  ;;  %v703_v5 = vld [vmem:[%s1846_s5 + $0x58] sm:$0xff] }
  0x5f   : > { %1198 = vmatmul.mubr.f32.vlgmr.msra.gmra.mxu0 %v371_v6  ;;  %1200 = vmatprep.subr.mxu0 %v1293_v7  ;;  %v699_v6 = vld [vmem:[%s1846_s5 + $0x38] sm:$0xff] }
  0x60   : > { %1232 = vmatprep.mubr.msk.f32.mxu0 %vm1294_vm0, %v1293_v7  ;;  %1201 = vmatpush3.msra.mxu0 %v739_v33 }
  0x61   : > { %1202 = vmatprep.subr.mxu0 %v1293_v7 }
  0x62   : > { %1203 = vmatpush3.msra.mxu0 %v736_v36 }
  0x63   : > { %1204 = vmatprep.subr.mxu0 %v1293_v7 }
  0x64   : > { %1205 = vmatpush3.msra.mxu0 %v733_v39 }
  0x65   : > { %1206 = vmatprep.subr.mxu0 %v1293_v7 }
  0x66   : > { %1207 = vmatpush3.msra.mxu0 %v730_v42 }
  0x67   : > { %1208 = vmatprep.subr.mxu0 %v1293_v7 }
  0x68   : > { %1209 = vmatpush3.msra.mxu0 %v727_v45 }
  0x69   : > { %1210 = vmatprep.subr.mxu0 %v1293_v7 }
  0x6a   : > { %1211 = vmatpush3.msra.mxu0 %v724_v48 }
  0x6b   : > { %1212 = vmatprep.subr.mxu0 %v1293_v7 }
  0x6c   : > { %1213 = vmatpush3.msra.mxu0 %v721_v51 }
  0x6d   : > { %1214 = vmatprep.subr.mxu0 %v1293_v7 }
  0x6e   : > { %1215 = vmatpush3.msra.mxu0 %v718_v54 }
  0x6f   : > { %1216 = vmatprep.subr.mxu0 %v1293_v7 }
  0x70   : > { %1217 = vmatpush3.msra.mxu0 %v715_v57 }
  0x71   : > { %1218 = vmatprep.subr.mxu0 %v1293_v7 }
  0x72   : > { %1219 = vmatpush3.msra.mxu0 %v712_v60 }
  0x73   : > { %1220 = vmatprep.subr.mxu0 %v1293_v7 }
  0x74   : > { %1221 = vmatpush3.msra.mxu0 %v709_v63 }
  0x75   : > { %1222 = vmatprep.subr.mxu0 %v1293_v7 }
  0x76   : > { %1223 = vmatpush3.msra.mxu0 %v706_v2 }
  0x77   : > { %1224 = vmatprep.subr.mxu0 %v1293_v7 }
  0x78   : > { %1225 = vmatpush3.msra.mxu0 %v703_v5 }
  0x79   : > { %1226 = vmatprep.subr.mxu0 %v1293_v7 }
  0xff   : > { %v1630_v9 = vpop.f32.mrf.mxu0 }
 0x101   : > { %v477_v10 = vpop.f32.mrf.mxu0 }
 0x102   : > { %v898_v13 = vmul.f32 %v477_v10, %v1630_v9  ;;  %v492_v17 = vmul.f32 %v477_v10, %v477_v10  ;;  %v700_v10 = vld [vmem:[%s1846_s5 + $0x40] sm:$0xff] }
 0x103   : > { %v1632_v11 = vpop.f32.mrf.mxu0  ;;  %1227 = vmatpush3.msra.mxu0 %v700_v10 }
 0x104   : > { %1228 = vmatprep.subr.mxu0 %v1293_v7 }
 0x105   : > { %v483_v12 = vpop.f32.mrf.mxu0 }
 0x106   : > { %v493_v14 = vmul.f32 %v483_v12, %v483_v12  ;;  %v899_v15 = vmul.f32 %v483_v12, %v1632_v11  ;;  %v696_v12 = vld [vmem:[%s1846_s5 + $0x20] sm:$0xff] }
 0x107   : > { %v1636_v16 = vpop.f32.mrf.mxu0 }
 0x108   : > { %v1638_v18 = vadd.f32 %v899_v15, %v898_v13  ;;  %v494_v20 = vadd.f32 %v493_v14, %v492_v17  ;;  %v695_v13 = vld [vmem:[%s1846_s5 + $0x18] sm:$0xff]  ;;  %v697_v14 = vld [vmem:[%s1846_s5 + $0x28] sm:$0xff]  ;;  %v692_v17 = vld [vmem:[%s1846_s5] sm:$0xff] }
 0x109   : > { %v1640_v19 = vpop.f32.mrf.mxu0  ;;  %1229 = vmatpush3.msra.mxu0 %v697_v14  ;;  %v693_v15 = vld [vmem:[%s1846_s5 + $0x8] sm:$0xff] }
 0x10a   : > { %v495_v21 = vmul.f32 %v1640_v19, %v1640_v19  ;;  %1230 = vmatprep.subr.mxu0 %v1293_v7 }
 0x10c   : > { %v496_v22 = vadd.f32 %v495_v21, %v494_v20  ;;  %v694_v20 = vld [vmem:[%s1846_s5 + $0x10] sm:$0xff] }
 0x10d   : > { %1231 = vmatpush3.msra.mxu0 %v694_v20 }
 0x10e   : > { %v497_v23 = vadd.f32 1e-08, %v496_v22  ;;  %v1073_v22 = vld [vmem:[%s1845_s4] ss:$0 sm:$0xff] }
 0x110   : > { %1263 = vrsqrt.f32 %v497_v23  ;;  %vm500_vm1 = vcmp.eq.f32.partialorder %v497_v23, inf  ;;  %v503_v26 = vand.u32 2147483648, %v497_v23  ;;  %vm502_vm2 = vcmp.eq.f32.partialorder %v497_v23, 0.0 }
 0x11d   : > { %v1264_v24 = vpop.eup %1263 }
 0x11e   : > { %v499_v25 = vmul.f32 %v1264_v24, %v497_v23 }
 0x11f   : > { %v1645_v29 = vpop.f32.mrf.mxu0 }
 0x120   : > { %v501_v27 = vsel %vm500_vm1, %v497_v23, %v499_v25 }
 0x121   : > { %v504_v28 = vsel %vm502_vm2, %v503_v26, %v501_v27  ;;  %v1199_v30 = vpop.f32.mrf.mxu0 }
 0x122   : > { %1163 = vmatmul.mubr.f32.vlgmr.msra.gmra.mxu1 %v504_v28 }
 0x123   : > { %821 = vmatprep.mubr.f32.mxu1 %v1293_v7  ;;  %758 = vmatpush1.msra.mxu1 %v737_v32  ;;  %v742_v32 = vlaneseq }
 0x124   : > { %759 = vmatprep.subr.mxu1 %v735_v34 }
 0x125   : > { %760 = vmatpush1.msra.mxu1 %v734_v35  ;;  %v743_v33 = vshrl.u32 %v742_v32, 7  ;;  %v740_v35 = vld [vmem:[%s1847_s6] sm:$0x7] }
 0x126   : > { %761 = vmatprep.subr.mxu1 %v732_v37 }
 0x127   : > { %762 = vmatpush1.msra.mxu1 %v731_v38  ;;  %v744_v34 = vsub.s32 0, %v743_v33  ;;  %v752_v37 = vsub.s32 2, %v743_v33  ;;  %v901_v38 = vmul.f32 %v1640_v19, %v1636_v16 }
 0x128   : > { %763 = vmatprep.subr.mxu1 %v729_v40 }
 0x129   : > { %764 = vmatpush1.msra.mxu1 %v728_v41  ;;  %v745_v36 = vrot.slane %v740_v35, %v744_v34 }
 0x12a   : > { %765 = vmatprep.subr.mxu1 %v726_v43  ;;  %v753_v43 = vrot.slane %v740_v35, %v752_v37 }
 0x12b   : > { %766 = vmatpush1.msra.mxu1 %v725_v44  ;;  %v902_v44 = vadd.f32 %v901_v38, %v1638_v18 }
 0x12c   : > { %767 = vmatprep.subr.mxu1 %v723_v46 }
 0x12d   : > { %768 = vmatpush1.msra.mxu1 %v722_v47 }
 0x12e   : > { %769 = vmatprep.subr.mxu1 %v720_v49 }
 0x12f   : > { %770 = vmatpush1.msra.mxu1 %v719_v50 }
 0x130   : > { %771 = vmatprep.subr.mxu1 %v717_v52 }
 0x131   : > { %772 = vmatpush1.msra.mxu1 %v716_v53 }
 0x132   : > { %773 = vmatprep.subr.mxu1 %v714_v55 }
 0x133   : > { %774 = vmatpush1.msra.mxu1 %v713_v56 }
 0x134   : > { %775 = vmatprep.subr.mxu1 %v711_v58 }
 0x135   : > { %776 = vmatpush1.msra.mxu1 %v710_v59 }
 0x136   : > { %777 = vmatprep.subr.mxu1 %v708_v61 }
 0x137   : > { %778 = vmatpush1.msra.mxu1 %v707_v62 }
 0x138   : > { %779 = vmatprep.subr.mxu1 %v705_v0 }
 0x139   : > { %780 = vmatpush1.msra.mxu1 %v704_v1 }
 0x13a   : > { %781 = vmatprep.subr.mxu1 %v702_v3 }
 0x13b   : > { %782 = vmatpush1.msra.mxu1 %v701_v4 }
 0x13c   : > { %783 = vmatprep.subr.mxu1 %v699_v6 }
 0x13d   : > { %784 = vmatpush1.msra.mxu1 %v698_v8 }
 0x13e   : > { %785 = vmatprep.subr.mxu1 %v696_v12 }
 0x13f   : > { %786 = vmatpush1.msra.mxu1 %v695_v13 }
 0x140   : > { %787 = vmatprep.subr.mxu1 %v693_v15 }
 0x141   : > { %788 = vmatpush1.msra.mxu1 %v692_v17 }
 0x1e2   : > { %v603_v21 = vpop.f32.mrf.mxu1 }
 0x1e3   : > { %v674_v23 = vadd.f32 %v1645_v29, %v603_v21  ;;  %v748_v29 = vsub.s32 1, %v743_v33 }
 0x1e4   : > { %v1164_v24 = vpop.f32.mrf.mxu1 }
 0x1e5   : > { %v684_v25 = vadd.f32 %v1073_v22, %v674_v23  ;;  %v749_v39 = vrot.slane %v740_v35, %v748_v29 }
 0x1e7   : > { %v685_v7 = vsub.f32 0.0, %v684_v25 }
 0x1e9   : > { %v686_v26 = vmul.f32 1.442695, %v685_v7 }
 0x1eb   : > { %1265 = vpow2.f32 %v686_v26 }
 0x1f8   : > { %v1266_v27 = vpop.eup %1265 }
 0x1f9   : > { %v688_v28 = vadd.f32 1.0, %v1266_v27 }
 0x1fb   : > { %1267 = vrcp.f32 %v688_v28 }
 0x208   : > { %v1268_v30 = vpop.eup %1267 }
 0x209   : > { %v691_v31 = vmul.f32 %v1268_v30, %v684_v25 }
 0x20b   : > { %822 = vmatmul.mubr.f32.vlgmr.msra.gmra.mxu1 %v691_v31  ;;  %1233 = vmatmul.mubr.f32.vlgmr.msra.gmra.mxu0 %v691_v31 }
 0x2cb   : > { %v823_v40 = vpop.f32.mrf.mxu1  ;;  %v894_v41 = vpop.f32.mrf.mxu0 }
 0x2cc   : > { %v824_v42 = vadd.f32 %v823_v40, %v745_v36  ;;  %v895_v19 = vadd.f32 %v894_v41, %v753_v43 }
 0x2cd   : > { %v825_v45 = vpop.f32.mrf.mxu1  ;;  %v1234_v46 = vpop.f32.mrf.mxu0 }
 0x2ce   : > { %v906_v47 = vmul.f32 %v824_v42, %v1630_v9  ;;  %v908_v48 = vmul.f32 %v824_v42, %v1632_v11  ;;  %v911_v49 = vmul.f32 %v824_v42, %v1636_v16  ;;  %v826_v50 = vadd.f32 %v825_v45, %v749_v39 }
 0x2d0   : > { %907 = vst [vmem:[%s362_s16] sm:$0xff] %v906_v47  ;;  %1074 = vst [vmem:[%s362_s16 + $0x8] sm:$0xff] %v908_v48  ;;  %v903_v51 = vmul.f32 %v902_v44, %v826_v50  ;;  %927 = sbr.rel (!%p1371_p5) target bundleno = 730 (0x2da), region = 94 }
 0x2d1   : > { %1075 = vst [vmem:[%s362_s16 + $0x10] sm:$0xff] %v911_v49 }
 0x2d2   : > { %v904_v18 = vadd.f32 %v903_v51, %v895_v19 }
 0x2d4   : > { %905 = vst [vmem:[%s370_s19] sm:$0xff] %v904_v18 }
 0x2d7   : > { %v962_v9 = vld [vmem:[%s362_s16] sm:$0xff]  ;;  %v964_v11 = vld [vmem:[%s362_s16 + $0x8] sm:$0xff] }
 0x2d8   : > { %v966_v16 = vld [vmem:[%s362_s16 + $0x10] sm:$0xff]  ;;  %963 = vst [vmem:[%s929_s23] sm:$0xff] %v962_v9  ;;  %965 = vst [vmem:[%s929_s23 + $0x10] sm:$0xff] %v964_v11 }
 0x2d9   : > { %967 = vst [vmem:[%s929_s23 + $0x20] sm:$0xff] %v966_v16 }
 0x2da PF: > { %p16_p11 = scmp.ge.s32.totalorder %s1359_s9, 4   ;;  %s1851_s27 = smov %s1287_s28 }
 0x2db   : > { %s1852_s28 = smov %s1369_s12  ;;  %s1853_s29 = smov %s1359_s9 }
 0x2dc   :  { %18 = sbr.rel (!%p16_p11) target bundleno = 2 (0x2), region = 178 }

// kernel: painn_forward.11
= control target key start
LH: loop header
LB: loop body
LE: loop exit
PB: predicated region body
PF: predicated region fallthrough
CT: control target
= control target key end

     0   :  { %s1561_s21 = smov 0   ;;  %s1563_s22 = smov 0   ;;  %s2363_s0 = inlined_call_operand.vmem [shape: f32[16,384], index: 0, kind: input, shape index: {}]   ;;  %s2364_s1 = inlined_call_operand.vmem [shape: f32[3,16,128], index: 1, kind: input, shape index: {}]   ;;  %s2365_s2 = inlined_call_operand.vmem [shape: f32[256,84], index: 2, kind: input, shape index: {}]   ;;  %s2366_s3 = inlined_call_operand.vmem [shape: f32[84,640], index: 3, kind: input, shape index: {}]   ;;  %s2367_s4 = inlined_call_operand.vmem [shape: f32[8,128], index: 4, kind: input, shape index: {}]   ;;  %s2368_s5 = inlined_call_operand.vmem [shape: f32[16,128], index: 5, kind: output, shape index: {0}]   ;;  %s2369_s6 = inlined_call_operand.vmem [shape: f32[3,16,128], index: 6, kind: output, shape index: {1}]  }
   0x1   :  { %s1565_s23 = smov 0  }
   0x2 LB: > { %s1574_s24 = sadd.s32 4294967295, %s1523_s23   ;;  %s1576_s25 = sadd.s32 1, %s1523_s23   ;;  %s1523_s23 = sphi %s1565_s23, %s2429_s23   ;;  %s1519_s22 = sphi %s1563_s22, %s2428_s22   ;;  %s1515_s21 = sphi %s1561_s21, %s2427_s21  }
   0x3   : > { %s157_s26 = ssub.s32 %s1523_s23, %s1576_s25  ;;  %s160_s27 = sadd.s32 1, %s1519_s22 }
   0x4   : > { %p158_p0 = scmp.eq.s32.totalorder %s157_s26, 0  ;;  %p170_p1 = scmp.ne.s32.totalorder %s1519_s22, %s1515_s21 }
   0x5   : > { %p171_p2 = scmp.eq.s32.totalorder %s1574_s24, 1  ;;  %p1336_p3 = scmp.ge.s32.totalorder %s1523_s23, 1 }
   0x6   : > { %s1584_s28 = scalar_select %p158_p0, %s1519_s22, %s160_s27  }
   0x7   : > { %p1586_p4 = por %p171_p2, %p170_p1  ;;  %p216_p5 = scmp.lt.s32.totalorder %s1523_s23, 3 }
   0x9   : > { %p217_p6 = pnand %p1336_p3, %p216_p5 }
   0xb   : > { %220 = sbr.rel (%p217_p6) target bundleno = 564 (0x234), region = 40 }
  0x10   : > { %v326_v0 = vld [vmem:[%s2366_s3 + $0x198] sm:$0xf]  ;;  %vm379_vm0 = vcmask 1043456   ;;  %v325_v1 = vld [vmem:[%s2366_s3 + $0x190] sm:$0xf]  ;;  %v320_v4 = vld [vmem:[%s2366_s3 + $0x168] sm:$0xff] }
  0x11   : > { %v321_v2 = vld [vmem:[%s2366_s3 + $0x170] sm:$0xff]  ;;  %1340 = vmatprep.subr.msk.mxu0 %vm379_vm0, %v326_v0  ;;  %v328_v3 = vld [vmem:[%s2366_s3 + $0x1a8] sm:$0xf]  ;;  %v327_v5 = vld [vmem:[%s2366_s3 + $0x1a0] sm:$0xf]  ;;  %s1337_s10 = sshll.u32 %s1574_s24, 4 }
  0x12   : > { %1341 = vmatpush1.msk.msra.mxu0 %vm379_vm0, %v325_v1  ;;  %1358 = vmatprep.subr.msk.mxu1 %vm379_vm0, %v328_v3  ;;  %v316_v6 = vld [vmem:[%s2366_s3 + $0x148] sm:$0xff]  ;;  %v323_v7 = vld [vmem:[%s2366_s3 + $0x180] sm:$0xff]  ;;  %v322_v9 = vld [vmem:[%s2366_s3 + $0x178] sm:$0xff]  ;;  %p1648_p7 = scmp.lt.s32.totalorder %s1337_s10, 31  ;;  %vm330_vm1 = vcmask 687104   ;;  %v1525_v44 = vmov 0.0  }
  0x13   : > { %407 = vmatprep.subr.mxu0 %v321_v2  ;;  %1359 = vmatpush1.msk.msra.mxu1 %vm379_vm0, %v327_v5  ;;  %v315_v8 = vld [vmem:[%s2366_s3 + $0x140] sm:$0xff]  ;;  %v318_v10 = vld [vmem:[%s2366_s3 + $0x158] sm:$0xff]  ;;  %v317_v12 = vld [vmem:[%s2366_s3 + $0x150] sm:$0xff]  ;;  %p255_p8 = scmp.lt.s32.totalorder %s1574_s24, 1 }
  0x14   : > { %408 = vmatpush1.msra.mxu0 %v320_v4  ;;  %568 = vmatprep.subr.mxu1 %v323_v7  ;;  %v311_v11 = vld [vmem:[%s2366_s3 + $0x120] sm:$0xff]  ;;  %v310_v13 = vld [vmem:[%s2366_s3 + $0x118] sm:$0xff]  ;;  %v313_v14 = vld [vmem:[%s2366_s3 + $0x130] sm:$0xff]  ;;  %s2431_s10 = smov (!%p1648_p7, %s1337_s10), 31 }
  0x15   : > { %409 = vmatprep.subr.mxu0 %v316_v6  ;;  %569 = vmatpush1.msra.mxu1 %v322_v9  ;;  %v306_v15 = vld [vmem:[%s2366_s3 + $0xf8] sm:$0xff]  ;;  %v312_v16 = vld [vmem:[%s2366_s3 + $0x128] sm:$0xff]  ;;  %v305_v17 = vld [vmem:[%s2366_s3 + $0xf0] sm:$0xff]  ;;  %s1338_s26 = sshll.u32 %s2431_s10, 3 }
  0x16   : > { %410 = vmatpush1.msra.mxu0 %v315_v8  ;;  %570 = vmatprep.subr.mxu1 %v318_v10  ;;  %v308_v18 = vld [vmem:[%s2366_s3 + $0x108] sm:$0xff]  ;;  %v301_v19 = vld [vmem:[%s2366_s3 + $0xd0] sm:$0xff]  ;;  %v307_v20 = vld [vmem:[%s2366_s3 + $0x100] sm:$0xff]  ;;  %s1728_s19 = scalar_lea.vmem %s2365_s2, %s1338_s26  ;;  %s246_s26 = sand.u32 1, %s1515_s21  }
  0x17   : > { %411 = vmatprep.subr.mxu0 %v311_v11  ;;  %571 = vmatpush1.msra.mxu1 %v317_v12  ;;  %v300_v21 = vld [vmem:[%s2366_s3 + $0xc8] sm:$0xff]  ;;  %v303_v22 = vld [vmem:[%s2366_s3 + $0xe0] sm:$0xff]  ;;  %v302_v24 = vld [vmem:[%s2366_s3 + $0xd8] sm:$0xff]  ;;  %s256_s9 = scalar_select %p255_p8, %s1574_s24, 1 }
  0x18   : > { %412 = vmatpush1.msra.mxu0 %v310_v13  ;;  %572 = vmatprep.subr.mxu1 %v313_v14  ;;  %v296_v23 = vld [vmem:[%s2366_s3 + $0xa8] sm:$0xff]  ;;  %v295_v25 = vld [vmem:[%s2366_s3 + $0xa0] sm:$0xff]  ;;  %v298_v26 = vld [vmem:[%s2366_s3 + $0xb8] sm:$0xff]  ;;  %s1475_s12 = smul.u32 24, %s246_s26  ;;  %s1399_s21 = sshll.u32 (%p1586_p4), %s1574_s24, 3 }
  0x19   : > { %413 = vmatprep.subr.mxu0 %v306_v15  ;;  %573 = vmatpush1.msra.mxu1 %v312_v16  ;;  %v291_v27 = vld [vmem:[%s2366_s3 + $0x80] sm:$0xff]  ;;  %v297_v28 = vld [vmem:[%s2366_s3 + $0xb0] sm:$0xff]  ;;  %v290_v29 = vld [vmem:[%s2366_s3 + $0x78] sm:$0xff]  ;;  %s1339_s11 = sshll.u32 %s256_s9, 3 }
  0x1a   : > { %414 = vmatpush1.msra.mxu0 %v305_v17  ;;  %574 = vmatprep.subr.mxu1 %v308_v18  ;;  %v293_v30 = vld [vmem:[%s2366_s3 + $0x90] sm:$0xff]  ;;  %v286_v31 = vld [vmem:[%s2366_s3 + $0x58] sm:$0xff]  ;;  %v292_v32 = vld [vmem:[%s2366_s3 + $0x88] sm:$0xff]  ;;  %s258_s10 = scalar_lea.vmem %s2368_s5, %s1339_s11  ;;  %s248_s14 = scalar_lea.vmem [#allocation2], %s1475_s12 }
  0x1b   : > { %415 = vmatprep.subr.mxu0 %v301_v19  ;;  %575 = vmatpush1.msra.mxu1 %v307_v20  ;;  %v285_v33 = vld [vmem:[%s2366_s3 + $0x50] sm:$0xff]  ;;  %v288_v34 = vld [vmem:[%s2366_s3 + $0x68] sm:$0xff]  ;;  %v287_v36 = vld [vmem:[%s2366_s3 + $0x60] sm:$0xff] }
  0x1c   : > { %416 = vmatpush1.msra.mxu0 %v300_v21  ;;  %576 = vmatprep.subr.mxu1 %v303_v22  ;;  %v281_v35 = vld [vmem:[%s2366_s3 + $0x30] sm:$0xff]  ;;  %v280_v37 = vld [vmem:[%s2366_s3 + $0x28] sm:$0xff]  ;;  %v283_v38 = vld [vmem:[%s2366_s3 + $0x40] sm:$0xff] }
  0x1d   : > { %417 = vmatprep.subr.mxu0 %v296_v23  ;;  %577 = vmatpush1.msra.mxu1 %v302_v24  ;;  %v276_v39 = vld [vmem:[%s2366_s3 + $0x8] sm:$0xff]  ;;  %v275_v40 = vld [vmem:[%s2366_s3] sm:$0xff]  ;;  %v282_v41 = vld [vmem:[%s2366_s3 + $0x38] sm:$0xff] }
  0x1e   : > { %418 = vmatpush1.msra.mxu0 %v295_v25  ;;  %578 = vmatprep.subr.mxu1 %v298_v26  ;;  %v1740_v42 = vld [vmem:[%s1728_s19] sm:$0xff]  ;;  %v278_v43 = vld [vmem:[%s2366_s3 + $0x18] sm:$0xff]  ;;  %v277_v45 = vld [vmem:[%s2366_s3 + $0x10] sm:$0xff] }
  0x1f   : > { %419 = vmatprep.subr.mxu0 %v291_v27  ;;  %579 = vmatpush1.msra.mxu1 %v297_v28  ;;  %v329_v46 = vld [vmem:[%s2366_s3 + $0x1b0] sm:$0xf]  ;;  %v1756_v47 = vld [vmem:[%s1728_s19 + $0x8] sm:$0xff]  ;;  %v319_v50 = vld [vmem:[%s2366_s3 + $0x160] sm:$0xff] }
  0x20   : > { %420 = vmatpush1.msra.mxu0 %v290_v29  ;;  %580 = vmatprep.subr.mxu1 %v293_v30  ;;  %v324_v48 = vld [vmem:[%s2366_s3 + $0x188] sm:$0xff]  ;;  %v1771_v49 = vld [vmem:[%s1728_s19 + $0x10] sm:$0xff]  ;;  %v314_v51 = vld [vmem:[%s2366_s3 + $0x138] sm:$0xff] }
  0x21   : > { %421 = vmatprep.subr.mxu0 %v286_v31  ;;  %581 = vmatpush1.msra.mxu1 %v292_v32  ;;  %v1786_v52 = vld [vmem:[%s1728_s19 + $0x18] sm:$0xff]  ;;  %v309_v53 = vld [vmem:[%s2366_s3 + $0x110] sm:$0xff]  ;;  %v304_v54 = vld [vmem:[%s2366_s3 + $0xe8] sm:$0xff] }
  0x22   : > { %422 = vmatpush1.msra.mxu0 %v285_v33  ;;  %582 = vmatprep.subr.mxu1 %v288_v34  ;;  %v1801_v55 = vld [vmem:[%s1728_s19 + $0x20] sm:$0xff]  ;;  %v294_v57 = vld [vmem:[%s2366_s3 + $0x98] sm:$0xff]  ;;  %v1816_v58 = vld [vmem:[%s1728_s19 + $0x28] sm:$0xff] }
  0x23   : > { %423 = vmatprep.subr.mxu0 %v281_v35  ;;  %583 = vmatpush1.msra.mxu1 %v287_v36  ;;  %v299_v56 = vld [vmem:[%s2366_s3 + $0xc0] sm:$0xff]  ;;  %v289_v59 = vld [vmem:[%s2366_s3 + $0x70] sm:$0xff]  ;;  %v284_v60 = vld [vmem:[%s2366_s3 + $0x48] sm:$0xff] }
  0x24   : > { %424 = vmatpush1.msra.mxu0 %v280_v37  ;;  %584 = vmatprep.subr.mxu1 %v283_v38  ;;  %v1831_v61 = vld [vmem:[%s1728_s19 + $0x30] sm:$0xff]  ;;  %v279_v62 = vld [vmem:[%s2366_s3 + $0x20] sm:$0xff]  ;;  %v266_v63 = vld [vmem:[%s1728_s19 + $0x38] sm:$0xff] }
  0x25   : > { %425 = vmatprep.subr.mxu0 %v276_v39  ;;  %459 = vmatprep.mubr.f32.mxu0 %v1525_v44  ;;  %v267_v0 = vld [vmem:[%s1728_s19 + $0x40] sm:$0xff]  ;;  %v268_v1 = vld [vmem:[%s1728_s19 + $0x48] sm:$0xff]  ;;  %v269_v2 = vld [vmem:[%s1728_s19 + $0x50] sm:$0xff] }
  0x26   : > { %426 = vmatpush1.msra.mxu0 %v275_v40  ;;  %585 = vmatpush1.msra.mxu1 %v282_v41  ;;  %v270_v3 = vld [vmem:[%s1728_s19 + $0x58] sm:$0xff]  ;;  %v271_v4 = vld [vmem:[%s1728_s19 + $0x60] sm:$0xff]  ;;  %v272_v5 = vld [vmem:[%s1728_s19 + $0x68] sm:$0xff] }
  0x27   : > { %1342 = vmatmul.mubr.msk.f32.vlgmr.msra.gmra.mxu0 %vm330_vm1, %v1740_v42  ;;  %586 = vmatprep.subr.mxu1 %v278_v43  ;;  %v273_v6 = vld [vmem:[%s1728_s19 + $0x70] sm:$0xff]  ;;  %v274_v7 = vld [vmem:[%s1728_s19 + $0x78] sm:$0xff]  ;;  %v1918_v9 = vld [vmem:[%s2363_s0 + $0x8] sm:$0xff]  ;;  %s1216_s19 = scalar_lea.vmem (%p1586_p4), %s2369_s6, %s1399_s21 }
  0x28   : > { %587 = vmatpush1.msra.mxu1 %v277_v45  ;;  %620 = vmatprep.mubr.f32.mxu1 %v1525_v44  ;;  %v1923_v10 = vld [vmem:[%s2363_s0 + $0x10] sm:$0xff]  ;;  %v1928_v13 = vld [vmem:[%s2364_s1] sm:$0xff]  ;;  %v1949_v20 = vld [vmem:[%s2363_s0 + $0x28] sm:$0xff] }
  0x29   : > { %1360 = vmatmul.mubr.msk.f32.vlgmr.msra.gmra.mxu1 %vm330_vm1, %v1740_v42  ;;  %465 = vmatprep.mubr.f32.mxu0 %v1525_v44  ;;  %v1933_v14 = vld [vmem:[%s2364_s1 + $0x10] sm:$0xff]  ;;  %v1944_v19 = vld [vmem:[%s2363_s0 + $0x20] sm:$0xff]  ;;  %v1959_v26 = vld [vmem:[%s2364_s1 + $0x8] sm:$0xff] }
  0x2a   : > { %1429 = vmatprep.subr.msk.mxu0 %vm379_vm0, %v329_v46  ;;  %626 = vmatprep.mubr.f32.mxu1 %v1525_v44  ;;  %v1964_v27 = vld [vmem:[%s2364_s1 + $0x18] sm:$0xff] }
  0x2b   : > { %1343 = vmatmul.mubr.msk.f32.gmra.mxu0 %vm330_vm1, %v1756_v47 }
  0x2c   : > { %1430 = vmatpush3.msk.msra.mxu0 %vm379_vm0, %v329_v46  ;;  %471 = vmatprep.mubr.f32.mxu0 %v1525_v44 }
  0x2d   : > { %1361 = vmatmul.mubr.msk.f32.gmra.mxu1 %vm330_vm1, %v1756_v47  ;;  %1431 = vmatprep.subr.mxu0 %v324_v48 }
  0x2e   : > { %632 = vmatprep.mubr.f32.mxu1 %v1525_v44  ;;  %1432 = vmatpush3.msra.mxu0 %v324_v48 }
  0x2f   : > { %1344 = vmatmul.mubr.msk.f32.gmra.mxu0 %vm330_vm1, %v1771_v49  ;;  %1433 = vmatprep.subr.mxu0 %v319_v50 }
  0x30   : > { %477 = vmatprep.mubr.f32.mxu0 %v1525_v44  ;;  %1434 = vmatpush3.msra.mxu0 %v319_v50 }
  0x31   : > { %1362 = vmatmul.mubr.msk.f32.gmra.mxu1 %vm330_vm1, %v1771_v49  ;;  %1435 = vmatprep.subr.mxu0 %v314_v51 }
  0x32   : > { %638 = vmatprep.mubr.f32.mxu1 %v1525_v44  ;;  %1436 = vmatpush3.msra.mxu0 %v314_v51 }
  0x33   : > { %1345 = vmatmul.mubr.msk.f32.gmra.mxu0 %vm330_vm1, %v1786_v52  ;;  %1437 = vmatprep.subr.mxu0 %v309_v53 }
  0x34   : > { %483 = vmatprep.mubr.f32.mxu0 %v1525_v44  ;;  %1438 = vmatpush3.msra.mxu0 %v309_v53 }
  0x35   : > { %1363 = vmatmul.mubr.msk.f32.gmra.mxu1 %vm330_vm1, %v1786_v52  ;;  %1439 = vmatprep.subr.mxu0 %v304_v54 }
  0x36   : > { %644 = vmatprep.mubr.f32.mxu1 %v1525_v44  ;;  %1440 = vmatpush3.msra.mxu0 %v304_v54 }
  0x37   : > { %1346 = vmatmul.mubr.msk.f32.gmra.mxu0 %vm330_vm1, %v1801_v55  ;;  %1441 = vmatprep.subr.mxu0 %v299_v56 }
  0x38   : > { %489 = vmatprep.mubr.f32.mxu0 %v1525_v44  ;;  %1442 = vmatpush3.msra.mxu0 %v299_v56 }
  0x39   : > { %1364 = vmatmul.mubr.msk.f32.gmra.mxu1 %vm330_vm1, %v1801_v55  ;;  %1443 = vmatprep.subr.mxu0 %v294_v57 }
  0x3a   : > { %650 = vmatprep.mubr.f32.mxu1 %v1525_v44  ;;  %1444 = vmatpush3.msra.mxu0 %v294_v57 }
  0x3b   : > { %1347 = vmatmul.mubr.msk.f32.gmra.mxu0 %vm330_vm1, %v1816_v58  ;;  %1445 = vmatprep.subr.mxu0 %v289_v59 }
  0x3c   : > { %495 = vmatprep.mubr.f32.mxu0 %v1525_v44  ;;  %1446 = vmatpush3.msra.mxu0 %v289_v59 }
  0x3d   : > { %1365 = vmatmul.mubr.msk.f32.gmra.mxu1 %vm330_vm1, %v1816_v58  ;;  %1447 = vmatprep.subr.mxu0 %v284_v60 }
  0x3e   : > { %656 = vmatprep.mubr.f32.mxu1 %v1525_v44  ;;  %1448 = vmatpush3.msra.mxu0 %v284_v60 }
  0x3f   : > { %1348 = vmatmul.mubr.msk.f32.gmra.mxu0 %vm330_vm1, %v1831_v61  ;;  %1449 = vmatprep.subr.mxu0 %v279_v62 }
  0x40   : > { %501 = vmatprep.mubr.f32.mxu0 %v1525_v44  ;;  %1450 = vmatpush3.msra.mxu0 %v279_v62 }
  0x41   : > { %1366 = vmatmul.mubr.msk.f32.gmra.mxu1 %vm330_vm1, %v1831_v61 }
  0x42   : > { %662 = vmatprep.mubr.f32.mxu1 %v1525_v44 }
  0x43   : > { %1349 = vmatmul.mubr.msk.f32.gmra.mxu0 %vm330_vm1, %v266_v63 }
  0x44   : > { %507 = vmatprep.mubr.f32.mxu0 %v1525_v44 }
  0x45   : > { %1367 = vmatmul.mubr.msk.f32.gmra.mxu1 %vm330_vm1, %v266_v63 }
  0x46   : > { %668 = vmatprep.mubr.f32.mxu1 %v1525_v44 }
  0x47   : > { %1350 = vmatmul.mubr.msk.f32.gmra.mxu0 %vm330_vm1, %v267_v0 }
  0x48   : > { %513 = vmatprep.mubr.f32.mxu0 %v1525_v44 }
  0x49   : > { %1368 = vmatmul.mubr.msk.f32.gmra.mxu1 %vm330_vm1, %v267_v0 }
  0x4a   : > { %674 = vmatprep.mubr.f32.mxu1 %v1525_v44 }
  0x4b   : > { %1351 = vmatmul.mubr.msk.f32.gmra.mxu0 %vm330_vm1, %v268_v1 }
  0x4c   : > { %519 = vmatprep.mubr.f32.mxu0 %v1525_v44 }
  0x4d   : > { %1369 = vmatmul.mubr.msk.f32.gmra.mxu1 %vm330_vm1, %v268_v1 }
  0x4e   : > { %680 = vmatprep.mubr.f32.mxu1 %v1525_v44 }
  0x4f   : > { %1352 = vmatmul.mubr.msk.f32.gmra.mxu0 %vm330_vm1, %v269_v2 }
  0x50   : > { %525 = vmatprep.mubr.f32.mxu0 %v1525_v44 }
  0x51   : > { %1370 = vmatmul.mubr.msk.f32.gmra.mxu1 %vm330_vm1, %v269_v2 }
  0x52   : > { %686 = vmatprep.mubr.f32.mxu1 %v1525_v44 }
  0x53   : > { %1353 = vmatmul.mubr.msk.f32.gmra.mxu0 %vm330_vm1, %v270_v3 }
  0x54   : > { %531 = vmatprep.mubr.f32.mxu0 %v1525_v44 }
  0x55   : > { %1371 = vmatmul.mubr.msk.f32.gmra.mxu1 %vm330_vm1, %v270_v3 }
  0x56   : > { %692 = vmatprep.mubr.f32.mxu1 %v1525_v44 }
  0x57   : > { %1354 = vmatmul.mubr.msk.f32.gmra.mxu0 %vm330_vm1, %v271_v4 }
  0x58   : > { %537 = vmatprep.mubr.f32.mxu0 %v1525_v44 }
  0x59   : > { %1372 = vmatmul.mubr.msk.f32.gmra.mxu1 %vm330_vm1, %v271_v4 }
  0x5a   : > { %698 = vmatprep.mubr.f32.mxu1 %v1525_v44 }
  0x5b   : > { %1355 = vmatmul.mubr.msk.f32.gmra.mxu0 %vm330_vm1, %v272_v5 }
  0x5c   : > { %543 = vmatprep.mubr.f32.mxu0 %v1525_v44 }
  0x5d   : > { %1373 = vmatmul.mubr.msk.f32.gmra.mxu1 %vm330_vm1, %v272_v5 }
  0x5e   : > { %704 = vmatprep.mubr.f32.mxu1 %v1525_v44 }
  0x5f   : > { %1356 = vmatmul.mubr.msk.f32.gmra.mxu0 %vm330_vm1, %v273_v6 }
  0x60   : > { %549 = vmatprep.mubr.f32.mxu0 %v1525_v44 }
  0x61   : > { %1374 = vmatmul.mubr.msk.f32.gmra.mxu1 %vm330_vm1, %v273_v6 }
  0x62   : > { %710 = vmatprep.mubr.f32.mxu1 %v1525_v44 }
  0x63   : > { %1357 = vmatmul.mubr.msk.f32.gmra.mxu0 %vm330_vm1, %v274_v7 }
  0x64   : > { %1451 = vmatprep.mubr.msk.f32.mxu0 %vm330_vm1, %v1740_v42 }
  0x65   : > { %1375 = vmatmul.mubr.msk.f32.gmra.mxu1 %vm330_vm1, %v274_v7 }
  0x66   : > { %1117 = vmatprep.mubr.f32.mxu1 %v1525_v44 }
  0x67   : > { %1452 = vmatmul.mubr.msk.f32.vlgmr.msra.gmra.mxu0 %vm330_vm1, %v1756_v47 }
  0x68   : > { %1454 = vmatprep.mubr.msk.f32.mxu0 %vm330_vm1, %v1771_v49 }
  0x6b   : > { %1455 = vmatmul.mubr.msk.f32.gmra.mxu0 %vm330_vm1, %v1786_v52 }
  0x6c   : > { %1457 = vmatprep.mubr.msk.f32.mxu0 %vm330_vm1, %v1801_v55 }
  0x6f   : > { %1458 = vmatmul.mubr.msk.f32.gmra.mxu0 %vm330_vm1, %v1816_v58 }
  0x70   : > { %1460 = vmatprep.mubr.msk.f32.mxu0 %vm330_vm1, %v1831_v61 }
  0x73   : > { %1461 = vmatmul.mubr.msk.f32.gmra.mxu0 %vm330_vm1, %v266_v63 }
  0x74   : > { %1463 = vmatprep.mubr.msk.f32.mxu0 %vm330_vm1, %v267_v0 }
  0x77   : > { %1464 = vmatmul.mubr.msk.f32.gmra.mxu0 %vm330_vm1, %v268_v1 }
  0x78   : > { %1466 = vmatprep.mubr.msk.f32.mxu0 %vm330_vm1, %v269_v2 }
  0x7b   : > { %1467 = vmatmul.mubr.msk.f32.gmra.mxu0 %vm330_vm1, %v270_v3 }
  0x7c   : > { %1469 = vmatprep.mubr.msk.f32.mxu0 %vm330_vm1, %v271_v4 }
  0x7f   : > { %1470 = vmatmul.mubr.msk.f32.gmra.mxu0 %vm330_vm1, %v272_v5 }
  0x80   : > { %1472 = vmatprep.mubr.msk.f32.mxu0 %vm330_vm1, %v273_v6 }
  0x83   : > { %1473 = vmatmul.mubr.msk.f32.gmra.mxu0 %vm330_vm1, %v274_v7 }
  0x84   : > { %1188 = vmatprep.mubr.f32.mxu0 %v1525_v44 }
  0xe7   : > { %v1913_v8 = vpop.f32.mrf.mxu0 }
  0xe9   : > { %v463_v11 = vpop.f32.mrf.mxu0  ;;  %v622_v12 = vpop.f32.mrf.mxu1 }
  0xea   : > { %v1936_v15 = vmul.f32 %v1918_v9, %v463_v11  ;;  %v918_v16 = vmul.f32 %v1923_v10, %v622_v12 }
  0xeb   : > { %v1939_v17 = vpop.f32.mrf.mxu0  ;;  %v624_v18 = vpop.f32.mrf.mxu1 }
  0xec   : > { %2379 = vst [vmem:[#allocation3_spill] sm:$0xff] %v1936_v15  ;;  %v902_v21 = vmul.f32 %v1928_v13, %v1936_v15  ;;  %v953_v22 = vmul.f32 %v1933_v14, %v1936_v15  ;;  %v969_v23 = vmul.f32 %v1923_v10, %v624_v18 }
  0xed   : > { %v469_v24 = vpop.f32.mrf.mxu0  ;;  %v628_v25 = vpop.f32.mrf.mxu1 }
  0xee   : > { %v1966_v28 = vadd.f32 %v918_v16, %v902_v21  ;;  %v1968_v29 = vadd.f32 %v969_v23, %v953_v22  ;;  %v1971_v30 = vmul.f32 %v1944_v19, %v469_v24  ;;  %v919_v31 = vmul.f32 %v1949_v20, %v628_v25 }
  0xef   : > { %v1974_v32 = vpop.f32.mrf.mxu0  ;;  %v630_v33 = vpop.f32.mrf.mxu1 }
  0xf0   : > { %2380 = vst [vmem:[#allocation4_spill] sm:$0xff] %v1966_v28  ;;  %2381 = vst [vmem:[#allocation5_spill] sm:$0xff] %v1968_v29  ;;  %v903_v34 = vmul.f32 %v1959_v26, %v1971_v30  ;;  %v954_v35 = vmul.f32 %v1964_v27, %v1971_v30  ;;  %v970_v36 = vmul.f32 %v1949_v20, %v630_v33 }
  0xf1   : > { %2382 = vst [vmem:[#allocation6_spill] sm:$0xff] %v1971_v30  ;;  %v475_v37 = vpop.f32.mrf.mxu0  ;;  %v634_v38 = vpop.f32.mrf.mxu1 }
  0xf2   : > { %v1981_v39 = vadd.f32 %v919_v31, %v903_v34  ;;  %v1983_v40 = vadd.f32 %v970_v36, %v954_v35  ;;  %v1986_v41 = vmul.f32 %v1918_v9, %v475_v37  ;;  %v920_v42 = vmul.f32 %v1923_v10, %v634_v38 }
  0xf3   : > { %v1989_v43 = vpop.f32.mrf.mxu0  ;;  %v636_v44 = vpop.f32.mrf.mxu1 }
  0xf4   : > { %2383 = vst [vmem:[#allocation7_spill] sm:$0xff] %v1981_v39  ;;  %2384 = vst [vmem:[#allocation8_spill] sm:$0xff] %v1983_v40  ;;  %v904_v45 = vmul.f32 %v1928_v13, %v1986_v41  ;;  %v955_v46 = vmul.f32 %v1933_v14, %v1986_v41  ;;  %v971_v47 = vmul.f32 %v1923_v10, %v636_v44 }
  0xf5   : > { %2385 = vst [vmem:[#allocation9_spill] sm:$0xff] %v1986_v41  ;;  %v481_v48 = vpop.f32.mrf.mxu0  ;;  %v640_v49 = vpop.f32.mrf.mxu1 }
  0xf6   : > { %v1996_v50 = vadd.f32 %v920_v42, %v904_v45  ;;  %v1998_v51 = vadd.f32 %v971_v47, %v955_v46  ;;  %v2001_v52 = vmul.f32 %v1944_v19, %v481_v48  ;;  %v921_v53 = vmul.f32 %v1949_v20, %v640_v49 }
  0xf7   : > { %v2004_v54 = vpop.f32.mrf.mxu0  ;;  %v642_v55 = vpop.f32.mrf.mxu1 }
  0xf8   : > { %2386 = vst [vmem:[#allocation10_spill] sm:$0xff] %v1998_v51  ;;  %2387 = vst [vmem:[#allocation11_spill] sm:$0xff] %v2001_v52  ;;  %v905_v56 = vmul.f32 %v1959_v26, %v2001_v52  ;;  %v956_v57 = vmul.f32 %v1964_v27, %v2001_v52  ;;  %v972_v58 = vmul.f32 %v1949_v20, %v642_v55 }
  0xf9   : > { %v487_v59 = vpop.f32.mrf.mxu0  ;;  %v646_v60 = vpop.f32.mrf.mxu1 }
  0xfa   : > { %v2011_v61 = vadd.f32 %v921_v53, %v905_v56  ;;  %v2013_v62 = vadd.f32 %v972_v58, %v956_v57  ;;  %v2016_v63 = vmul.f32 %v1918_v9, %v487_v59  ;;  %v922_v0 = vmul.f32 %v1923_v10, %v646_v60 }
  0xfb   : > { %v2019_v1 = vpop.f32.mrf.mxu0  ;;  %v648_v2 = vpop.f32.mrf.mxu1 }
  0xfc   : > { %2388 = vst [vmem:[#allocation12_spill] sm:$0xff] %v2013_v62  ;;  %2389 = vst [vmem:[#allocation13_spill] sm:$0xff] %v2016_v63  ;;  %v906_v3 = vmul.f32 %v1928_v13, %v2016_v63  ;;  %v957_v4 = vmul.f32 %v1933_v14, %v2016_v63  ;;  %v973_v5 = vmul.f32 %v1923_v10, %v648_v2 }
  0xfd   : > { %v2026_v6 = vpop.f32.mrf.mxu0  ;;  %v2028_v7 = vpop.f32.mrf.mxu1 }
  0xfe   : > { %v2030_v11 = vadd.f32 %v922_v0, %v906_v3  ;;  %v2032_v12 = vadd.f32 %v973_v5, %v957_v4 }
  0xff   : > { %v2034_v16 = vpop.f32.mrf.mxu0  ;;  %v2036_v18 = vpop.f32.mrf.mxu1 }
 0x100   : > { %2390 = vst [vmem:[#allocation14_spill] sm:$0xff] %v2032_v12  ;;  %2391 = vst [vmem:[#allocation15_spill] sm:$0xff] %v2036_v18 }
 0x101   : > { %v2038_v21 = vpop.f32.mrf.mxu0  ;;  %v2040_v22 = vpop.f32.mrf.mxu1 }
 0x103   : > { %v2042_v23 = vpop.f32.mrf.mxu0  ;;  %v2044_v24 = vpop.f32.mrf.mxu1 }
 0x104   : > { %2392 = vst [vmem:[#allocation16_spill] sm:$0xff] %v2044_v24 }
 0x105   : > { %v2046_v25 = vpop.f32.mrf.mxu0  ;;  %v2048_v31 = vpop.f32.mrf.mxu1 }
 0x107   : > { %v2050_v33 = vpop.f32.mrf.mxu0  ;;  %v2052_v34 = vpop.f32.mrf.mxu1 }
 0x108   : > { %2393 = vst [vmem:[#allocation17_spill] sm:$0xff] %v2052_v34 }
 0x109   : > { %v2054_v35 = vpop.f32.mrf.mxu0  ;;  %v2056_v36 = vpop.f32.mrf.mxu1 }
 0x10b   : > { %v2058_v37 = vpop.f32.mrf.mxu0  ;;  %v2060_v38 = vpop.f32.mrf.mxu1 }
 0x10c   : > { %2394 = vst [vmem:[#allocation18_spill] sm:$0xff] %v2060_v38 }
 0x10d   : > { %v517_v42 = vpop.f32.mrf.mxu0  ;;  %v2062_v44 = vpop.f32.mrf.mxu1 }
 0x10f   : > { %v2064_v45 = vpop.f32.mrf.mxu0  ;;  %v2066_v46 = vpop.f32.mrf.mxu1 }
 0x110   : > { %2395 = vst [vmem:[#allocation19_spill] sm:$0xff] %v2066_v46 }
 0x111   : > { %v523_v47 = vpop.f32.mrf.mxu0  ;;  %v682_v48 = vpop.f32.mrf.mxu1 }
 0x112   : > { %v2122_v28 = vmul.f32 %v1918_v9, %v523_v47 }
 0x113   : > { %v2068_v49 = vpop.f32.mrf.mxu0  ;;  %v2070_v53 = vpop.f32.mrf.mxu1 }
 0x114   : > { %2396 = vst [vmem:[#allocation20_spill] sm:$0xff] %v2070_v53 }
 0x115   : > { %v529_v55 = vpop.f32.mrf.mxu0  ;;  %v688_v56 = vpop.f32.mrf.mxu1 }
 0x116   : > { %v929_v47 = vmul.f32 %v1949_v20, %v688_v56 }
 0x117   : > { %v533_v57 = vpop.f32.mrf.mxu0  ;;  %v2072_v58 = vpop.f32.mrf.mxu1 }
 0x118   : > { %2397 = vst [vmem:[#allocation21_spill] sm:$0xff] %v2072_v58 }
 0x119   : > { %v535_v59 = vpop.f32.mrf.mxu0  ;;  %v694_v60 = vpop.f32.mrf.mxu1 }
 0x11a   : > { %v2093_v34 = vmul.f32 %v1918_v9, %v535_v59 }
 0x11b   : > { %v539_v0 = vpop.f32.mrf.mxu0  ;;  %v2074_v2 = vpop.f32.mrf.mxu1 }
 0x11c   : > { %2398 = vst [vmem:[#allocation22_spill] sm:$0xff] %v2074_v2  ;;  %2400 = vst [vmem:[#allocation24_spill] sm:$0xff] %v2093_v34  ;;  %v930_v2 = vmul.f32 %v1923_v10, %v694_v60 }
 0x11d   : > { %v541_v3 = vpop.f32.mrf.mxu0  ;;  %v700_v4 = vpop.f32.mrf.mxu1 }
 0x11e   : > { %v2084_v52 = vmul.f32 %v1944_v19, %v541_v3 }
 0x11f   : > { %v545_v5 = vpop.f32.mrf.mxu0  ;;  %v2076_v29 = vpop.f32.mrf.mxu1 }
 0x120   : > { %v915_v59 = vmul.f32 %v1959_v26, %v2084_v52 }
 0x121   : > { %v547_v40 = vpop.f32.mrf.mxu0  ;;  %v706_v51 = vpop.f32.mrf.mxu1 }
 0x122   : > { %v2081_v30 = vmul.f32 %v1918_v9, %v547_v40  ;;  %v932_v40 = vmul.f32 %v1923_v10, %v706_v51 }
 0x123   : > { %v551_v15 = vpop.f32.mrf.mxu0  ;;  %v2078_v62 = vpop.f32.mrf.mxu1 }
 0x124   : > { %v916_v38 = vmul.f32 %v1928_v13, %v2081_v30 }
 0x125   : > { %v553_v12 = vpop.f32.mrf.mxu0  ;;  %v712_v41 = vpop.f32.mrf.mxu1 }
 0x126   : > { %v2087_v63 = vmul.f32 %v1944_v19, %v553_v12  ;;  %v933_v18 = vmul.f32 %v1949_v20, %v712_v41  ;;  %v2105_v12 = vld [vmem:[%s2363_s0 + $0x18] sm:$0xff]  ;;  %v2108_v41 = vmul.f32 %v1944_v19, %v529_v55  ;;  %v914_v55 = vmul.f32 %v1928_v13, %v2093_v34 }
 0x127   : > { %v2090_v24 = vpop.f32.mrf.mxu0  ;;  %v883_v51 = vmul.f32 %v2105_v12, %v551_v15  ;;  %v948_v39 = vadd.f32 %v932_v40, %v916_v38  ;;  %v881_v34 = vmul.f32 %v2105_v12, %v539_v0  ;;  %v2141_v38 = vmul.f32 %v1918_v9, %v2054_v35 }
 0x128   : > { %2399 = vst [vmem:[#allocation23_spill] sm:$0xff] %v2090_v24  ;;  %v917_v46 = vmul.f32 %v1959_v26, %v2087_v63  ;;  %v931_v24 = vmul.f32 %v1949_v20, %v700_v4  ;;  %v913_v4 = vmul.f32 %v1959_v26, %v2108_v41  ;;  %v927_v0 = vmul.f32 %v1949_v20, %v2062_v44 }
 0x129   : > { %v2100_v3 = vpop.f32.mrf.mxu0 }
 0x12a   : > { %2401 = vst [vmem:[#allocation25_spill] sm:$0xff] %v2100_v3  ;;  %v949_v53 = vadd.f32 %v933_v18, %v917_v46  ;;  %v2119_v3 = vld [vmem:[%s2363_s0] sm:$0xff]  ;;  %v2131_v46 = vmul.f32 %v1944_v19, %v517_v42  ;;  %v912_v42 = vmul.f32 %v1928_v13, %v2122_v28  ;;  %v945_v40 = vadd.f32 %v929_v47, %v913_v4 }
 0x12b   : > { %v2114_v58 = vpop.f32.mrf.mxu0  ;;  %v882_v18 = vmul.f32 %v2119_v3, %v545_v5  ;;  %v946_v5 = vadd.f32 %v930_v2, %v914_v55  ;;  %v880_v56 = vmul.f32 %v2119_v3, %v533_v57  ;;  %v926_v57 = vmul.f32 %v1923_v10, %v2056_v36 }
 0x12c   : > { %2402 = vst [vmem:[#allocation26_spill] sm:$0xff] %v2114_v58  ;;  %1053 = vmatprep.subr.mxu1 %v949_v53  ;;  %v947_v58 = vadd.f32 %v931_v24, %v915_v59  ;;  %v928_v53 = vmul.f32 %v1923_v10, %v682_v48  ;;  %v911_v35 = vmul.f32 %v1959_v26, %v2131_v46 }
 0x12d   : > { %v2128_v15 = vpop.f32.mrf.mxu0  ;;  %1054 = vmatpush1.msra.mxu1 %v883_v51  ;;  %v879_v48 = vmul.f32 %v2105_v12, %v2068_v49  ;;  %v878_v44 = vmul.f32 %v2119_v3, %v2064_v45  ;;  %v2175_v49 = vmul.f32 %v1944_v19, %v2026_v6  ;;  %v877_v36 = vmul.f32 %v2105_v12, %v2058_v37 }
 0x12e   : > { %1055 = vmatprep.subr.mxu1 %v948_v39  ;;  %v2151_v39 = vmul.f32 %v1944_v19, %v2046_v25  ;;  %v910_v25 = vmul.f32 %v1928_v13, %v2141_v38  ;;  %v944_v2 = vadd.f32 %v928_v53, %v912_v42  ;;  %v943_v51 = vadd.f32 %v927_v0, %v911_v35 }
 0x12f   : > { %v2137_v60 = vpop.f32.mrf.mxu0  ;;  %1056 = vmatpush1.msra.mxu1 %v882_v18  ;;  %v924_v19 = vmul.f32 %v1923_v10, %v2040_v22  ;;  %v876_v18 = vmul.f32 %v2119_v3, %v2050_v33  ;;  %v907_v37 = vmul.f32 %v1959_v26, %v2175_v49  ;;  %v923_v4 = vmul.f32 %v1949_v20, %v2028_v7 }
 0x130   : > { %1057 = vmatprep.subr.mxu1 %v947_v58  ;;  %v942_v6 = vadd.f32 %v926_v57, %v910_v25  ;;  %v874_v33 = vmul.f32 %v2119_v3, %v2034_v16  ;;  %v871_v16 = vmul.f32 %v2105_v12, %v1989_v43  ;;  %v968_v0 = vmul.f32 %v1964_v27, %v2087_v63 }
 0x131   : > { %v2147_v24 = vpop.f32.mrf.mxu0  ;;  %1058 = vmatpush1.msra.mxu1 %v881_v34  ;;  %v2163_v34 = vmul.f32 %v1918_v9, %v2038_v21  ;;  %v909_v9 = vmul.f32 %v1959_v26, %v2151_v39  ;;  %v925_v21 = vmul.f32 %v1949_v20, %v2048_v31  ;;  %v873_v26 = vmul.f32 %v2105_v12, %v2019_v1  ;;  %v2214_v1 = vld [vmem:[%s2364_s1 + $0x28] sm:$0xff] }
 0x132   : > { %1059 = vmatprep.subr.mxu1 %v946_v5  ;;  %v939_v5 = vadd.f32 %v923_v4, %v907_v37  ;;  %v868_v43 = vmul.f32 %v2119_v3, %v1913_v8  ;;  %v870_v25 = vmul.f32 %v2119_v3, %v1974_v32  ;;  %v967_v57 = vmul.f32 %v1933_v14, %v2081_v30 }
 0x133   : > { %v2159_v58 = vpop.f32.mrf.mxu0  ;;  %1060 = vmatpush1.msra.mxu1 %v880_v56  ;;  %v908_v45 = vmul.f32 %v1928_v13, %v2163_v34  ;;  %v941_v47 = vadd.f32 %v925_v21, %v909_v9  ;;  %v875_v13 = vmul.f32 %v2105_v12, %v2042_v23  ;;  %v714_v56 = vpop.f32.mrf.mxu1  ;;  %v872_v23 = vmul.f32 %v2119_v3, %v2004_v54 }
 0x134   : > { %1061 = vmatprep.subr.mxu1 %v945_v40  ;;  %v984_v40 = vmul.f32 %v1949_v20, %v714_v56  ;;  %v1019_v54 = vmul.f32 %v2214_v1, %v2087_v63  ;;  %v2231_v63 = vld [vmem:[%s2364_s1 + $0x20] sm:$0xff]  ;;  %v966_v3 = vmul.f32 %v1964_v27, %v2084_v52  ;;  %v982_v21 = vmul.f32 %v1949_v20, %v2076_v29 }
 0x135   : > { %v2171_v59 = vpop.f32.mrf.mxu0  ;;  %1062 = vmatpush1.msra.mxu1 %v879_v48  ;;  %v940_v42 = vadd.f32 %v924_v19, %v908_v45  ;;  %v1018_v8 = vmul.f32 %v2231_v63, %v2081_v30  ;;  %v2403_v19 = vld [vmem:[#allocation7_spill] sm:$0xff]  ;;  %v2255_v29 = vld [vmem:[%s2367_s4] sm:$0xff]  ;;  %v963_v56 = vmul.f32 %v1933_v14, %v2122_v28 }
 0x136   : > { %1063 = vmatprep.subr.mxu1 %v944_v2  ;;  %v983_v2 = vmul.f32 %v1923_v10, %v2078_v62  ;;  %v869_v62 = vmul.f32 %v2105_v12, %v1939_v17  ;;  %v2405_v12 = vld [vmem:[#allocation22_spill] sm:$0xff] }
 0x137   : > { %v2183_v55 = vpop.f32.mrf.mxu0  ;;  %1064 = vmatpush1.msra.mxu1 %v878_v44 }
 0x138   : > { %1065 = vmatprep.subr.mxu1 %v943_v51  ;;  %v1000_v51 = vadd.f32 %v984_v40, %v968_v0  ;;  %v1029_v0 = vmul.f32 %v2183_v55, %v1949_v20 }
 0x139   : > { %v2191_v31 = vpop.f32.mrf.mxu0  ;;  %1066 = vmatpush1.msra.mxu1 %v877_v36  ;;  %v1017_v36 = vmul.f32 %v2214_v1, %v2084_v52 }
 0x13a   : > { %1067 = vmatprep.subr.mxu1 %v942_v6  ;;  %v981_v6 = vmul.f32 %v1923_v10, %v2405_v12  ;;  %v1009_v12 = vmul.f32 %v2214_v1, %v2175_v49 }
 0x13b   : > { %v1468_v22 = vpop.f32.mrf.mxu0  ;;  %1068 = vmatpush1.msra.mxu1 %v876_v18  ;;  %v999_v18 = vadd.f32 %v983_v2, %v967_v57  ;;  %v2410_v57 = vld [vmem:[#allocation18_spill] sm:$0xff] }
 0x13c   : > { %1069 = vmatprep.subr.mxu1 %v941_v47  ;;  %v1031_v52 = vmul.f32 %v1468_v22, %v1949_v20  ;;  %v2406_v47 = vld [vmem:[#allocation4_spill] sm:$0xff]  ;;  %v977_v2 = vmul.f32 %v1923_v10, %v2410_v57 }
 0x13d   : > { %v833_v53 = vpop.f32.mrf.mxu0  ;;  %1070 = vmatpush1.msra.mxu1 %v875_v13  ;;  %v964_v13 = vmul.f32 %v1964_v27, %v2108_v41 }
 0x13e   : > { %1071 = vmatprep.subr.mxu1 %v940_v42  ;;  %v2407_v42 = vld [vmem:[#allocation21_spill] sm:$0xff]  ;;  %v1030_v22 = vmul.f32 %v1923_v10, %v833_v53  ;;  %v962_v53 = vmul.f32 %v1964_v27, %v2131_v46 }
 0x13f   : > { %v1471_v7 = vpop.f32.mrf.mxu0  ;;  %1072 = vmatpush1.msra.mxu1 %v874_v33  ;;  %v980_v33 = vmul.f32 %v1949_v20, %v2407_v42 }
 0x140   : > { %1073 = vmatprep.subr.mxu1 %v939_v5  ;;  %v998_v5 = vadd.f32 %v982_v21, %v966_v3  ;;  %v1011_v3 = vmul.f32 %v2214_v1, %v2151_v39  ;;  %v1026_v21 = vmul.f32 %v1923_v10, %v2171_v59  ;;  %v958_v59 = vmul.f32 %v1964_v27, %v2175_v49 }
 0x141   : > { %v843_v35 = vpop.f32.mrf.mxu0  ;;  %1074 = vmatpush1.msra.mxu1 %v873_v26  ;;  %v1015_v26 = vmul.f32 %v2214_v1, %v2108_v41  ;;  %v1014_v41 = vmul.f32 %v2231_v63, %v2122_v28  ;;  %v961_v28 = vmul.f32 %v1933_v14, %v2141_v38 }
 0x142   : > { %1075 = vmatprep.subr.mxu1 %v2030_v11  ;;  %v1032_v30 = vmul.f32 %v1923_v10, %v843_v35 }
 0x143   : > { %v1474_v48 = vpop.f32.mrf.mxu0  ;;  %1076 = vmatpush1.msra.mxu1 %v872_v23  ;;  %v2408_v23 = vld [vmem:[#allocation20_spill] sm:$0xff]  ;;  %v1047_v40 = vadd.f32 %v1031_v52, %v1015_v26  ;;  %v1046_v55 = vadd.f32 %v1030_v22, %v1014_v41  ;;  %v2418_v22 = vld [vmem:[#allocation9_spill] sm:$0xff]  ;;  %v2423_v41 = vld [vmem:[#allocation3_spill] sm:$0xff] }
 0x144   : > { %v1035_v11 = vmul.f32 %v1474_v48, %v1949_v20  ;;  %1077 = vmatprep.subr.mxu1 %v2011_v61  ;;  %v1033_v61 = vmul.f32 %v1471_v7, %v1949_v20  ;;  %v979_v35 = vmul.f32 %v1923_v10, %v2408_v23  ;;  %v2409_v48 = vld [vmem:[#allocation19_spill] sm:$0xff]  ;;  %v2420_v23 = vld [vmem:[#allocation6_spill] sm:$0xff] }
 0x145   : > { %v853_v44 = vpop.f32.mrf.mxu0  ;;  %1078 = vmatpush1.msra.mxu1 %v871_v16 }
 0x146   : > { %v1051_v9 = vadd.f32 %v1035_v11, %v1019_v54  ;;  %v1034_v32 = vmul.f32 %v1923_v10, %v853_v44  ;;  %1079 = vmatprep.subr.mxu1 %v1996_v50  ;;  %v2404_v50 = vld [vmem:[#allocation24_spill] sm:$0xff]  ;;  %v1049_v37 = vadd.f32 %v1033_v61, %v1017_v36  ;;  %v978_v54 = vmul.f32 %v1949_v20, %v2409_v48  ;;  %v2424_v48 = vld [vmem:[#allocation10_spill] sm:$0xff] }
 0x147   : > { %1080 = vmatpush1.msra.mxu1 %v870_v25  ;;  %v965_v17 = vmul.f32 %v1933_v14, %v2404_v50  ;;  %v1016_v4 = vmul.f32 %v2231_v63, %v2404_v50  ;;  %v996_v11 = vadd.f32 %v980_v33, %v964_v13  ;;  %v1028_v25 = vmul.f32 %v1923_v10, %v2191_v31  ;;  %v2413_v50 = vld [vmem:[#allocation15_spill] sm:$0xff] }
 0x148   : > { %v1050_v45 = vadd.f32 %v1034_v32, %v1018_v8  ;;  %1081 = vmatprep.subr.mxu1 %v2403_v19  ;;  %1124 = vmatprep.subr.mxu0 %v1051_v9  ;;  %v995_v44 = vadd.f32 %v979_v35, %v963_v56  ;;  %v1027_v61 = vmul.f32 %v2159_v58, %v1949_v20  ;;  %v2411_v8 = vld [vmem:[#allocation17_spill] sm:$0xff]  ;;  %v2416_v13 = vld [vmem:[#allocation11_spill] sm:$0xff]  ;;  %v2419_v56 = vld [vmem:[#allocation14_spill] sm:$0xff] }
 0x149   : > { %1082 = vmatpush1.msra.mxu1 %v869_v62  ;;  %1125 = vmatpush1.msra.mxu0 %v1000_v51  ;;  %v1048_v7 = vadd.f32 %v1032_v30, %v1016_v4  ;;  %v997_v16 = vadd.f32 %v981_v6, %v965_v17  ;;  %v960_v31 = vmul.f32 %v1964_v27, %v2151_v39  ;;  %v2412_v51 = vld [vmem:[#allocation16_spill] sm:$0xff]  ;;  %v2415_v27 = vld [vmem:[#allocation13_spill] sm:$0xff]  ;;  %v2417_v33 = vld [vmem:[#allocation23_spill] sm:$0xff] }
 0x14a   : > { %1083 = vmatprep.subr.mxu1 %v2406_v47  ;;  %1126 = vmatprep.subr.mxu0 %v1050_v45  ;;  %v976_v32 = vmul.f32 %v1949_v20, %v2411_v8  ;;  %v994_v62 = vadd.f32 %v978_v54, %v962_v53  ;;  %v975_v36 = vmul.f32 %v1923_v10, %v2412_v51 }
 0x14b   : > { %1084 = vmatpush1.msra.mxu1 %v868_v43  ;;  %1127 = vmatpush1.msra.mxu0 %v999_v18  ;;  %v1013_v43 = vmul.f32 %v2214_v1, %v2131_v46  ;;  %v1012_v46 = vmul.f32 %v2231_v63, %v2141_v38  ;;  %v959_v38 = vmul.f32 %v1933_v14, %v2163_v34 }
 0x14c   : > { %1128 = vmatprep.subr.mxu0 %v1049_v37  ;;  %1118 = vmatmul.mubr.f32.vlgmr.msra.gmra.mxu1 %v2255_v29  ;;  %v993_v30 = vadd.f32 %v977_v2, %v961_v28  ;;  %v1025_v45 = vmul.f32 %v2137_v60, %v1949_v20  ;;  %v1043_v19 = vadd.f32 %v1027_v61, %v1011_v3 }
 0x14d   : > { %1129 = vmatpush1.msra.mxu0 %v998_v5  ;;  %v1045_v9 = vadd.f32 %v1029_v0, %v1013_v43  ;;  %v1044_v58 = vadd.f32 %v1028_v25, %v1012_v46  ;;  %v1010_v39 = vmul.f32 %v2231_v63, %v2163_v34  ;;  %v974_v17 = vmul.f32 %v1949_v20, %v2413_v50  ;;  %v2414_v34 = vld [vmem:[#allocation26_spill] sm:$0xff] }
 0x14e   : > { %1130 = vmatprep.subr.mxu0 %v1048_v7  ;;  %v992_v14 = vadd.f32 %v976_v32, %v960_v31  ;;  %v1024_v6 = vmul.f32 %v1923_v10, %v2147_v24  ;;  %v991_v18 = vadd.f32 %v975_v36, %v959_v38  ;;  %v1023_v52 = vmul.f32 %v2414_v34, %v1949_v20 }
 0x14f   : > { %1131 = vmatpush1.msra.mxu0 %v997_v16  ;;  %v1042_v60 = vadd.f32 %v1026_v21, %v1010_v39  ;;  %v1041_v37 = vadd.f32 %v1025_v45, %v1009_v12  ;;  %v1008_v4 = vmul.f32 %v2231_v63, %v2415_v27  ;;  %v990_v47 = vadd.f32 %v974_v17, %v958_v59  ;;  %v2421_v16 = vld [vmem:[#allocation25_spill] sm:$0xff] }
 0x150   : > { %1132 = vmatprep.subr.mxu0 %v1047_v40  ;;  %v1007_v49 = vmul.f32 %v2214_v1, %v2416_v13  ;;  %v1022_v24 = vmul.f32 %v1923_v10, %v2128_v15  ;;  %v1021_v5 = vmul.f32 %v2417_v33, %v1949_v20  ;;  %v1006_v7 = vmul.f32 %v2231_v63, %v2418_v22  ;;  %v2422_v40 = vld [vmem:[#allocation12_spill] sm:$0xff] }
 0x151   : > { %1133 = vmatpush1.msra.mxu0 %v996_v11  ;;  %v1040_v42 = vadd.f32 %v1024_v6, %v1008_v4  ;;  %v1005_v35 = vmul.f32 %v2214_v1, %v2420_v23  ;;  %v1020_v15 = vmul.f32 %v1923_v10, %v2421_v16  ;;  %v1004_v53 = vmul.f32 %v2231_v63, %v2423_v41  ;;  %v2425_v11 = vld [vmem:[#allocation8_spill] sm:$0xff]  ;;  %v2426_v1 = vld [vmem:[#allocation5_spill] sm:$0xff] }
 0x152   : > { %1134 = vmatprep.subr.mxu0 %v1046_v55  ;;  %v1039_v26 = vadd.f32 %v1023_v52, %v1007_v49  ;;  %v1038_v0 = vadd.f32 %v1022_v24, %v1006_v7 }
 0x153   : > { %1135 = vmatpush1.msra.mxu0 %v995_v44  ;;  %v1037_v20 = vadd.f32 %v1021_v5, %v1005_v35  ;;  %v1036_v54 = vadd.f32 %v1020_v15, %v1004_v53 }
 0x154   : > { %1136 = vmatprep.subr.mxu0 %v1045_v9 }
 0x155   : > { %1137 = vmatpush1.msra.mxu0 %v994_v62 }
 0x156   : > { %1138 = vmatprep.subr.mxu0 %v1044_v58 }
 0x157   : > { %1139 = vmatpush1.msra.mxu0 %v993_v30 }
 0x158   : > { %1140 = vmatprep.subr.mxu0 %v1043_v19 }
 0x159   : > { %1141 = vmatpush1.msra.mxu0 %v992_v14 }
 0x15a   : > { %1142 = vmatprep.subr.mxu0 %v1042_v60 }
 0x15b   : > { %1143 = vmatpush1.msra.mxu0 %v991_v18 }
 0x15c   : > { %1144 = vmatprep.subr.mxu0 %v1041_v37 }
 0x15d   : > { %1145 = vmatpush1.msra.mxu0 %v990_v47 }
 0x15e   : > { %1146 = vmatprep.subr.mxu0 %v1040_v42 }
 0x15f   : > { %1147 = vmatpush1.msra.mxu0 %v2419_v56 }
 0x160   : > { %1148 = vmatprep.subr.mxu0 %v1039_v26 }
 0x161   : > { %1149 = vmatpush1.msra.mxu0 %v2422_v40 }
 0x162   : > { %1150 = vmatprep.subr.mxu0 %v1038_v0 }
 0x163   : > { %1151 = vmatpush1.msra.mxu0 %v2424_v48 }
 0x164   : > { %1152 = vmatprep.subr.mxu0 %v1037_v20 }
 0x165   : > { %1153 = vmatpush1.msra.mxu0 %v2425_v11 }
 0x166   : > { %1154 = vmatprep.subr.mxu0 %v1036_v54 }
 0x167   : > { %1155 = vmatpush1.msra.mxu0 %v2426_v1 }
 0x168   : > { %1189 = vmatmul.mubr.f32.vlgmr.msra.gmra.mxu0 %v2255_v29 }
 0x20c   : > { %v1119_v10 = vpop.f32.mrf.mxu1 }
 0x20d   : > { %1195 = vst [vmem:[%s258_s10] sm:$0xff] %v1119_v10 }
 0x20e   : > { %v1121_v63 = vpop.f32.mrf.mxu1 }
 0x20f   : > { %1196 = vst [vmem:[%s248_s14] sm:$0xff] %v1121_v63 }
 0x216   : > { %v1249_v29 = vld [vmem:[%s248_s14] sm:$0xff] (%p1586_p4) }
 0x217   : > { %1250 = vst [vmem:[%s1216_s19] sm:$0xff] (%p1586_p4), %v1249_v29 }
 0x227   : > { %1214 = sbr.rel (!%p1586_p4) target bundleno = 564 (0x234), region = 48 }
 0x228   : > { %v1190_v43 = vpop.f32.mrf.mxu0 }
 0x229   : > { %1397 = vst [vmem:[%s248_s14 + $0x8] sm:$0xff] %v1190_v43 }
 0x22a   : > { %v1192_v25 = vpop.f32.mrf.mxu0 }
 0x22b   : > { %1398 = vst [vmem:[%s248_s14 + $0x10] sm:$0xff] %v1192_v25 }
 0x230   : > { %v1251_v55 = vld [vmem:[%s248_s14 + $0x8] sm:$0xff] }
 0x231   : > { %1252 = vst [vmem:[%s1216_s19 + $0x10] sm:$0xff] %v1251_v55 }
 0x232   : > { %v1253_v28 = vld [vmem:[%s248_s14 + $0x10] sm:$0xff] }
 0x233   : > { %1254 = vst [vmem:[%s1216_s19 + $0x20] sm:$0xff] %v1253_v28 }
 0x234 PF: > { %p14_p9 = scmp.ge.s32.totalorder %s1576_s25, 4   ;;  %s2427_s21 = smov %s1519_s22 }
 0x235   : > { %s2428_s22 = smov %s1584_s28  ;;  %s2429_s23 = smov %s1576_s25 }
 0x236   :  { %16 = sbr.rel (!%p14_p9) target bundleno = 2 (0x2), region = 124 }

// kernel: painn_forward.19
= control target key start
LH: loop header
LB: loop body
LE: loop exit
PB: predicated region body
PF: predicated region fallthrough
CT: control target
= control target key end

     0   :  { %s616_s20 = smov 0   ;;  %s745_s0 = inlined_call_operand.vmem [shape: f32[16,128], index: 0, kind: input, shape index: {}]   ;;  %s746_s1 = inlined_call_operand.vmem [shape: f32[128,64], index: 1, kind: input, shape index: {}]   ;;  %s747_s2 = inlined_call_operand.vmem [shape: f32[1,64], index: 2, kind: input, shape index: {}]   ;;  %s748_s3 = inlined_call_operand.vmem [shape: f32[64,1], index: 3, kind: input, shape index: {}]   ;;  %s749_s4 = inlined_call_operand.<no memory space> [shape: f32[1,1], index: 4, kind: input, shape index: {}]   ;;  %s750_s5 = inlined_call_operand.vmem [shape: f32[16,1], index: 5, kind: output, shape index: {}]  }
   0x1   :  { %v10_v0 = vstv %s749_s4 }
   0x2   :  { %11 = vst [vmem:[#allocation2] sm:$0x1] %v10_v0 }
   0x3 LB: > { %s467_s21 = sadd.s32 4294967295, %s579_s20   ;;  %p471_p0 = scmp.ge.s32.totalorder %s579_s20, 1  ;;  %s579_s20 = sphi %s616_s20, %s17_s20  }
   0x4   : > { %p188_p1 = scmp.lt.s32.totalorder %s579_s20, 3 }
   0x6   : > { %p189_p2 = pnand %p471_p0, %p188_p1 }
   0x7   : > { %p214_p3 = scmp.lt.s32.totalorder (!%p189_p2), %s467_s21, 1 }
   0x8   : > { %192 = sbr.rel (%p189_p2) target bundleno = 473 (0x1d9), region = 40 }
   0xd   : > { %v238_v1 = vld [vmem:[%s746_s1 + $0x78] sm:$0xff]  ;;  %v581_v2 = vmov 0.0   ;;  %v237_v3 = vld [vmem:[%s746_s1 + $0x70] sm:$0xff]  ;;  %vm582_vm0 = vmmov 0   ;;  %v236_v4 = vld [vmem:[%s746_s1 + $0x68] sm:$0xff]  ;;  %s752_s21 = smov (!%p214_p3, %s467_s21), 1 }
   0xe   : > { %505 = vmatprep.subr.mxu0 %v581_v2  ;;  %537 = vmatprep.mubr.msk.f32.mxu0 %vm582_vm0, %v581_v2  ;;  %v235_v5 = vld [vmem:[%s746_s1 + $0x60] sm:$0xff]  ;;  %v234_v6 = vld [vmem:[%s746_s1 + $0x58] sm:$0xff]  ;;  %v233_v7 = vld [vmem:[%s746_s1 + $0x50] sm:$0xff]  ;;  %s472_s4 = sshll.u32 %s752_s21, 3  ;;  %vm338_vm1 = vcmask 523264   ;;  %vm412_vm2 = vcmask 7168  }
   0xf   : > { %506 = vmatpush3.msra.mxu0 %v238_v1  ;;  %540 = vmatprep.subr.mxu1 %v581_v2  ;;  %v232_v8 = vld [vmem:[%s746_s1 + $0x48] sm:$0xff]  ;;  %v231_v9 = vld [vmem:[%s746_s1 + $0x40] sm:$0xff]  ;;  %v230_v10 = vld [vmem:[%s746_s1 + $0x38] sm:$0xff]  ;;  %s217_s30 = scalar_lea.vmem %s745_s0, %s472_s4 }
  0x10   : > { %507 = vmatprep.subr.mxu0 %v581_v2  ;;  %556 = vmatprep.mubr.msk.f32.mxu1 %vm582_vm0, %v581_v2  ;;  %v229_v11 = vld [vmem:[%s746_s1 + $0x30] sm:$0xff]  ;;  %v228_v12 = vld [vmem:[%s746_s1 + $0x28] sm:$0xff]  ;;  %v227_v13 = vld [vmem:[%s746_s1 + $0x20] sm:$0xff] }
  0x11   : > { %508 = vmatpush3.msra.mxu0 %v237_v3  ;;  %v226_v14 = vld [vmem:[%s746_s1 + $0x18] sm:$0xff]  ;;  %v225_v15 = vld [vmem:[%s746_s1 + $0x10] sm:$0xff]  ;;  %v224_v16 = vld [vmem:[%s746_s1 + $0x8] sm:$0xff] }
  0x12   : > { %509 = vmatprep.subr.mxu0 %v581_v2  ;;  %v223_v17 = vld [vmem:[%s746_s1] sm:$0xff]  ;;  %v330_v19 = vld [vmem:[%s748_s3 + $0x38] sm:$0xff]  ;;  %v329_v20 = vld [vmem:[%s748_s3 + $0x30] sm:$0xff] }
  0x13   : > { %510 = vmatpush3.msra.mxu0 %v236_v4  ;;  %v222_v18 = vld [vmem:[%s217_s30] sm:$0xff]  ;;  %541 = vmatpush3.msra.mxu1 %v330_v19  ;;  %v328_v21 = vld [vmem:[%s748_s3 + $0x28] sm:$0xff]  ;;  %v326_v23 = vld [vmem:[%s748_s3 + $0x18] sm:$0xff]  ;;  %s221_s30 = scalar_lea.vmem %s750_s5, %s472_s4 }
  0x14   : > { %511 = vmatprep.subr.mxu0 %v581_v2  ;;  %542 = vmatprep.subr.mxu1 %v581_v2  ;;  %v327_v22 = vld [vmem:[%s748_s3 + $0x20] sm:$0xff]  ;;  %v325_v24 = vld [vmem:[%s748_s3 + $0x10] sm:$0xff]  ;;  %v324_v25 = vld [vmem:[%s748_s3 + $0x8] sm:$0xff] }
  0x15   : > { %512 = vmatpush3.msra.mxu0 %v235_v5  ;;  %543 = vmatpush3.msra.mxu1 %v329_v20  ;;  %v323_v26 = vld [vmem:[%s748_s3] sm:$0xff] }
  0x16   : > { %513 = vmatprep.subr.mxu0 %v581_v2  ;;  %544 = vmatprep.subr.mxu1 %v581_v2  ;;  %v474_v27 = vld [vmem:[%s747_s2] ss:$0 sm:$0xff] }
  0x17   : > { %514 = vmatpush3.msra.mxu0 %v234_v6  ;;  %545 = vmatpush3.msra.mxu1 %v328_v21  ;;  %v475_v37 = vld [vmem:[#allocation2] ss:$0 sm:$0xff] }
  0x18   : > { %515 = vmatprep.subr.mxu0 %v581_v2  ;;  %546 = vmatprep.subr.mxu1 %v581_v2 }
  0x19   : > { %516 = vmatpush3.msra.mxu0 %v233_v7  ;;  %547 = vmatpush3.msra.mxu1 %v327_v22 }
  0x1a   : > { %517 = vmatprep.subr.mxu0 %v581_v2  ;;  %548 = vmatprep.subr.mxu1 %v581_v2 }
  0x1b   : > { %518 = vmatpush3.msra.mxu0 %v232_v8  ;;  %549 = vmatpush3.msra.mxu1 %v326_v23 }
  0x1c   : > { %519 = vmatprep.subr.mxu0 %v581_v2  ;;  %550 = vmatprep.subr.mxu1 %v581_v2 }
  0x1d   : > { %520 = vmatpush3.msra.mxu0 %v231_v9  ;;  %551 = vmatpush3.msra.mxu1 %v325_v24 }
  0x1e   : > { %521 = vmatprep.subr.mxu0 %v581_v2  ;;  %552 = vmatprep.subr.mxu1 %v581_v2 }
  0x1f   : > { %522 = vmatpush3.msra.mxu0 %v230_v10  ;;  %553 = vmatpush3.msra.mxu1 %v324_v25 }
  0x20   : > { %523 = vmatprep.subr.mxu0 %v581_v2  ;;  %554 = vmatprep.subr.mxu1 %v581_v2 }
  0x21   : > { %524 = vmatpush3.msra.mxu0 %v229_v11  ;;  %555 = vmatpush3.msra.mxu1 %v323_v26 }
  0x22   : > { %525 = vmatprep.subr.mxu0 %v581_v2 }
  0x23   : > { %526 = vmatpush3.msra.mxu0 %v228_v12 }
  0x24   : > { %527 = vmatprep.subr.mxu0 %v581_v2 }
  0x25   : > { %528 = vmatpush3.msra.mxu0 %v227_v13 }
  0x26   : > { %529 = vmatprep.subr.mxu0 %v581_v2 }
  0x27   : > { %530 = vmatpush3.msra.mxu0 %v226_v14 }
  0x28   : > { %531 = vmatprep.subr.mxu0 %v581_v2 }
  0x29   : > { %532 = vmatpush3.msra.mxu0 %v225_v15 }
  0x2a   : > { %533 = vmatprep.subr.mxu0 %v581_v2 }
  0x2b   : > { %534 = vmatpush3.msra.mxu0 %v224_v16 }
  0x2c   : > { %535 = vmatprep.subr.mxu0 %v581_v2 }
  0x2d   : > { %536 = vmatpush3.msra.mxu0 %v223_v17 }
  0x2e   : > { %538 = vmatmul.mubr.f32.vlgmr.msra.gmra.mxu0 %v222_v18 }
  0xee   : > { %v312_v28 = vpop.f32.mrf.mxu0 }
  0xef   : > { %v313_v29 = vadd.f32 %v474_v27, %v312_v28 }
  0xf0   : > { %v539_v30 = vpop.f32.mrf.mxu0 }
  0xf1   : > { %v316_v31 = vsub.f32 0.0, %v313_v29 }
  0xf3   : > { %v317_v32 = vmul.f32 1.442695, %v316_v31 }
  0xf5   : > { %569 = vpow2.f32 %v317_v32 }
 0x102   : > { %v570_v33 = vpop.eup %569 }
 0x103   : > { %v319_v34 = vadd.f32 1.0, %v570_v33 }
 0x105   : > { %571 = vrcp.f32 %v319_v34 }
 0x112   : > { %v572_v35 = vpop.eup %571 }
 0x113   : > { %v322_v36 = vmul.f32 %v572_v35, %v313_v29 }
 0x115   : > { %557 = vmatmul.mubr.msk.f32.vlgmr.msra.gmra.mxu1 %vm338_vm1, %v322_v36 }
 0x1d5   : > { %v408_v38 = vpop.f32.mrf.mxu1 }
 0x1d6   : > { %v409_v39 = vadd.f32 %v475_v37, %v408_v38 }
 0x1d7   : > { %v558_v40 = vpop.f32.mrf.mxu1 }
 0x1d8   : > { %413 = vst.msk [vmem:[%s221_s30] sm:$0xff] %vm412_vm2, %v409_v39 }
 0x1d9 PF: > { %s17_s20 = sadd.s32 1, %s579_s20  }
 0x1da   : > { %p14_p4 = scmp.ge.s32.totalorder %s17_s20, 4  }
 0x1dc   :  { %16 = sbr.rel (!%p14_p4) target bundleno = 3 (0x3), region = 70 }

// kernel: painn_forward.18
= control target key start
LH: loop header
LB: loop body
LE: loop exit
PB: predicated region body
PF: predicated region fallthrough
CT: control target
= control target key end

     0   :  { %14 = vsyncpa [#allocation4], 0  ;;  %s1933_s0 = inlined_call_operand.vmem [shape: f32[16,128], index: 0, kind: input, shape index: {}]   ;;  %s1934_s1 = inlined_call_operand.vmem [shape: f32[3,16,128], index: 1, kind: input, shape index: {}]   ;;  %s1935_s2 = inlined_call_operand.vmem [shape: f32[128,256], index: 2, kind: input, shape index: {}]   ;;  %s1936_s3 = inlined_call_operand.vmem [shape: f32[256,128], index: 3, kind: input, shape index: {}]   ;;  %s1937_s4 = inlined_call_operand.vmem [shape: f32[1,128], index: 4, kind: input, shape index: {}]   ;;  %s1938_s5 = inlined_call_operand.vmem [shape: f32[128,384], index: 5, kind: input, shape index: {}]   ;;  %s1939_s6 = inlined_call_operand.vmem [shape: f32[1,384], index: 6, kind: input, shape index: {}]   ;;  %s1940_s7 = inlined_call_operand.vmem [shape: f32[16,128], index: 7, kind: output, shape index: {0}]   ;;  %s1941_s8 = inlined_call_operand.hbm [shape: f32[3,16,128], index: 8, kind: output, shape index: {1}]  }
   0x1   :  { %16 = vsyncpa [#allocation4 + $0x1], 0  ;;  %s1378_s27 = smov 0   ;;  %s1380_s28 = smov 0  }
   0x2   :  { %s1382_s29 = smov 0   ;;  %s1384_s30 = smov 0  }
   0x3 LB: > { %s1399_s9 = sadd.s32 4294967295, %s1325_s30   ;;  %s1042_s10 = sadd.s32 4294967294, %s1325_s30   ;;  %s1325_s30 = sphi %s1384_s30, %s1947_s30   ;;  %s1321_s29 = sphi %s1382_s29, %s1946_s29   ;;  %s1317_s28 = sphi %s1380_s28, %s1945_s28   ;;  %s1313_s27 = sphi %s1378_s27, %s1944_s27  }
   0x4   : > { %s1403_s11 = sadd.s32 1, %s1325_s30   ;;  %s55_s12 = sadd.s32 1, %s1321_s29 }
   0x5   : > { %s52_s13 = ssub.s32 %s1325_s30, %s1403_s11  ;;  %p62_p0 = scmp.ne.s32.totalorder %s1321_s29, %s1317_s28 }
   0x6   : > { %p53_p1 = scmp.eq.s32.totalorder %s52_s13, 0  ;;  %p63_p2 = scmp.eq.s32.totalorder %s1325_s30, 0 }
   0x7   : > { %p223_p3 = scmp.eq.s32.totalorder %s1399_s9, 1  ;;  %p228_p4 = scmp.ne.s32.totalorder %s1317_s28, %s1313_s27 }
   0x8   : > { %s1415_s14 = scalar_select %p53_p1, %s1321_s29, %s55_s12  }
   0x9   : > { %p64_p5 = por %p63_p2, %p62_p0  ;;  %p1417_p6 = por %p223_p3, %p62_p0 }
   0xa   : > { %p229_p7 = scmp.eq.s32.totalorder %s1042_s10, 1  ;;  %p1044_p9 = scmp.ge.s32.totalorder %s1325_s30, 2 }
   0xc   : > { %p1421_p8 = por %p229_p7, %p228_p4  ;;  %260 = sbr.rel (%p1044_p9) target bundleno = 23 (0x17), region = 36 }
  0x11   : > { %270 = sbr.rel (!%p64_p5) target bundleno = 23 (0x17), region = 44  ;;  %s272_s17 = sand.u32 (%p64_p5), 1, %s1321_s29  }
  0x12   : > { %s1045_s18 = sshll.u32 (%p64_p5), %s1325_s30, 3  ;;  %s1213_s19 = smul.u32 (%p64_p5), 24, %s272_s17 }
  0x13   : > { %s276_s22 = scalar_lea.vmem (%p64_p5), %s1934_s1, %s1045_s18 }
  0x14   : > { %v309_v0 = vld [vmem:[%s276_s22] sm:$0xff] (%p64_p5)  ;;  %v311_v1 = vld [vmem:[%s276_s22 + $0x10] sm:$0xff] (%p64_p5)  ;;  %s274_s23 = scalar_lea.vmem (%p64_p5), [#allocation2], %s1213_s19 }
  0x15   : > { %v313_v2 = vld [vmem:[%s276_s22 + $0x20] sm:$0xff] (%p64_p5)  ;;  %310 = vst [vmem:[%s274_s23] sm:$0xff] (%p64_p5), %v309_v0  ;;  %312 = vst [vmem:[%s274_s23 + $0x8] sm:$0xff] (%p64_p5), %v311_v1 }
  0x16   : > { %314 = vst [vmem:[%s274_s23 + $0x10] sm:$0xff] %v313_v2 }
  0x17 PF: > { %p1046_p10 = scmp.ge.s32.totalorder %s1325_s30, 1  ;;  %p319_p11 = scmp.lt.s32.totalorder %s1325_s30, 3 }
  0x19   : > { %p320_p12 = pnand %p1046_p10, %p319_p11 }
  0x1a   : > { %s326_s18 = sand.u32 (!%p320_p12), 1, %s1317_s28   ;;  %p367_p13 = scmp.lt.s32.totalorder (!%p320_p12), %s1399_s9, 1 }
  0x1b   : > { %323 = sbr.rel (%p320_p12) target bundleno = 745 (0x2e9), region = 82  ;;  %s1054_s26 = sshll.u32 (!%p320_p12), %s1399_s9, 7 }
  0x1c   : > { %s1518_s25 = smul.u32 (!%p320_p12), 24, %s326_s18  ;;  %s1877_s13 = scalar_lea.hbm (!%p320_p12), %s1941_s8, %s1054_s26 }
  0x1d   : > { %s1891_s21 = scalar_lea.sflag (!%p320_p12), [#allocation4], %s326_s18  ;;  %s1329_s26 = smov (!%p320_p12), [#allocation3]  }
  0x1e   : > { %s328_s10 = scalar_lea.vmem (!%p320_p12), [#allocation2], %s1518_s25  ;;  %s366_s23 = scalar_lea.vmem (!%p320_p12), [#allocation3], %s1518_s25 }
  0x1f   : > { %s1269_s25 = sshll.u32 (!%p320_p12), %s1329_s26, 4  ;;  %s1270_s25 = int_to_ptr.vmem [resolvable:$false] %s1269_s25 }
  0x20   : > { %v412_v3 = vld [vmem:[%s1935_s2 + $0xf8] sm:$0xff]  ;;  %v411_v4 = vld [vmem:[%s1935_s2 + $0xf0] sm:$0xff]  ;;  %v410_v5 = vld [vmem:[%s1935_s2 + $0xe8] sm:$0xff]  ;;  %v1327_v7 = vmov 0.0   ;;  %s1634_s17 = scalar_select %p367_p13, %s1399_s9, 1  ;;  %vm1328_vm0 = vmmov 0  }
  0x21   : > { %413 = vmatprep.subr.mxu0 %v412_v3  ;;  %v409_v6 = vld [vmem:[%s1935_s2 + $0xe0] sm:$0xff]  ;;  %477 = vmatprep.mubr.f32.mxu0 %v1327_v7  ;;  %v408_v8 = vld [vmem:[%s1935_s2 + $0xd8] sm:$0xff]  ;;  %v407_v9 = vld [vmem:[%s1935_s2 + $0xd0] sm:$0xff] }
  0x22   : > { %414 = vmatpush1.msra.mxu0 %v411_v4  ;;  %1108 = vmatprep.subr.mxu1 %v1327_v7  ;;  %v406_v10 = vld [vmem:[%s1935_s2 + $0xc8] sm:$0xff]  ;;  %v405_v11 = vld [vmem:[%s1935_s2 + $0xc0] sm:$0xff]  ;;  %v404_v12 = vld [vmem:[%s1935_s2 + $0xb8] sm:$0xff]  ;;  %s1047_s12 = sshll.u32 %s1634_s17, 3 }
  0x23   : > { %415 = vmatprep.subr.mxu0 %v410_v5  ;;  %v403_v13 = vld [vmem:[%s1935_s2 + $0xb0] sm:$0xff]  ;;  %v402_v14 = vld [vmem:[%s1935_s2 + $0xa8] sm:$0xff]  ;;  %v401_v15 = vld [vmem:[%s1935_s2 + $0xa0] sm:$0xff]  ;;  %s370_s24 = scalar_lea.vmem %s1933_s0, %s1047_s12  ;;  %1140 = vmatprep.mubr.msk.f32.mxu1 %vm1328_vm0, %v1327_v7  ;;  %s1887_s20 = scalar_lea.vmem %s1940_s7, %s1047_s12 }
  0x24   : > { %416 = vmatpush1.msra.mxu0 %v409_v6  ;;  %v400_v16 = vld [vmem:[%s1935_s2 + $0x98] sm:$0xff]  ;;  %v399_v17 = vld [vmem:[%s1935_s2 + $0x90] sm:$0xff]  ;;  %v398_v18 = vld [vmem:[%s1935_s2 + $0x88] sm:$0xff] }
  0x25   : > { %417 = vmatprep.subr.mxu0 %v408_v8  ;;  %v397_v19 = vld [vmem:[%s1935_s2 + $0x80] sm:$0xff]  ;;  %v396_v20 = vld [vmem:[%s1935_s2 + $0x78] sm:$0xff]  ;;  %v395_v21 = vld [vmem:[%s1935_s2 + $0x70] sm:$0xff] }
  0x26   : > { %418 = vmatpush1.msra.mxu0 %v407_v9  ;;  %v394_v22 = vld [vmem:[%s1935_s2 + $0x68] sm:$0xff]  ;;  %v393_v23 = vld [vmem:[%s1935_s2 + $0x60] sm:$0xff]  ;;  %v392_v24 = vld [vmem:[%s1935_s2 + $0x58] sm:$0xff] }
  0x27   : > { %419 = vmatprep.subr.mxu0 %v406_v10  ;;  %v391_v25 = vld [vmem:[%s1935_s2 + $0x50] sm:$0xff]  ;;  %v390_v26 = vld [vmem:[%s1935_s2 + $0x48] sm:$0xff]  ;;  %v389_v27 = vld [vmem:[%s1935_s2 + $0x40] sm:$0xff] }
  0x28   : > { %420 = vmatpush1.msra.mxu0 %v405_v11  ;;  %v388_v28 = vld [vmem:[%s1935_s2 + $0x38] sm:$0xff]  ;;  %v387_v29 = vld [vmem:[%s1935_s2 + $0x30] sm:$0xff]  ;;  %v386_v30 = vld [vmem:[%s1935_s2 + $0x28] sm:$0xff] }
  0x29   : > { %421 = vmatprep.subr.mxu0 %v404_v12  ;;  %v385_v31 = vld [vmem:[%s1935_s2 + $0x20] sm:$0xff]  ;;  %v384_v32 = vld [vmem:[%s1935_s2 + $0x18] sm:$0xff]  ;;  %v383_v33 = vld [vmem:[%s1935_s2 + $0x10] sm:$0xff] }
  0x2a   : > { %422 = vmatpush1.msra.mxu0 %v403_v13  ;;  %v382_v34 = vld [vmem:[%s1935_s2 + $0x8] sm:$0xff]  ;;  %v381_v35 = vld [vmem:[%s1935_s2] sm:$0xff]  ;;  %v524_v39 = vld [vmem:[%s1936_s3 + $0x78] sm:$0xff] }
  0x2b   : > { %423 = vmatprep.subr.mxu0 %v402_v14  ;;  %v376_v36 = vld [vmem:[%s328_s10] sm:$0xff]  ;;  %v1049_v37 = vld [vmem:[%s328_s10 + $0x8] sm:$0xff]  ;;  %v1050_v38 = vld [vmem:[%s328_s10 + $0x10] sm:$0xff] }
  0x2c   : > { %424 = vmatpush1.msra.mxu0 %v401_v15  ;;  %v540_v40 = vld [vmem:[%s1936_s3 + $0xf8] sm:$0xff]  ;;  %v523_v41 = vld [vmem:[%s1936_s3 + $0x70] sm:$0xff]  ;;  %v522_v43 = vld [vmem:[%s1936_s3 + $0x68] sm:$0xff] }
  0x2d   : > { %425 = vmatprep.subr.mxu0 %v400_v16  ;;  %1109 = vmatpush3.msra.mxu1 %v540_v40  ;;  %v539_v42 = vld [vmem:[%s1936_s3 + $0xf0] sm:$0xff]  ;;  %v538_v44 = vld [vmem:[%s1936_s3 + $0xe8] sm:$0xff]  ;;  %v521_v45 = vld [vmem:[%s1936_s3 + $0x60] sm:$0xff] }
  0x2e   : > { %426 = vmatpush1.msra.mxu0 %v399_v17  ;;  %1110 = vmatprep.subr.mxu1 %v1327_v7  ;;  %v537_v46 = vld [vmem:[%s1936_s3 + $0xe0] sm:$0xff]  ;;  %v520_v47 = vld [vmem:[%s1936_s3 + $0x58] sm:$0xff]  ;;  %v519_v49 = vld [vmem:[%s1936_s3 + $0x50] sm:$0xff] }
  0x2f   : > { %427 = vmatprep.subr.mxu0 %v398_v18  ;;  %1111 = vmatpush3.msra.mxu1 %v539_v42  ;;  %v536_v48 = vld [vmem:[%s1936_s3 + $0xd8] sm:$0xff]  ;;  %v535_v50 = vld [vmem:[%s1936_s3 + $0xd0] sm:$0xff]  ;;  %v518_v51 = vld [vmem:[%s1936_s3 + $0x48] sm:$0xff] }
  0x30   : > { %428 = vmatpush1.msra.mxu0 %v397_v19  ;;  %1112 = vmatprep.subr.mxu1 %v1327_v7  ;;  %v534_v52 = vld [vmem:[%s1936_s3 + $0xc8] sm:$0xff]  ;;  %v517_v53 = vld [vmem:[%s1936_s3 + $0x40] sm:$0xff]  ;;  %v516_v55 = vld [vmem:[%s1936_s3 + $0x38] sm:$0xff] }
  0x31   : > { %429 = vmatprep.subr.mxu0 %v396_v20  ;;  %1113 = vmatpush3.msra.mxu1 %v538_v44  ;;  %v533_v54 = vld [vmem:[%s1936_s3 + $0xc0] sm:$0xff]  ;;  %v532_v56 = vld [vmem:[%s1936_s3 + $0xb8] sm:$0xff]  ;;  %v515_v57 = vld [vmem:[%s1936_s3 + $0x30] sm:$0xff] }
  0x32   : > { %430 = vmatpush1.msra.mxu0 %v395_v21  ;;  %1114 = vmatprep.subr.mxu1 %v1327_v7  ;;  %v531_v58 = vld [vmem:[%s1936_s3 + $0xb0] sm:$0xff]  ;;  %v514_v59 = vld [vmem:[%s1936_s3 + $0x28] sm:$0xff]  ;;  %v513_v61 = vld [vmem:[%s1936_s3 + $0x20] sm:$0xff] }
  0x33   : > { %431 = vmatprep.subr.mxu0 %v394_v22  ;;  %1115 = vmatpush3.msra.mxu1 %v537_v46  ;;  %v530_v60 = vld [vmem:[%s1936_s3 + $0xa8] sm:$0xff]  ;;  %v529_v62 = vld [vmem:[%s1936_s3 + $0xa0] sm:$0xff]  ;;  %v512_v63 = vld [vmem:[%s1936_s3 + $0x18] sm:$0xff] }
  0x34   : > { %432 = vmatpush1.msra.mxu0 %v393_v23  ;;  %1116 = vmatprep.subr.mxu1 %v1327_v7  ;;  %v528_v0 = vld [vmem:[%s1936_s3 + $0x98] sm:$0xff]  ;;  %v511_v1 = vld [vmem:[%s1936_s3 + $0x10] sm:$0xff]  ;;  %v510_v3 = vld [vmem:[%s1936_s3 + $0x8] sm:$0xff] }
  0x35   : > { %433 = vmatprep.subr.mxu0 %v392_v24  ;;  %1117 = vmatpush3.msra.mxu1 %v536_v48  ;;  %v527_v2 = vld [vmem:[%s1936_s3 + $0x90] sm:$0xff]  ;;  %v526_v4 = vld [vmem:[%s1936_s3 + $0x88] sm:$0xff]  ;;  %v509_v5 = vld [vmem:[%s1936_s3] sm:$0xff] }
  0x36   : > { %434 = vmatpush1.msra.mxu0 %v391_v25  ;;  %1118 = vmatprep.subr.mxu1 %v1327_v7  ;;  %v375_v6 = vld [vmem:[%s370_s24] sm:$0xff]  ;;  %v733_v40 = vld [vmem:[%s1938_s5 + $0x128] sm:$0xff]  ;;  %v734_v42 = vld [vmem:[%s1938_s5 + $0x130] sm:$0xff]  ;;  %s938_s24 = sshll.u32 %s366_s23, 4  ;;  %s1871_s24 = int_to_ptr.vmem [resolvable:$true] %s938_s24 }
  0x37   : > { %435 = vmatprep.subr.mxu0 %v390_v26  ;;  %1119 = vmatpush3.msra.mxu1 %v535_v50  ;;  %v525_v8 = vld [vmem:[%s1936_s3 + $0x80] sm:$0xff]  ;;  %v729_v44 = vld [vmem:[%s1938_s5 + $0x108] sm:$0xff]  ;;  %v727_v46 = vld [vmem:[%s1938_s5 + $0xf8] sm:$0xff]  ;;  %s1265_s22 = scalar_lea.vmem %s1871_s24, 384  ;;  %p1272_p3 = scmp.lt.s32.totalorder %s1871_s24, %s1270_s25 }
  0x38   : > { %436 = vmatpush1.msra.mxu0 %v389_v27  ;;  %1120 = vmatprep.subr.mxu1 %v1327_v7  ;;  %v728_v48 = vld [vmem:[%s1938_s5 + $0x100] sm:$0xff]  ;;  %v723_v50 = vld [vmem:[%s1938_s5 + $0xd8] sm:$0xff]  ;;  %p1266_p0 = scmp.ne.s32.totalorder %s1871_s24, %s1265_s22 }
  0x39   : > { %437 = vmatprep.subr.mxu0 %v388_v28  ;;  %1121 = vmatpush3.msra.mxu1 %v534_v52  ;;  %v721_v52 = vld [vmem:[%s1938_s5 + $0xc8] sm:$0xff] }
  0x3a   : > { %438 = vmatpush1.msra.mxu0 %v387_v29  ;;  %1122 = vmatprep.subr.mxu1 %v1327_v7  ;;  %p1267_p1 = pnand %p1266_p0, %p1417_p6 }
  0x3b   : > { %439 = vmatprep.subr.mxu0 %v386_v30  ;;  %1123 = vmatpush3.msra.mxu1 %v533_v54  ;;  %v722_v54 = vld [vmem:[%s1938_s5 + $0xd0] sm:$0xff] }
  0x3c   : > { %440 = vmatpush1.msra.mxu0 %v385_v31  ;;  %1124 = vmatprep.subr.mxu1 %v1327_v7  ;;  %v742_v31 = vld [vmem:[%s1938_s5 + $0x170] sm:$0xff]  ;;  %p1268_p2 = pneg %p1267_p1 }
  0x3d   : > { %441 = vmatprep.subr.mxu0 %v384_v32  ;;  %1125 = vmatpush3.msra.mxu1 %v532_v56  ;;  %v741_v32 = vld [vmem:[%s1938_s5 + $0x168] sm:$0xff] }
  0x3e   : > { %442 = vmatpush1.msra.mxu0 %v383_v33  ;;  %1126 = vmatprep.subr.mxu1 %v1327_v7  ;;  %v743_v33 = vld [vmem:[%s1938_s5 + $0x178] sm:$0xff]  ;;  %v717_v56 = vld [vmem:[%s1938_s5 + $0xa8] sm:$0xff] }
  0x3f   : > { %443 = vmatprep.subr.mxu0 %v382_v34  ;;  %1127 = vmatpush3.msra.mxu1 %v531_v58  ;;  %v739_v34 = vld [vmem:[%s1938_s5 + $0x158] sm:$0xff] }
  0x40   : > { %444 = vmatpush1.msra.mxu0 %v381_v35  ;;  %1128 = vmatprep.subr.mxu1 %v1327_v7  ;;  %v738_v35 = vld [vmem:[%s1938_s5 + $0x150] sm:$0xff]  ;;  %v715_v58 = vld [vmem:[%s1938_s5 + $0x98] sm:$0xff] }
  0x41   : > { %478 = vmatmul.mubr.f32.vlgmr.msra.gmra.mxu0 %v376_v36  ;;  %1143 = vmatprep.subr.mxu0 %v1327_v7  ;;  %v740_v36 = vld [vmem:[%s1938_s5 + $0x160] sm:$0xff] }
  0x42   : > { %483 = vmatprep.mubr.f32.mxu0 %v1327_v7  ;;  %1144 = vmatpush3.msra.mxu0 %v524_v39  ;;  %v737_v39 = vld [vmem:[%s1938_s5 + $0x148] sm:$0xff] }
  0x43   : > { %1145 = vmatprep.subr.mxu0 %v1327_v7  ;;  %1129 = vmatpush3.msra.mxu1 %v530_v60  ;;  %v716_v60 = vld [vmem:[%s1938_s5 + $0xa0] sm:$0xff] }
  0x44   : > { %1146 = vmatpush3.msra.mxu0 %v523_v41  ;;  %1130 = vmatprep.subr.mxu1 %v1327_v7  ;;  %v732_v41 = vld [vmem:[%s1938_s5 + $0x120] sm:$0xff] }
  0x45   : > { %484 = vmatmul.mubr.f32.gmra.mxu0 %v1049_v37  ;;  %1147 = vmatprep.subr.mxu0 %v1327_v7  ;;  %v736_v37 = vld [vmem:[%s1938_s5 + $0x140] sm:$0xff] }
  0x46   : > { %489 = vmatprep.mubr.f32.mxu0 %v1327_v7  ;;  %1148 = vmatpush3.msra.mxu0 %v522_v43  ;;  %v730_v43 = vld [vmem:[%s1938_s5 + $0x110] sm:$0xff] }
  0x47   : > { %1149 = vmatprep.subr.mxu0 %v1327_v7  ;;  %1131 = vmatpush3.msra.mxu1 %v529_v62  ;;  %v711_v62 = vld [vmem:[%s1938_s5 + $0x78] sm:$0xff] }
  0x48   : > { %1150 = vmatpush3.msra.mxu0 %v521_v45  ;;  %1132 = vmatprep.subr.mxu1 %v1327_v7  ;;  %v731_v45 = vld [vmem:[%s1938_s5 + $0x118] sm:$0xff] }
  0x49   : > { %490 = vmatmul.mubr.f32.gmra.mxu0 %v1050_v38  ;;  %1151 = vmatprep.subr.mxu0 %v1327_v7  ;;  %v735_v38 = vld [vmem:[%s1938_s5 + $0x138] sm:$0xff] }
  0x4a   : > { %1152 = vmatpush3.msra.mxu0 %v520_v47  ;;  %1133 = vmatpush3.msra.mxu1 %v528_v0  ;;  %v726_v47 = vld [vmem:[%s1938_s5 + $0xf0] sm:$0xff]  ;;  %v709_v0 = vld [vmem:[%s1938_s5 + $0x68] sm:$0xff] }
  0x4b   : > { %1153 = vmatprep.subr.mxu0 %v1327_v7  ;;  %1134 = vmatprep.subr.mxu1 %v1327_v7 }
  0x4c   : > { %1154 = vmatpush3.msra.mxu0 %v519_v49  ;;  %1135 = vmatpush3.msra.mxu1 %v527_v2  ;;  %v724_v49 = vld [vmem:[%s1938_s5 + $0xe0] sm:$0xff]  ;;  %v710_v2 = vld [vmem:[%s1938_s5 + $0x70] sm:$0xff] }
  0x4d   : > { %1155 = vmatprep.subr.mxu0 %v1327_v7  ;;  %1136 = vmatprep.subr.mxu1 %v1327_v7 }
  0x4e   : > { %1156 = vmatpush3.msra.mxu0 %v518_v51  ;;  %1137 = vmatpush3.msra.mxu1 %v526_v4  ;;  %v725_v51 = vld [vmem:[%s1938_s5 + $0xe8] sm:$0xff] }
  0x4f   : > { %1157 = vmatprep.subr.mxu0 %v1327_v7  ;;  %1175 = vmatprep.mubr.msk.f32.mxu0 %vm1328_vm0, %v1327_v7  ;;  %v705_v4 = vld [vmem:[%s1938_s5 + $0x48] sm:$0xff] }
  0x50   : > { %1158 = vmatpush3.msra.mxu0 %v517_v53  ;;  %1138 = vmatprep.subr.mxu1 %v1327_v7  ;;  %v720_v53 = vld [vmem:[%s1938_s5 + $0xc0] sm:$0xff] }
  0x51   : > { %1159 = vmatprep.subr.mxu0 %v1327_v7  ;;  %1139 = vmatpush3.msra.mxu1 %v525_v8  ;;  %v702_v8 = vld [vmem:[%s1938_s5 + $0x30] sm:$0xff] }
  0x52   : > { %1160 = vmatpush3.msra.mxu0 %v516_v55  ;;  %761 = vmatprep.subr.mxu1 %v742_v31  ;;  %v718_v55 = vld [vmem:[%s1938_s5 + $0xb0] sm:$0xff] }
  0x53   : > { %1161 = vmatprep.subr.mxu0 %v1327_v7 }
  0x54   : > { %1162 = vmatpush3.msra.mxu0 %v515_v57  ;;  %v719_v57 = vld [vmem:[%s1938_s5 + $0xb8] sm:$0xff] }
  0x55   : > { %1163 = vmatprep.subr.mxu0 %v1327_v7 }
  0x56   : > { %1164 = vmatpush3.msra.mxu0 %v514_v59  ;;  %v714_v59 = vld [vmem:[%s1938_s5 + $0x90] sm:$0xff] }
  0x57   : > { %1165 = vmatprep.subr.mxu0 %v1327_v7 }
  0x58   : > { %1166 = vmatpush3.msra.mxu0 %v513_v61  ;;  %v712_v61 = vld [vmem:[%s1938_s5 + $0x80] sm:$0xff] }
  0x59   : > { %1167 = vmatprep.subr.mxu0 %v1327_v7 }
  0x5a   : > { %1168 = vmatpush3.msra.mxu0 %v512_v63  ;;  %v713_v63 = vld [vmem:[%s1938_s5 + $0x88] sm:$0xff] }
  0x5b   : > { %1169 = vmatprep.subr.mxu0 %v1327_v7 }
  0x5c   : > { %1170 = vmatpush3.msra.mxu0 %v511_v1  ;;  %v708_v1 = vld [vmem:[%s1938_s5 + $0x60] sm:$0xff] }
  0x5d   : > { %1171 = vmatprep.subr.mxu0 %v1327_v7 }
  0x5e   : > { %1172 = vmatpush3.msra.mxu0 %v510_v3  ;;  %v706_v3 = vld [vmem:[%s1938_s5 + $0x50] sm:$0xff] }
  0x5f   : > { %1173 = vmatprep.subr.mxu0 %v1327_v7 }
  0x60   : > { %1174 = vmatpush3.msra.mxu0 %v509_v5  ;;  %v707_v5 = vld [vmem:[%s1938_s5 + $0x58] sm:$0xff] }
  0x61   : > { %1176 = vmatmul.mubr.f32.vlgmr.msra.gmra.mxu0 %v375_v6  ;;  %1178 = vmatprep.subr.mxu0 %v1327_v7  ;;  %v703_v6 = vld [vmem:[%s1938_s5 + $0x38] sm:$0xff] }
  0x62   : > { %1210 = vmatprep.mubr.msk.f32.mxu0 %vm1328_vm0, %v1327_v7  ;;  %1179 = vmatpush3.msra.mxu0 %v743_v33 }
  0x63   : > { %1180 = vmatprep.subr.mxu0 %v1327_v7 }
  0x64   : > { %1181 = vmatpush3.msra.mxu0 %v740_v36 }
  0x65   : > { %1182 = vmatprep.subr.mxu0 %v1327_v7 }
  0x66   : > { %1183 = vmatpush3.msra.mxu0 %v737_v39 }
  0x67   : > { %1184 = vmatprep.subr.mxu0 %v1327_v7 }
  0x68   : > { %1185 = vmatpush3.msra.mxu0 %v734_v42 }
  0x69   : > { %1186 = vmatprep.subr.mxu0 %v1327_v7 }
  0x6a   : > { %1187 = vmatpush3.msra.mxu0 %v731_v45 }
  0x6b   : > { %1188 = vmatprep.subr.mxu0 %v1327_v7 }
  0x6c   : > { %1189 = vmatpush3.msra.mxu0 %v728_v48 }
  0x6d   : > { %1190 = vmatprep.subr.mxu0 %v1327_v7 }
  0x6e   : > { %1191 = vmatpush3.msra.mxu0 %v725_v51 }
  0x6f   : > { %1192 = vmatprep.subr.mxu0 %v1327_v7 }
  0x70   : > { %1193 = vmatpush3.msra.mxu0 %v722_v54 }
  0x71   : > { %1194 = vmatprep.subr.mxu0 %v1327_v7 }
  0x72   : > { %1195 = vmatpush3.msra.mxu0 %v719_v57 }
  0x73   : > { %1196 = vmatprep.subr.mxu0 %v1327_v7 }
  0x74   : > { %1197 = vmatpush3.msra.mxu0 %v716_v60 }
  0x75   : > { %1198 = vmatprep.subr.mxu0 %v1327_v7 }
  0x76   : > { %1199 = vmatpush3.msra.mxu0 %v713_v63 }
  0x77   : > { %1200 = vmatprep.subr.mxu0 %v1327_v7 }
  0x78   : > { %1201 = vmatpush3.msra.mxu0 %v710_v2 }
  0x79   : > { %1202 = vmatprep.subr.mxu0 %v1327_v7 }
  0x7a   : > { %1203 = vmatpush3.msra.mxu0 %v707_v5 }
  0x7b   : > { %1204 = vmatprep.subr.mxu0 %v1327_v7 }
 0x101   : > { %v1684_v9 = vpop.f32.mrf.mxu0 }
 0x103   : > { %v481_v10 = vpop.f32.mrf.mxu0 }
 0x104   : > { %v902_v13 = vmul.f32 %v481_v10, %v1684_v9  ;;  %v496_v17 = vmul.f32 %v481_v10, %v481_v10  ;;  %v704_v10 = vld [vmem:[%s1938_s5 + $0x40] sm:$0xff] }
 0x105   : > { %v1686_v11 = vpop.f32.mrf.mxu0  ;;  %1205 = vmatpush3.msra.mxu0 %v704_v10 }
 0x106   : > { %1206 = vmatprep.subr.mxu0 %v1327_v7 }
 0x107   : > { %v487_v12 = vpop.f32.mrf.mxu0 }
 0x108   : > { %v497_v14 = vmul.f32 %v487_v12, %v487_v12  ;;  %v903_v15 = vmul.f32 %v487_v12, %v1686_v11  ;;  %v700_v12 = vld [vmem:[%s1938_s5 + $0x20] sm:$0xff] }
 0x109   : > { %v1690_v16 = vpop.f32.mrf.mxu0 }
 0x10a   : > { %v1692_v18 = vadd.f32 %v903_v15, %v902_v13  ;;  %v498_v20 = vadd.f32 %v497_v14, %v496_v17  ;;  %v699_v13 = vld [vmem:[%s1938_s5 + $0x18] sm:$0xff]  ;;  %v701_v14 = vld [vmem:[%s1938_s5 + $0x28] sm:$0xff]  ;;  %v696_v17 = vld [vmem:[%s1938_s5] sm:$0xff] }
 0x10b   : > { %v1694_v19 = vpop.f32.mrf.mxu0  ;;  %1207 = vmatpush3.msra.mxu0 %v701_v14  ;;  %v697_v15 = vld [vmem:[%s1938_s5 + $0x8] sm:$0xff] }
 0x10c   : > { %v499_v21 = vmul.f32 %v1694_v19, %v1694_v19  ;;  %1208 = vmatprep.subr.mxu0 %v1327_v7 }
 0x10e   : > { %v500_v22 = vadd.f32 %v499_v21, %v498_v20  ;;  %v698_v20 = vld [vmem:[%s1938_s5 + $0x10] sm:$0xff] }
 0x10f   : > { %1209 = vmatpush3.msra.mxu0 %v698_v20 }
 0x110   : > { %v501_v23 = vadd.f32 1e-08, %v500_v22  ;;  %v1051_v22 = vld [vmem:[%s1937_s4] ss:$0 sm:$0xff] }
 0x112   : > { %1259 = vrsqrt.f32 %v501_v23  ;;  %vm504_vm1 = vcmp.eq.f32.partialorder %v501_v23, inf  ;;  %v507_v26 = vand.u32 2147483648, %v501_v23  ;;  %vm506_vm2 = vcmp.eq.f32.partialorder %v501_v23, 0.0 }
 0x11f   : > { %v1260_v24 = vpop.eup %1259 }
 0x120   : > { %v503_v25 = vmul.f32 %v1260_v24, %v501_v23 }
 0x121   : > { %v1699_v29 = vpop.f32.mrf.mxu0 }
 0x122   : > { %v505_v27 = vsel %vm504_vm1, %v501_v23, %v503_v25 }
 0x123   : > { %v508_v28 = vsel %vm506_vm2, %v507_v26, %v505_v27  ;;  %v1177_v30 = vpop.f32.mrf.mxu0 }
 0x124   : > { %1141 = vmatmul.mubr.f32.vlgmr.msra.gmra.mxu1 %v508_v28 }
 0x125   : > { %825 = vmatprep.mubr.f32.mxu1 %v1327_v7  ;;  %762 = vmatpush1.msra.mxu1 %v741_v32  ;;  %v746_v32 = vlaneseq }
 0x126   : > { %763 = vmatprep.subr.mxu1 %v739_v34 }
 0x127   : > { %764 = vmatpush1.msra.mxu1 %v738_v35  ;;  %v747_v33 = vshrl.u32 %v746_v32, 7 }
 0x128   : > { %765 = vmatprep.subr.mxu1 %v736_v37 }
 0x129   : > { %766 = vmatpush1.msra.mxu1 %v735_v38  ;;  %v748_v34 = vsub.s32 0, %v747_v33  ;;  %v752_v35 = vsub.s32 1, %v747_v33  ;;  %v756_v37 = vsub.s32 2, %v747_v33  ;;  %v905_v38 = vmul.f32 %v1694_v19, %v1690_v16 }
 0x12a   : > { %767 = vmatprep.subr.mxu1 %v733_v40 }
 0x12b   : > { %768 = vmatpush1.msra.mxu1 %v732_v41 }
 0x12c   : > { %769 = vmatprep.subr.mxu1 %v730_v43 }
 0x12d   : > { %770 = vmatpush1.msra.mxu1 %v729_v44  ;;  %v906_v44 = vadd.f32 %v905_v38, %v1692_v18 }
 0x12e   : > { %771 = vmatprep.subr.mxu1 %v727_v46 }
 0x12f   : > { %772 = vmatpush1.msra.mxu1 %v726_v47 }
 0x130   : > { %773 = vmatprep.subr.mxu1 %v724_v49 }
 0x131   : > { %774 = vmatpush1.msra.mxu1 %v723_v50 }
 0x132   : > { %775 = vmatprep.subr.mxu1 %v721_v52 }
 0x133   : > { %776 = vmatpush1.msra.mxu1 %v720_v53 }
 0x134   : > { %777 = vmatprep.subr.mxu1 %v718_v55 }
 0x135   : > { %778 = vmatpush1.msra.mxu1 %v717_v56 }
 0x136   : > { %779 = vmatprep.subr.mxu1 %v715_v58 }
 0x137   : > { %780 = vmatpush1.msra.mxu1 %v714_v59 }
 0x138   : > { %781 = vmatprep.subr.mxu1 %v712_v61 }
 0x139   : > { %782 = vmatpush1.msra.mxu1 %v711_v62 }
 0x13a   : > { %783 = vmatprep.subr.mxu1 %v709_v0 }
 0x13b   : > { %784 = vmatpush1.msra.mxu1 %v708_v1 }
 0x13c   : > { %785 = vmatprep.subr.mxu1 %v706_v3 }
 0x13d   : > { %786 = vmatpush1.msra.mxu1 %v705_v4 }
 0x13e   : > { %787 = vmatprep.subr.mxu1 %v703_v6 }
 0x13f   : > { %788 = vmatpush1.msra.mxu1 %v702_v8 }
 0x140   : > { %789 = vmatprep.subr.mxu1 %v700_v12 }
 0x141   : > { %790 = vmatpush1.msra.mxu1 %v699_v13 }
 0x142   : > { %791 = vmatprep.subr.mxu1 %v697_v15 }
 0x143   : > { %792 = vmatpush1.msra.mxu1 %v696_v17 }
 0x1e4   : > { %v607_v21 = vpop.f32.mrf.mxu1 }
 0x1e5   : > { %v678_v23 = vadd.f32 %v1699_v29, %v607_v21  ;;  %v744_v29 = vld [vmem:[%s1939_s6] sm:$0x7] }
 0x1e6   : > { %v1142_v24 = vpop.f32.mrf.mxu1  ;;  %v749_v36 = vrot.slane %v744_v29, %v748_v34  ;;  %v753_v39 = vrot.slane %v744_v29, %v752_v35  ;;  %v757_v43 = vrot.slane %v744_v29, %v756_v37 }
 0x1e7   : > { %v688_v25 = vadd.f32 %v1051_v22, %v678_v23 }
 0x1e9   : > { %v689_v7 = vsub.f32 0.0, %v688_v25 }
 0x1eb   : > { %v690_v26 = vmul.f32 1.442695, %v689_v7 }
 0x1ed   : > { %1261 = vpow2.f32 %v690_v26 }
 0x1fa   : > { %v1262_v27 = vpop.eup %1261 }
 0x1fb   : > { %v692_v28 = vadd.f32 1.0, %v1262_v27 }
 0x1fd   : > { %1263 = vrcp.f32 %v692_v28 }
 0x20a   : > { %v1264_v30 = vpop.eup %1263 }
 0x20b   : > { %v695_v31 = vmul.f32 %v1264_v30, %v688_v25 }
 0x20d   : > { %826 = vmatmul.mubr.f32.vlgmr.msra.gmra.mxu1 %v695_v31  ;;  %1211 = vmatmul.mubr.f32.vlgmr.msra.gmra.mxu0 %v695_v31 }
 0x2cd   : > { %v827_v40 = vpop.f32.mrf.mxu1  ;;  %v898_v41 = vpop.f32.mrf.mxu0 }
 0x2ce   : > { %v828_v42 = vadd.f32 %v827_v40, %v749_v36  ;;  %v899_v18 = vadd.f32 %v898_v41, %v757_v43 }
 0x2cf   : > { %v829_v45 = vpop.f32.mrf.mxu1  ;;  %v1212_v46 = vpop.f32.mrf.mxu0 }
 0x2d0   : > { %v910_v19 = vmul.f32 %v828_v42, %v1684_v9  ;;  %v912_v47 = vmul.f32 %v828_v42, %v1686_v11  ;;  %v915_v48 = vmul.f32 %v828_v42, %v1690_v16  ;;  %v830_v49 = vadd.f32 %v829_v45, %v753_v39 }
 0x2d2   : > { %911 = vst [vmem:[%s366_s23] sm:$0xff] %v910_v19  ;;  %1052 = vst [vmem:[%s366_s23 + $0x8] sm:$0xff] %v912_v47  ;;  %v907_v50 = vmul.f32 %v906_v44, %v830_v49 }
 0x2d3   : > { %1053 = vst [vmem:[%s366_s23 + $0x10] sm:$0xff] %v915_v48  ;;  %s1271_s23 = scalar_lea.vmem %s1270_s25, 768 }
 0x2d4   : > { %p1273_p4 = scmp.lt.s32.totalorder %s1271_s23, %s1265_s22 }
 0x2d6   : > { %p1274_p5 = por %p1273_p4, %p1272_p3 }
 0x2d8   : > { %p1275_p7 = pnand %p1274_p5, %p1268_p2 }
 0x2da   : > { %1278 = shalt.err (!%p1275_p7)
}
 0x2db   : > { %s1279_s18 = scalar_lea.hbm %s1877_s13, 384  ;;  %s1283_s10 = scalar_lea.hbm %s1941_s8, 768 }
 0x2dc   : > { %p1280_p10 = scmp.ne.s32.totalorder %s1877_s13, %s1279_s18  ;;  %p1284_p13 = scmp.lt.s32.totalorder %s1877_s13, %s1941_s8 }
 0x2dd   : > { %p1285_p0 = scmp.lt.s32.totalorder %s1283_s10, %s1279_s18 }
 0x2de   : > { %p1281_p11 = pnand %p1280_p10, %p1417_p6 }
 0x2df   : > { %p1286_p1 = por %p1285_p0, %p1284_p13 }
 0x2e0   : > { %p1282_p12 = pneg %p1281_p11 }
 0x2e2   : > { %p1287_p2 = pnand %p1286_p1, %p1282_p12 }
 0x2e4   : > { %1290 = shalt.err (!%p1287_p2)
}
 0x2e5   : > { %s1330_s22 = smov 128   ;;  %s1331_s26 = smov 256   ;;  %v908_v9 = vadd.f32 %v907_v50, %v899_v18 }
 0x2e6   : > { %s1332_s25 = smov 8  }
 0x2e7   : > { %1215 = dma.vmem_to_hbm [thread:$0]  (%p1417_p6), %s1871_s24, 384, %s1877_s13, %s1891_s21, %s1330_s22, %s1331_s26, %s1332_s25  }
 0x2e8   : > { %909 = vst [vmem:[%s1887_s20] sm:$0xff] %v908_v9 }
 0x2e9 PF: > { %s960_s23 = sand.u32 1, %s1313_s27   ;;  %p1218_p3 = pnand %p1044_p9, %p1421_p8 }
 0x2ea   : > { %s961_s18 = scalar_lea.sflag [#allocation4], %s960_s23 }
 0x2eb   : > { %p1219_p4 = pneg %p1218_p3 }
 0x2ed   : > { %1308 = dma.done.wait (%p1219_p4), %s961_s18, 384  }
 0x2ee   : > { %1310 = vsyncadd (%p1219_p4), %s961_s18, 4294966912  ;;  %p19_p6 = scmp.ge.s32.totalorder %s1403_s11, 4   ;;  %s1944_s27 = smov %s1317_s28 }
 0x2ef   : > { %s1945_s28 = smov %s1321_s29  ;;  %s1946_s29 = smov %s1415_s14 }
 0x2f0   : > { %s1947_s30 = smov %s1403_s11  ;;  %21 = sbr.rel (!%p19_p6) target bundleno = 3 (0x3), region = 145 }
 0x2f5   :  { %966 = vsyncpa [#allocation4], 1 }
 0x2f6   :  { %968 = vsyncpa [#allocation4 + $0x1], 1 }

</bundles_post_ra>
